<compile_context>
chip_gen: v6e
topology: v6e:2x2x1
jax: 0.10.0
libtpu: 0.0.40
codegen_flags: <defaults>
</compile_context>

<pallas_src>
import functools
import math

import jax
import jax.numpy as jnp
from jax.experimental import pallas as pl
from jax.experimental.pallas import tpu as pltpu  # noqa: F401  (TPU backend)

# ----------------------------- small config consistent with the module -------
EMBED_DIM = 32          # d_model
NUM_HEADS = 4
HEAD_DIM = EMBED_DIM // NUM_HEADS
FFN_DIM = 64            # dim_feedforward
NUM_LAYERS = 2
PATCH = 4               # patch_size
TUBELET = 2             # tubelet_size
IMAGE_SIZE = 16
IN_CHANNELS = 3

N_PATCH = (IMAGE_SIZE // PATCH) ** 2                 # 16 spatial tokens
SEQ_REAL = N_PATCH + 1                               # +1 CLS  -> 17
SEQ_PAD = ((SEQ_REAL + 7) // 8) * 8                  # pad to full sublanes -> 24
PATCH_DIM = IN_CHANNELS * TUBELET * PATCH * PATCH    # flattened tubelet patch -> 96
LANE_PAD = 128                                       # lane-dense row width

BATCH = 2
FRAMES = 4                                           # t (divisible by TUBELET)
EPS = 1e-5                                           # torch LayerNorm default
NEG_INF = -1e9

# rows of the packed small-parameter operand
VEC_BPROJ, VEC_GF, VEC_BF, VEC_CLS = 0, 1, 2, 3
VEC_LAYER_BASE, VEC_PER_LAYER = 4, 8
NUM_VEC_ROWS = VEC_LAYER_BASE + VEC_PER_LAYER * NUM_LAYERS   # 20


def _layer_norm(x, gamma, beta):
    # x: (R, E) f32; gamma/beta: (1, E). Biased variance, like torch.nn.LayerNorm.
    mu = jnp.mean(x, axis=-1, keepdims=True)
    xc = x - mu
    var = jnp.mean(xc * xc, axis=-1, keepdims=True)
    return xc * jax.lax.rsqrt(var + EPS) * gamma + beta


# ----------------------------- the fused forward kernel ----------------------
def _vivit_spatial_kernel(patches_ref, pos_ref, vecs_ref,
                          wproj_ref, wqkv_ref, wo_ref, w1_ref, w2_ref,
                          o_ref, *, n):
    E, F, Dh, H, S = EMBED_DIM, FFN_DIM, HEAD_DIM, NUM_HEADS, SEQ_PAD
    ns = n * S
    f32, bf16 = jnp.float32, jnp.bfloat16

    # packed small params: biases / LN affines / CLS token, one row each
    vecs = vecs_ref[...]                                                # (20, 128) f32
    bproj = vecs[VEC_BPROJ:VEC_BPROJ + 1, :E]                           # (1, E)
    gf = vecs[VEC_GF:VEC_GF + 1, :E]
    bfin = vecs[VEC_BF:VEC_BF + 1, :E]
    cls = vecs[VEC_CLS:VEC_CLS + 1, :E].reshape(1, 1, E)

    # ---- Conv3d (kernel == stride) as one patch-embedding matmul -------------
    tok = jnp.dot(patches_ref[...], wproj_ref[...],
                  preferred_element_type=f32) + bproj                   # (ns, E)
    x3 = tok.reshape(n, S, E)

    # CLS token into row 0 of every sample, then add positional embedding
    row = jax.lax.broadcasted_iota(jnp.int32, (1, S, 1), 1)
    x3 = jnp.where(row == 0, cls, x3)
    x3 = x3 + pos_ref[...]                                              # pad rows +0
    x = x3.reshape(ns, E)                                               # f32 stream

    # additive key mask for the padded sequence tail (keys >= SEQ_REAL)
    kpos = jax.lax.broadcasted_iota(jnp.int32, (1, 1, S), 2)
    kmask = jnp.where(kpos >= SEQ_REAL, NEG_INF, 0.0).astype(f32)       # (1, 1, S)

    # ---- post-norm transformer encoder layers (static unroll over layers) ----
    for l in range(NUM_LAYERS):
        base = VEC_LAYER_BASE + l * VEC_PER_LAYER
        bqkv = vecs[base + 0:base + 1, :3 * E]
        bo = vecs[base + 1:base + 2, :E]
        b1 = vecs[base + 2:base + 3, :F]
        b2 = vecs[base + 3:base + 4, :E]
        g1 = vecs[base + 4:base + 5, :E]
        be1 = vecs[base + 5:base + 6, :E]
        g2 = vecs[base + 6:base + 7, :E]
        be2 = vecs[base + 7:base + 8, :E]
        wqkv = wqkv_ref[l]
        wo = wo_ref[l]
        w1 = w1_ref[l]
        w2 = w2_ref[l]

        # multi-head self-attention; 1/sqrt(Dh) is folded into the Q weights
        qkv = jnp.dot(x.astype(bf16), wqkv, preferred_element_type=f32) + bqkv
        qkv3 = qkv.reshape(n, S, 3 * E)
        q3 = qkv3[:, :, :E].astype(bf16)                                # (n, S, E)
        k3 = qkv3[:, :, E:2 * E].astype(bf16)
        v3 = qkv3[:, :, 2 * E:].astype(bf16)

        # per-head score blocks stacked along the query/sublane axis -> one softmax
        sc = jnp.concatenate(
            [jnp.einsum('nqd,nkd->nqk',
                        q3[:, :, h * Dh:(h + 1) * Dh],
                        k3[:, :, h * Dh:(h + 1) * Dh],
                        preferred_element_type=f32)
             for h in range(H)], axis=1)                                # (n, H*S, S)
        sc = sc + kmask
        m = jnp.max(sc, axis=-1, keepdims=True)
        ex = jnp.exp(sc - m)
        p = ex * pl.reciprocal(jnp.sum(ex, axis=-1, keepdims=True), approx=True)

        # one batched context matmul against full V; head h's output is the
        # (row-block h, lane-block h) diagonal block of ctx
        ctx = jnp.einsum('nrk,nkd->nrd', p.astype(bf16), v3,
                         preferred_element_type=f32)                    # (n, H*S, E)
        attn_in = jnp.concatenate(
            [ctx[:, h * S:(h + 1) * S, h * Dh:(h + 1) * Dh] for h in range(H)],
            axis=-1).reshape(ns, E)                                     # concat(heads)

        # merged out-projection: one K=E matmul (no per-head accumulation)
        attn = jnp.dot(attn_in.astype(bf16), wo, preferred_element_type=f32) + bo

        # residual + LayerNorm 1 (post-norm)
        x = _layer_norm(x + attn, g1, be1)

        # feed-forward (ReLU)
        hid = jnp.dot(x.astype(bf16), w1, preferred_element_type=f32) + b1
        hid = jnp.maximum(hid, 0.0)
        ffn = jnp.dot(hid.astype(bf16), w2, preferred_element_type=f32) + b2

        # residual + LayerNorm 2
        x = _layer_norm(x + ffn, g2, be2)

    # ---- CLS row per sample + final LayerNorm, lane-dense (unmasked) store ----
    cls_rows = x.reshape(n, S, E)[:, 0, :]                              # (n, E)
    out = _layer_norm(cls_rows, gf, bfin)
    o_ref[...] = jnp.concatenate(
        [out, jnp.zeros((n, LANE_PAD - E), f32)], axis=-1)              # (n, 128)


# ----------------------------- wrapper ---------------------------------------
@jax.jit
def spatial_transformer_forward(x, params):
    # x: (b, t, c, h, w) float32
    b, t, c, h, w = x.shape
    assert h == IMAGE_SIZE and w == IMAGE_SIZE and c == IN_CHANNELS
    assert t % TUBELET == 0
    tp = t // TUBELET
    n = b * tp
    nh, nw = h // PATCH, w // PATCH

    # Patch extraction is layout-only (zero FLOPs); the Conv3d contraction itself is the
    # in-kernel matmul. Component order (c, dt, dh, dw) matches the flattened Conv3d
    # weight. Cast to bf16 up-front: halves the rearrange traffic and the biggest DMA.
    xr = x.astype(jnp.bfloat16).reshape(b, tp, TUBELET, c, nh, PATCH, nw, PATCH)
    xr = xr.transpose(0, 1, 4, 6, 3, 2, 5, 7)            # (b,tp,nh,nw, c,dt,dh,dw)
    patches = xr.reshape(n, nh * nw, PATCH_DIM)
    # row 0 reserved for CLS; tail rows pad the sequence to SEQ_PAD (full sublanes)
    patches = jnp.pad(patches, ((0, 0), (1, SEQ_PAD - SEQ_REAL), (0, 0)))
    patches = patches.reshape(n * SEQ_PAD, PATCH_DIM)
    pos = jnp.pad(params["pos_embed"][:, :nh * nw + 1],
                  ((0, 0), (0, SEQ_PAD - SEQ_REAL), (0, 0)))

    # advisory cost estimate so XLA schedules the surrounding glue sensibly
    ns = n * SEQ_PAD
    flops = 2 * ns * PATCH_DIM * EMBED_DIM + NUM_LAYERS * (
        2 * ns * EMBED_DIM * 3 * EMBED_DIM                      # QKV proj
        + 2 * n * SEQ_PAD * SEQ_PAD * EMBED_DIM                 # scores (all heads)
        + 2 * n * NUM_HEADS * SEQ_PAD * SEQ_PAD * EMBED_DIM     # context matmul
        + 2 * ns * EMBED_DIM * EMBED_DIM                        # out projection
        + 4 * ns * EMBED_DIM * FFN_DIM)                         # FFN (2 matmuls)
    transcendentals = NUM_LAYERS * (n * NUM_HEADS * SEQ_PAD * SEQ_PAD + 5 * ns)
    bytes_accessed = (patches.size * 2 + pos.size * 4 + params["vecs"].size * 4
                      + params["wproj"].size * 2 + params["wqkv"].size * 2
                      + params["wo"].size * 2 + params["w1"].size * 2
                      + params["w2"].size * 2 + n * LANE_PAD * 4)
    cost = pl.CostEstimate(flops=flops, transcendentals=transcendentals,
                           bytes_accessed=bytes_accessed)

    # Single fused pallas_call: whole batch, all layers, final LN + CLS select.
    out_pad = pl.pallas_call(
        functools.partial(_vivit_spatial_kernel, n=n),
        out_shape=jax.ShapeDtypeStruct((n, LANE_PAD), jnp.float32),
        cost_estimate=cost,
    )(patches, pos, params["vecs"],
      params["wproj"], params["wqkv"], params["wo"], params["w1"], params["w2"])

    return out_pad[:, :EMBED_DIM].reshape(b, tp, EMBED_DIM)   # (b, t/tubelet, E)


# ----------------------------- parameters ------------------------------------
def make_params(key):
    def nrm(k, shape, std=0.02):
        return (std * jax.random.normal(k, shape)).astype(jnp.float32)

    kk = jax.random.split(key, 12)
    L, E, F, P = NUM_LAYERS, EMBED_DIM, FFN_DIM, PATCH_DIM
    scale = 1.0 / math.sqrt(HEAD_DIM)

    wqkv = nrm(kk[4], (L, E, 3 * E))
    bqkv = nrm(kk[5], (L, 1, 3 * E))
    # fold the 1/sqrt(head_dim) attention scale into the Q projection (W and b)
    wqkv = wqkv.at[..., :E].multiply(scale)
    bqkv = bqkv.at[..., :E].multiply(scale)

    params = {
        "cls_token": nrm(kk[0], (1, 1, E), std=1.0),                 # ~ randn
        "pos_embed": nrm(kk[1], (1, SEQ_REAL, E), std=0.02),
        "wproj": nrm(kk[2], (P, E)).astype(jnp.bfloat16),            # Conv3d weight, flattened+transposed
        "bproj": nrm(kk[3], (1, E)),
        "wqkv": wqkv.astype(jnp.bfloat16),
        "bqkv": bqkv,
        "wo":   nrm(kk[6], (L, E, E)).astype(jnp.bfloat16),
        "bo":   nrm(kk[7], (L, 1, E)),
        "g1":   jnp.ones((L, 1, E), jnp.float32),
        "be1":  jnp.zeros((L, 1, E), jnp.float32),
        "w1":   nrm(kk[8], (L, E, F)).astype(jnp.bfloat16),
        "b1":   nrm(kk[9], (L, 1, F)),
        "w2":   nrm(kk[10], (L, F, E)).astype(jnp.bfloat16),
        "b2":   nrm(kk[11], (L, 1, E)),
        "g2":   jnp.ones((L, 1, E), jnp.float32),
        "be2":  jnp.zeros((L, 1, E), jnp.float32),
        "gf":   jnp.ones((1, E), jnp.float32),
        "bf":   jnp.zeros((1, E), jnp.float32),
    }

    # Pack every tiny f32 vector (biases / LN affines / CLS) into one (20, 128)
    # operand so the fused kernel issues 8 input DMAs instead of 19.
    def row(v):
        v = v.reshape(1, -1).astype(jnp.float32)
        return jnp.pad(v, ((0, 0), (0, LANE_PAD - v.shape[1])))

    rows = [row(params["bproj"]), row(params["gf"]), row(params["bf"]),
            row(params["cls_token"])]
    for l in range(L):
        rows += [row(params["bqkv"][l]), row(params["bo"][l]),
                 row(params["b1"][l]), row(params["b2"][l]),
                 row(params["g1"][l]), row(params["be1"][l]),
                 row(params["g2"][l]), row(params["be2"][l])]
    params["vecs"] = jnp.concatenate(rows, axis=0)        # (NUM_VEC_ROWS, 128) f32
    assert params["vecs"].shape == (NUM_VEC_ROWS, LANE_PAD)
    return params


# ----------------------------- pure-JAX reference (for a sanity check) -------
def reference_forward(x, params):
    b, t, c, h, w = x.shape
    tp = t // TUBELET
    n = b * tp
    nh, nw = h // PATCH, w // PATCH
    xr = x.reshape(b, tp, TUBELET, c, nh, PATCH, nw, PATCH)
    xr = xr.transpose(0, 1, 4, 6, 3, 2, 5, 7)
    patches = xr.reshape(n, nh * nw, PATCH_DIM)

    def ln(u, g, bt):
        mu = u.mean(-1, keepdims=True)
        va = ((u - mu) ** 2).mean(-1, keepdims=True)
        return (u - mu) / jnp.sqrt(va + EPS) * g + bt

    tok = patches @ params["wproj"].astype(jnp.float32) + params["bproj"]
    cls = jnp.broadcast_to(params["cls_token"], (n, 1, EMBED_DIM))
    z = jnp.concatenate([cls, tok], axis=1) + params["pos_embed"][:, :nh * nw + 1]

    for l in range(NUM_LAYERS):
        qkv = z @ params["wqkv"][l].astype(jnp.float32) + params["bqkv"][l]
        q, k, v = jnp.split(qkv, 3, axis=-1)

        def heads(u):
            return u.reshape(n, -1, NUM_HEADS, HEAD_DIM).transpose(0, 2, 1, 3)

        qh, kh, vh = heads(q), heads(k), heads(v)
        sc = jnp.einsum('nhqd,nhkd->nhqk', qh, kh)       # scale folded into Wq
        p = jax.nn.softmax(sc, axis=-1)
        o = jnp.einsum('nhqk,nhkd->nhqd', p, vh).transpose(0, 2, 1, 3)
        o = o.reshape(n, -1, EMBED_DIM)
        attn = o @ params["wo"][l].astype(jnp.float32) + params["bo"][l]
        z = ln(z + attn, params["g1"][l], params["be1"][l])
        hid = jnp.maximum(z @ params["w1"][l].astype(jnp.float32) + params["b1"][l], 0.0)
        ffn = hid @ params["w2"][l].astype(jnp.float32) + params["b2"][l]
        z = ln(z + ffn, params["g2"][l], params["be2"][l])

    out = ln(z[:, 0, :], params["gf"], params["bf"])
    return out.reshape(b, tp, EMBED_DIM)


# ----------------------------- main -------------------------------------------
if __name__ == "__main__":
    key = jax.random.PRNGKey(0)
    k_param, k_x = jax.random.split(key)
    params = make_params(k_param)

    x = jax.random.normal(
        k_x, (BATCH, FRAMES, IN_CHANNELS, IMAGE_SIZE, IMAGE_SIZE), dtype=jnp.float32)

    out = spatial_transformer_forward(x, params)
    out = jax.block_until_ready(out)

    assert out.shape == (BATCH, FRAMES // TUBELET, EMBED_DIM), out.shape
    assert bool(jnp.all(jnp.isfinite(out)))

    ref = reference_forward(x, params)
    max_err = float(jnp.max(jnp.abs(out - ref)))
    assert max_err < 0.15, f"max abs err vs reference: {max_err}"

    print("KERNEL_OK")
</pallas_src>

<mosaic_0001>
module attributes {stable_mosaic.version = 11 : i64} {
  func.func @_vivit_spatial_kernel(%arg0: memref<96x96xbf16, #tpu.memory_space<vmem>>, %arg1: memref<1x24x32xf32, #tpu.memory_space<vmem>>, %arg2: memref<20x128xf32, #tpu.memory_space<vmem>>, %arg3: memref<96x32xbf16, #tpu.memory_space<vmem>>, %arg4: memref<2x32x96xbf16, #tpu.memory_space<vmem>>, %arg5: memref<2x32x32xbf16, #tpu.memory_space<vmem>>, %arg6: memref<2x32x64xbf16, #tpu.memory_space<vmem>>, %arg7: memref<2x64x32xbf16, #tpu.memory_space<vmem>>, %arg8: memref<4x128xf32, #tpu.memory_space<vmem>>) attributes {dimension_semantics = [], scalar_prefetch = 0 : i64, scratch_operands = 0 : i64, tpu.core_type = #tpu.core_type<tc>} {
    %c0 = arith.constant 0 : index
    %c0_0 = arith.constant 0 : index
    %0 = vector.load %arg2[%c0, %c0_0] : memref<20x128xf32, #tpu.memory_space<vmem>>, vector<20x128xf32>
    %1 = vector.extract_strided_slice %0 {offsets = [0, 0], sizes = [1, 32], strides = [1, 1]} : vector<20x128xf32> to vector<1x32xf32>
    %2 = vector.extract_strided_slice %0 {offsets = [1, 0], sizes = [1, 32], strides = [1, 1]} : vector<20x128xf32> to vector<1x32xf32>
    %3 = vector.extract_strided_slice %0 {offsets = [2, 0], sizes = [1, 32], strides = [1, 1]} : vector<20x128xf32> to vector<1x32xf32>
    %4 = vector.extract_strided_slice %0 {offsets = [3, 0], sizes = [1, 32], strides = [1, 1]} : vector<20x128xf32> to vector<1x32xf32>
    %5 = vector.shape_cast %4 : vector<1x32xf32> to vector<1x1x32xf32>
    %c0_1 = arith.constant 0 : index
    %c0_2 = arith.constant 0 : index
    %6 = vector.load %arg0[%c0_1, %c0_2] : memref<96x96xbf16, #tpu.memory_space<vmem>>, vector<96x96xbf16>
    %c0_3 = arith.constant 0 : index
    %c0_4 = arith.constant 0 : index
    %7 = vector.load %arg3[%c0_3, %c0_4] : memref<96x32xbf16, #tpu.memory_space<vmem>>, vector<96x32xbf16>
    %cst = arith.constant dense<0.000000e+00> : vector<96x32xf32>
    %8 = tpu.matmul %6, %7, %cst {dimension_numbers = #tpu.dot_dimension_numbers<[1], [0], [0], [1], [0, 0, 1, 1], [], []>} : vector<96x96xbf16>, vector<96x32xbf16>, vector<96x32xf32> -> vector<96x32xf32>
    %9 = vector.broadcast %1 : vector<1x32xf32> to vector<96x32xf32>
    %10 = arith.addf %8, %9 : vector<96x32xf32>
    %11 = vector.shape_cast %10 : vector<96x32xf32> to vector<4x24x32xf32>
    %12 = tpu.iota {dimensions = array<i32: 1>} : vector<1x24x1xi32>
    %c0_i32 = arith.constant 0 : i32
    %13 = vector.broadcast %c0_i32 : i32 to vector<1x24x1xi32>
    %14 = arith.cmpi eq, %12, %13 : vector<1x24x1xi32>
    %15 = vector.shape_cast %14 : vector<1x24x1xi1> to vector<1x24x1xi1>
    %16 = vector.broadcast %15 : vector<1x24x1xi1> to vector<4x24x32xi1>
    %17 = vector.shape_cast %5 : vector<1x1x32xf32> to vector<1x1x32xf32>
    %18 = vector.broadcast %17 : vector<1x1x32xf32> to vector<4x24x32xf32>
    %19 = arith.select %16, %18, %11 : vector<4x24x32xi1>, vector<4x24x32xf32>
    %c0_5 = arith.constant 0 : index
    %c0_6 = arith.constant 0 : index
    %c0_7 = arith.constant 0 : index
    %20 = vector.load %arg1[%c0_5, %c0_6, %c0_7] : memref<1x24x32xf32, #tpu.memory_space<vmem>>, vector<1x24x32xf32>
    %21 = vector.broadcast %20 : vector<1x24x32xf32> to vector<4x24x32xf32>
    %22 = arith.addf %19, %21 : vector<4x24x32xf32>
    %23 = vector.shape_cast %22 : vector<4x24x32xf32> to vector<96x32xf32>
    %24 = tpu.iota {dimensions = array<i32: 2>} : vector<1x1x24xi32>
    %c17_i32 = arith.constant 17 : i32
    %25 = vector.broadcast %c17_i32 : i32 to vector<1x1x24xi32>
    %26 = arith.cmpi sge, %24, %25 : vector<1x1x24xi32>
    %cst_8 = arith.constant -1.000000e+09 : f32
    %cst_9 = arith.constant 0.000000e+00 : f32
    %27 = vector.broadcast %cst_8 : f32 to vector<1x1x24xf32>
    %28 = vector.broadcast %cst_9 : f32 to vector<1x1x24xf32>
    %29 = arith.select %26, %27, %28 : vector<1x1x24xi1>, vector<1x1x24xf32>
    %30 = vector.extract_strided_slice %0 {offsets = [4, 0], sizes = [1, 96], strides = [1, 1]} : vector<20x128xf32> to vector<1x96xf32>
    %31 = vector.extract_strided_slice %0 {offsets = [5, 0], sizes = [1, 32], strides = [1, 1]} : vector<20x128xf32> to vector<1x32xf32>
    %32 = vector.extract_strided_slice %0 {offsets = [6, 0], sizes = [1, 64], strides = [1, 1]} : vector<20x128xf32> to vector<1x64xf32>
    %33 = vector.extract_strided_slice %0 {offsets = [7, 0], sizes = [1, 32], strides = [1, 1]} : vector<20x128xf32> to vector<1x32xf32>
    %34 = vector.extract_strided_slice %0 {offsets = [8, 0], sizes = [1, 32], strides = [1, 1]} : vector<20x128xf32> to vector<1x32xf32>
    %35 = vector.extract_strided_slice %0 {offsets = [9, 0], sizes = [1, 32], strides = [1, 1]} : vector<20x128xf32> to vector<1x32xf32>
    %36 = vector.extract_strided_slice %0 {offsets = [10, 0], sizes = [1, 32], strides = [1, 1]} : vector<20x128xf32> to vector<1x32xf32>
    %37 = vector.extract_strided_slice %0 {offsets = [11, 0], sizes = [1, 32], strides = [1, 1]} : vector<20x128xf32> to vector<1x32xf32>
    %c0_10 = arith.constant 0 : index
    %c0_11 = arith.constant 0 : index
    %c0_12 = arith.constant 0 : index
    %38 = vector.load %arg4[%c0_10, %c0_11, %c0_12] : memref<2x32x96xbf16, #tpu.memory_space<vmem>>, vector<1x32x96xbf16>
    %39 = vector.shape_cast %38 : vector<1x32x96xbf16> to vector<32x96xbf16>
    %c0_13 = arith.constant 0 : index
    %c0_14 = arith.constant 0 : index
    %c0_15 = arith.constant 0 : index
    %40 = vector.load %arg5[%c0_13, %c0_14, %c0_15] : memref<2x32x32xbf16, #tpu.memory_space<vmem>>, vector<1x32x32xbf16>
    %41 = vector.shape_cast %40 : vector<1x32x32xbf16> to vector<32x32xbf16>
    %c0_16 = arith.constant 0 : index
    %c0_17 = arith.constant 0 : index
    %c0_18 = arith.constant 0 : index
    %42 = vector.load %arg6[%c0_16, %c0_17, %c0_18] : memref<2x32x64xbf16, #tpu.memory_space<vmem>>, vector<1x32x64xbf16>
    %43 = vector.shape_cast %42 : vector<1x32x64xbf16> to vector<32x64xbf16>
    %c0_19 = arith.constant 0 : index
    %c0_20 = arith.constant 0 : index
    %c0_21 = arith.constant 0 : index
    %44 = vector.load %arg7[%c0_19, %c0_20, %c0_21] : memref<2x64x32xbf16, #tpu.memory_space<vmem>>, vector<1x64x32xbf16>
    %45 = vector.shape_cast %44 : vector<1x64x32xbf16> to vector<64x32xbf16>
    %46 = arith.truncf %23 : vector<96x32xf32> to vector<96x32xbf16>
    %cst_22 = arith.constant dense<0.000000e+00> : vector<96x96xf32>
    %47 = tpu.matmul %46, %39, %cst_22 {dimension_numbers = #tpu.dot_dimension_numbers<[1], [0], [0], [1], [0, 0, 1, 1], [], []>} : vector<96x32xbf16>, vector<32x96xbf16>, vector<96x96xf32> -> vector<96x96xf32>
    %48 = vector.broadcast %30 : vector<1x96xf32> to vector<96x96xf32>
    %49 = arith.addf %47, %48 : vector<96x96xf32>
    %50 = vector.shape_cast %49 : vector<96x96xf32> to vector<4x24x96xf32>
    %51 = vector.extract_strided_slice %50 {offsets = [0, 0, 0], sizes = [4, 24, 32], strides = [1, 1, 1]} : vector<4x24x96xf32> to vector<4x24x32xf32>
    %52 = arith.truncf %51 : vector<4x24x32xf32> to vector<4x24x32xbf16>
    %53 = vector.extract_strided_slice %50 {offsets = [0, 0, 32], sizes = [4, 24, 32], strides = [1, 1, 1]} : vector<4x24x96xf32> to vector<4x24x32xf32>
    %54 = arith.truncf %53 : vector<4x24x32xf32> to vector<4x24x32xbf16>
    %55 = vector.extract_strided_slice %50 {offsets = [0, 0, 64], sizes = [4, 24, 32], strides = [1, 1, 1]} : vector<4x24x96xf32> to vector<4x24x32xf32>
    %56 = arith.truncf %55 : vector<4x24x32xf32> to vector<4x24x32xbf16>
    %57 = vector.extract_strided_slice %52 {offsets = [0, 0, 0], sizes = [4, 24, 8], strides = [1, 1, 1]} : vector<4x24x32xbf16> to vector<4x24x8xbf16>
    %58 = vector.extract_strided_slice %54 {offsets = [0, 0, 0], sizes = [4, 24, 8], strides = [1, 1, 1]} : vector<4x24x32xbf16> to vector<4x24x8xbf16>
    "tpu.trace_start"() <{level = 10 : i32, message = "nqd,nkd->nqk"}> : () -> ()
    %cst_23 = arith.constant dense<0.000000e+00> : vector<4x24x24xf32>
    %59 = tpu.matmul %57, %58, %cst_23 {dimension_numbers = #tpu.dot_dimension_numbers<[2], [2], [1], [1], [0, 0, 0, 1, 1, 1], [0], [0]>} : vector<4x24x8xbf16>, vector<4x24x8xbf16>, vector<4x24x24xf32> -> vector<4x24x24xf32>
    "tpu.trace_stop"() : () -> ()
    %60 = vector.extract_strided_slice %52 {offsets = [0, 0, 8], sizes = [4, 24, 8], strides = [1, 1, 1]} : vector<4x24x32xbf16> to vector<4x24x8xbf16>
    %61 = vector.extract_strided_slice %54 {offsets = [0, 0, 8], sizes = [4, 24, 8], strides = [1, 1, 1]} : vector<4x24x32xbf16> to vector<4x24x8xbf16>
    "tpu.trace_start"() <{level = 10 : i32, message = "nqd,nkd->nqk"}> : () -> ()
    %cst_24 = arith.constant dense<0.000000e+00> : vector<4x24x24xf32>
    %62 = tpu.matmul %60, %61, %cst_24 {dimension_numbers = #tpu.dot_dimension_numbers<[2], [2], [1], [1], [0, 0, 0, 1, 1, 1], [0], [0]>} : vector<4x24x8xbf16>, vector<4x24x8xbf16>, vector<4x24x24xf32> -> vector<4x24x24xf32>
    "tpu.trace_stop"() : () -> ()
    %63 = vector.extract_strided_slice %52 {offsets = [0, 0, 16], sizes = [4, 24, 8], strides = [1, 1, 1]} : vector<4x24x32xbf16> to vector<4x24x8xbf16>
    %64 = vector.extract_strided_slice %54 {offsets = [0, 0, 16], sizes = [4, 24, 8], strides = [1, 1, 1]} : vector<4x24x32xbf16> to vector<4x24x8xbf16>
    "tpu.trace_start"() <{level = 10 : i32, message = "nqd,nkd->nqk"}> : () -> ()
    %cst_25 = arith.constant dense<0.000000e+00> : vector<4x24x24xf32>
    %65 = tpu.matmul %63, %64, %cst_25 {dimension_numbers = #tpu.dot_dimension_numbers<[2], [2], [1], [1], [0, 0, 0, 1, 1, 1], [0], [0]>} : vector<4x24x8xbf16>, vector<4x24x8xbf16>, vector<4x24x24xf32> -> vector<4x24x24xf32>
    "tpu.trace_stop"() : () -> ()
    %66 = vector.extract_strided_slice %52 {offsets = [0, 0, 24], sizes = [4, 24, 8], strides = [1, 1, 1]} : vector<4x24x32xbf16> to vector<4x24x8xbf16>
    %67 = vector.extract_strided_slice %54 {offsets = [0, 0, 24], sizes = [4, 24, 8], strides = [1, 1, 1]} : vector<4x24x32xbf16> to vector<4x24x8xbf16>
    "tpu.trace_start"() <{level = 10 : i32, message = "nqd,nkd->nqk"}> : () -> ()
    %cst_26 = arith.constant dense<0.000000e+00> : vector<4x24x24xf32>
    %68 = tpu.matmul %66, %67, %cst_26 {dimension_numbers = #tpu.dot_dimension_numbers<[2], [2], [1], [1], [0, 0, 0, 1, 1, 1], [0], [0]>} : vector<4x24x8xbf16>, vector<4x24x8xbf16>, vector<4x24x24xf32> -> vector<4x24x24xf32>
    "tpu.trace_stop"() : () -> ()
    %69 = tpu.concatenate %59, %62, %65, %68 in 1 : vector<4x24x24xf32>, vector<4x24x24xf32>, vector<4x24x24xf32>, vector<4x24x24xf32> -> vector<4x96x24xf32>
    %70 = vector.broadcast %29 : vector<1x1x24xf32> to vector<4x96x24xf32>
    %71 = arith.addf %69, %70 : vector<4x96x24xf32>
    %cst_27 = arith.constant dense<0xFF800000> : vector<4x96xf32>
    %72 = vector.multi_reduction <maximumf>, %71, %cst_27 [2] : vector<4x96x24xf32> to vector<4x96xf32>
    %73 = vector.shape_cast %72 : vector<4x96xf32> to vector<4x96x1xf32>
    %74 = vector.broadcast %73 : vector<4x96x1xf32> to vector<4x96x24xf32>
    %75 = arith.subf %71, %74 : vector<4x96x24xf32>
    %76 = math.exp %75 : vector<4x96x24xf32>
    %cst_28 = arith.constant dense<0.000000e+00> : vector<4x96xf32>
    %77 = vector.multi_reduction <add>, %76, %cst_28 [2] : vector<4x96x24xf32> to vector<4x96xf32>
    %78 = vector.shape_cast %77 : vector<4x96xf32> to vector<4x96x1xf32>
    %79 = tpu.reciprocal %78 {approx = true} : vector<4x96x1xf32> -> vector<4x96x1xf32>
    %80 = vector.broadcast %79 : vector<4x96x1xf32> to vector<4x96x24xf32>
    %81 = arith.mulf %76, %80 : vector<4x96x24xf32>
    %82 = arith.truncf %81 : vector<4x96x24xf32> to vector<4x96x24xbf16>
    "tpu.trace_start"() <{level = 10 : i32, message = "nrk,nkd->nrd"}> : () -> ()
    %cst_29 = arith.constant dense<0.000000e+00> : vector<4x96x32xf32>
    %83 = tpu.matmul %82, %56, %cst_29 {dimension_numbers = #tpu.dot_dimension_numbers<[2], [1], [1], [2], [0, 0, 0, 1, 1, 2], [0], [0]>} : vector<4x96x24xbf16>, vector<4x24x32xbf16>, vector<4x96x32xf32> -> vector<4x96x32xf32>
    "tpu.trace_stop"() : () -> ()
    %84 = vector.extract_strided_slice %83 {offsets = [0, 0, 0], sizes = [4, 24, 8], strides = [1, 1, 1]} : vector<4x96x32xf32> to vector<4x24x8xf32>
    %85 = vector.extract_strided_slice %83 {offsets = [0, 24, 8], sizes = [4, 24, 8], strides = [1, 1, 1]} : vector<4x96x32xf32> to vector<4x24x8xf32>
    %86 = vector.extract_strided_slice %83 {offsets = [0, 48, 16], sizes = [4, 24, 8], strides = [1, 1, 1]} : vector<4x96x32xf32> to vector<4x24x8xf32>
    %87 = vector.extract_strided_slice %83 {offsets = [0, 72, 24], sizes = [4, 24, 8], strides = [1, 1, 1]} : vector<4x96x32xf32> to vector<4x24x8xf32>
    %88 = tpu.concatenate %84, %85, %86, %87 in 2 : vector<4x24x8xf32>, vector<4x24x8xf32>, vector<4x24x8xf32>, vector<4x24x8xf32> -> vector<4x24x32xf32>
    %89 = vector.shape_cast %88 : vector<4x24x32xf32> to vector<96x32xf32>
    %90 = arith.truncf %89 : vector<96x32xf32> to vector<96x32xbf16>
    %cst_30 = arith.constant dense<0.000000e+00> : vector<96x32xf32>
    %91 = tpu.matmul %90, %41, %cst_30 {dimension_numbers = #tpu.dot_dimension_numbers<[1], [0], [0], [1], [0, 0, 1, 1], [], []>} : vector<96x32xbf16>, vector<32x32xbf16>, vector<96x32xf32> -> vector<96x32xf32>
    %92 = vector.broadcast %31 : vector<1x32xf32> to vector<96x32xf32>
    %93 = arith.addf %91, %92 : vector<96x32xf32>
    %94 = arith.addf %23, %93 : vector<96x32xf32>
    %cst_31 = arith.constant dense<0.000000e+00> : vector<96xf32>
    %95 = vector.multi_reduction <add>, %94, %cst_31 [1] : vector<96x32xf32> to vector<96xf32>
    %96 = vector.shape_cast %95 : vector<96xf32> to vector<96x1xf32>
    %cst_32 = arith.constant 3.200000e+01 : f32
    %97 = vector.broadcast %cst_32 : f32 to vector<96x1xf32>
    %98 = arith.divf %96, %97 : vector<96x1xf32>
    %99 = vector.broadcast %98 : vector<96x1xf32> to vector<96x32xf32>
    %100 = arith.subf %94, %99 : vector<96x32xf32>
    %101 = arith.mulf %100, %100 : vector<96x32xf32>
    %cst_33 = arith.constant dense<0.000000e+00> : vector<96xf32>
    %102 = vector.multi_reduction <add>, %101, %cst_33 [1] : vector<96x32xf32> to vector<96xf32>
    %103 = vector.shape_cast %102 : vector<96xf32> to vector<96x1xf32>
    %cst_34 = arith.constant 3.200000e+01 : f32
    %104 = vector.broadcast %cst_34 : f32 to vector<96x1xf32>
    %105 = arith.divf %103, %104 : vector<96x1xf32>
    %cst_35 = arith.constant 9.99999974E-6 : f32
    %106 = vector.broadcast %cst_35 : f32 to vector<96x1xf32>
    %107 = arith.addf %105, %106 : vector<96x1xf32>
    %108 = math.rsqrt %107 : vector<96x1xf32>
    %109 = vector.broadcast %108 : vector<96x1xf32> to vector<96x32xf32>
    %110 = arith.mulf %100, %109 : vector<96x32xf32>
    %111 = vector.broadcast %34 : vector<1x32xf32> to vector<96x32xf32>
    %112 = arith.mulf %110, %111 : vector<96x32xf32>
    %113 = vector.broadcast %35 : vector<1x32xf32> to vector<96x32xf32>
    %114 = arith.addf %112, %113 : vector<96x32xf32>
    %115 = arith.truncf %114 : vector<96x32xf32> to vector<96x32xbf16>
    %cst_36 = arith.constant dense<0.000000e+00> : vector<96x64xf32>
    %116 = tpu.matmul %115, %43, %cst_36 {dimension_numbers = #tpu.dot_dimension_numbers<[1], [0], [0], [1], [0, 0, 1, 1], [], []>} : vector<96x32xbf16>, vector<32x64xbf16>, vector<96x64xf32> -> vector<96x64xf32>
    %117 = vector.broadcast %32 : vector<1x64xf32> to vector<96x64xf32>
    %118 = arith.addf %116, %117 : vector<96x64xf32>
    %cst_37 = arith.constant 0.000000e+00 : f32
    %119 = vector.broadcast %cst_37 : f32 to vector<96x64xf32>
    %120 = arith.maximumf %118, %119 : vector<96x64xf32>
    %121 = arith.truncf %120 : vector<96x64xf32> to vector<96x64xbf16>
    %cst_38 = arith.constant dense<0.000000e+00> : vector<96x32xf32>
    %122 = tpu.matmul %121, %45, %cst_38 {dimension_numbers = #tpu.dot_dimension_numbers<[1], [0], [0], [1], [0, 0, 1, 1], [], []>} : vector<96x64xbf16>, vector<64x32xbf16>, vector<96x32xf32> -> vector<96x32xf32>
    %123 = vector.broadcast %33 : vector<1x32xf32> to vector<96x32xf32>
    %124 = arith.addf %122, %123 : vector<96x32xf32>
    %125 = arith.addf %114, %124 : vector<96x32xf32>
    %cst_39 = arith.constant dense<0.000000e+00> : vector<96xf32>
    %126 = vector.multi_reduction <add>, %125, %cst_39 [1] : vector<96x32xf32> to vector<96xf32>
    %127 = vector.shape_cast %126 : vector<96xf32> to vector<96x1xf32>
    %cst_40 = arith.constant 3.200000e+01 : f32
    %128 = vector.broadcast %cst_40 : f32 to vector<96x1xf32>
    %129 = arith.divf %127, %128 : vector<96x1xf32>
    %130 = vector.broadcast %129 : vector<96x1xf32> to vector<96x32xf32>
    %131 = arith.subf %125, %130 : vector<96x32xf32>
    %132 = arith.mulf %131, %131 : vector<96x32xf32>
    %cst_41 = arith.constant dense<0.000000e+00> : vector<96xf32>
    %133 = vector.multi_reduction <add>, %132, %cst_41 [1] : vector<96x32xf32> to vector<96xf32>
    %134 = vector.shape_cast %133 : vector<96xf32> to vector<96x1xf32>
    %cst_42 = arith.constant 3.200000e+01 : f32
    %135 = vector.broadcast %cst_42 : f32 to vector<96x1xf32>
    %136 = arith.divf %134, %135 : vector<96x1xf32>
    %cst_43 = arith.constant 9.99999974E-6 : f32
    %137 = vector.broadcast %cst_43 : f32 to vector<96x1xf32>
    %138 = arith.addf %136, %137 : vector<96x1xf32>
    %139 = math.rsqrt %138 : vector<96x1xf32>
    %140 = vector.broadcast %139 : vector<96x1xf32> to vector<96x32xf32>
    %141 = arith.mulf %131, %140 : vector<96x32xf32>
    %142 = vector.broadcast %36 : vector<1x32xf32> to vector<96x32xf32>
    %143 = arith.mulf %141, %142 : vector<96x32xf32>
    %144 = vector.broadcast %37 : vector<1x32xf32> to vector<96x32xf32>
    %145 = arith.addf %143, %144 : vector<96x32xf32>
    %146 = vector.extract_strided_slice %0 {offsets = [12, 0], sizes = [1, 96], strides = [1, 1]} : vector<20x128xf32> to vector<1x96xf32>
    %147 = vector.extract_strided_slice %0 {offsets = [13, 0], sizes = [1, 32], strides = [1, 1]} : vector<20x128xf32> to vector<1x32xf32>
    %148 = vector.extract_strided_slice %0 {offsets = [14, 0], sizes = [1, 64], strides = [1, 1]} : vector<20x128xf32> to vector<1x64xf32>
    %149 = vector.extract_strided_slice %0 {offsets = [15, 0], sizes = [1, 32], strides = [1, 1]} : vector<20x128xf32> to vector<1x32xf32>
    %150 = vector.extract_strided_slice %0 {offsets = [16, 0], sizes = [1, 32], strides = [1, 1]} : vector<20x128xf32> to vector<1x32xf32>
    %151 = vector.extract_strided_slice %0 {offsets = [17, 0], sizes = [1, 32], strides = [1, 1]} : vector<20x128xf32> to vector<1x32xf32>
    %152 = vector.extract_strided_slice %0 {offsets = [18, 0], sizes = [1, 32], strides = [1, 1]} : vector<20x128xf32> to vector<1x32xf32>
    %153 = vector.extract_strided_slice %0 {offsets = [19, 0], sizes = [1, 32], strides = [1, 1]} : vector<20x128xf32> to vector<1x32xf32>
    %c1 = arith.constant 1 : index
    %c0_44 = arith.constant 0 : index
    %c0_45 = arith.constant 0 : index
    %154 = vector.load %arg4[%c1, %c0_44, %c0_45] : memref<2x32x96xbf16, #tpu.memory_space<vmem>>, vector<1x32x96xbf16>
    %155 = vector.shape_cast %154 : vector<1x32x96xbf16> to vector<32x96xbf16>
    %c1_46 = arith.constant 1 : index
    %c0_47 = arith.constant 0 : index
    %c0_48 = arith.constant 0 : index
    %156 = vector.load %arg5[%c1_46, %c0_47, %c0_48] : memref<2x32x32xbf16, #tpu.memory_space<vmem>>, vector<1x32x32xbf16>
    %157 = vector.shape_cast %156 : vector<1x32x32xbf16> to vector<32x32xbf16>
    %c1_49 = arith.constant 1 : index
    %c0_50 = arith.constant 0 : index
    %c0_51 = arith.constant 0 : index
    %158 = vector.load %arg6[%c1_49, %c0_50, %c0_51] : memref<2x32x64xbf16, #tpu.memory_space<vmem>>, vector<1x32x64xbf16>
    %159 = vector.shape_cast %158 : vector<1x32x64xbf16> to vector<32x64xbf16>
    %c1_52 = arith.constant 1 : index
    %c0_53 = arith.constant 0 : index
    %c0_54 = arith.constant 0 : index
    %160 = vector.load %arg7[%c1_52, %c0_53, %c0_54] : memref<2x64x32xbf16, #tpu.memory_space<vmem>>, vector<1x64x32xbf16>
    %161 = vector.shape_cast %160 : vector<1x64x32xbf16> to vector<64x32xbf16>
    %162 = arith.truncf %145 : vector<96x32xf32> to vector<96x32xbf16>
    %cst_55 = arith.constant dense<0.000000e+00> : vector<96x96xf32>
    %163 = tpu.matmul %162, %155, %cst_55 {dimension_numbers = #tpu.dot_dimension_numbers<[1], [0], [0], [1], [0, 0, 1, 1], [], []>} : vector<96x32xbf16>, vector<32x96xbf16>, vector<96x96xf32> -> vector<96x96xf32>
    %164 = vector.broadcast %146 : vector<1x96xf32> to vector<96x96xf32>
    %165 = arith.addf %163, %164 : vector<96x96xf32>
    %166 = vector.shape_cast %165 : vector<96x96xf32> to vector<4x24x96xf32>
    %167 = vector.extract_strided_slice %166 {offsets = [0, 0, 0], sizes = [4, 24, 32], strides = [1, 1, 1]} : vector<4x24x96xf32> to vector<4x24x32xf32>
    %168 = arith.truncf %167 : vector<4x24x32xf32> to vector<4x24x32xbf16>
    %169 = vector.extract_strided_slice %166 {offsets = [0, 0, 32], sizes = [4, 24, 32], strides = [1, 1, 1]} : vector<4x24x96xf32> to vector<4x24x32xf32>
    %170 = arith.truncf %169 : vector<4x24x32xf32> to vector<4x24x32xbf16>
    %171 = vector.extract_strided_slice %166 {offsets = [0, 0, 64], sizes = [4, 24, 32], strides = [1, 1, 1]} : vector<4x24x96xf32> to vector<4x24x32xf32>
    %172 = arith.truncf %171 : vector<4x24x32xf32> to vector<4x24x32xbf16>
    %173 = vector.extract_strided_slice %168 {offsets = [0, 0, 0], sizes = [4, 24, 8], strides = [1, 1, 1]} : vector<4x24x32xbf16> to vector<4x24x8xbf16>
    %174 = vector.extract_strided_slice %170 {offsets = [0, 0, 0], sizes = [4, 24, 8], strides = [1, 1, 1]} : vector<4x24x32xbf16> to vector<4x24x8xbf16>
    "tpu.trace_start"() <{level = 10 : i32, message = "nqd,nkd->nqk"}> : () -> ()
    %cst_56 = arith.constant dense<0.000000e+00> : vector<4x24x24xf32>
    %175 = tpu.matmul %173, %174, %cst_56 {dimension_numbers = #tpu.dot_dimension_numbers<[2], [2], [1], [1], [0, 0, 0, 1, 1, 1], [0], [0]>} : vector<4x24x8xbf16>, vector<4x24x8xbf16>, vector<4x24x24xf32> -> vector<4x24x24xf32>
    "tpu.trace_stop"() : () -> ()
    %176 = vector.extract_strided_slice %168 {offsets = [0, 0, 8], sizes = [4, 24, 8], strides = [1, 1, 1]} : vector<4x24x32xbf16> to vector<4x24x8xbf16>
    %177 = vector.extract_strided_slice %170 {offsets = [0, 0, 8], sizes = [4, 24, 8], strides = [1, 1, 1]} : vector<4x24x32xbf16> to vector<4x24x8xbf16>
    "tpu.trace_start"() <{level = 10 : i32, message = "nqd,nkd->nqk"}> : () -> ()
    %cst_57 = arith.constant dense<0.000000e+00> : vector<4x24x24xf32>
    %178 = tpu.matmul %176, %177, %cst_57 {dimension_numbers = #tpu.dot_dimension_numbers<[2], [2], [1], [1], [0, 0, 0, 1, 1, 1], [0], [0]>} : vector<4x24x8xbf16>, vector<4x24x8xbf16>, vector<4x24x24xf32> -> vector<4x24x24xf32>
    "tpu.trace_stop"() : () -> ()
    %179 = vector.extract_strided_slice %168 {offsets = [0, 0, 16], sizes = [4, 24, 8], strides = [1, 1, 1]} : vector<4x24x32xbf16> to vector<4x24x8xbf16>
    %180 = vector.extract_strided_slice %170 {offsets = [0, 0, 16], sizes = [4, 24, 8], strides = [1, 1, 1]} : vector<4x24x32xbf16> to vector<4x24x8xbf16>
    "tpu.trace_start"() <{level = 10 : i32, message = "nqd,nkd->nqk"}> : () -> ()
    %cst_58 = arith.constant dense<0.000000e+00> : vector<4x24x24xf32>
    %181 = tpu.matmul %179, %180, %cst_58 {dimension_numbers = #tpu.dot_dimension_numbers<[2], [2], [1], [1], [0, 0, 0, 1, 1, 1], [0], [0]>} : vector<4x24x8xbf16>, vector<4x24x8xbf16>, vector<4x24x24xf32> -> vector<4x24x24xf32>
    "tpu.trace_stop"() : () -> ()
    %182 = vector.extract_strided_slice %168 {offsets = [0, 0, 24], sizes = [4, 24, 8], strides = [1, 1, 1]} : vector<4x24x32xbf16> to vector<4x24x8xbf16>
    %183 = vector.extract_strided_slice %170 {offsets = [0, 0, 24], sizes = [4, 24, 8], strides = [1, 1, 1]} : vector<4x24x32xbf16> to vector<4x24x8xbf16>
    "tpu.trace_start"() <{level = 10 : i32, message = "nqd,nkd->nqk"}> : () -> ()
    %cst_59 = arith.constant dense<0.000000e+00> : vector<4x24x24xf32>
    %184 = tpu.matmul %182, %183, %cst_59 {dimension_numbers = #tpu.dot_dimension_numbers<[2], [2], [1], [1], [0, 0, 0, 1, 1, 1], [0], [0]>} : vector<4x24x8xbf16>, vector<4x24x8xbf16>, vector<4x24x24xf32> -> vector<4x24x24xf32>
    "tpu.trace_stop"() : () -> ()
    %185 = tpu.concatenate %175, %178, %181, %184 in 1 : vector<4x24x24xf32>, vector<4x24x24xf32>, vector<4x24x24xf32>, vector<4x24x24xf32> -> vector<4x96x24xf32>
    %186 = vector.broadcast %29 : vector<1x1x24xf32> to vector<4x96x24xf32>
    %187 = arith.addf %185, %186 : vector<4x96x24xf32>
    %cst_60 = arith.constant dense<0xFF800000> : vector<4x96xf32>
    %188 = vector.multi_reduction <maximumf>, %187, %cst_60 [2] : vector<4x96x24xf32> to vector<4x96xf32>
    %189 = vector.shape_cast %188 : vector<4x96xf32> to vector<4x96x1xf32>
    %190 = vector.broadcast %189 : vector<4x96x1xf32> to vector<4x96x24xf32>
    %191 = arith.subf %187, %190 : vector<4x96x24xf32>
    %192 = math.exp %191 : vector<4x96x24xf32>
    %cst_61 = arith.constant dense<0.000000e+00> : vector<4x96xf32>
    %193 = vector.multi_reduction <add>, %192, %cst_61 [2] : vector<4x96x24xf32> to vector<4x96xf32>
    %194 = vector.shape_cast %193 : vector<4x96xf32> to vector<4x96x1xf32>
    %195 = tpu.reciprocal %194 {approx = true} : vector<4x96x1xf32> -> vector<4x96x1xf32>
    %196 = vector.broadcast %195 : vector<4x96x1xf32> to vector<4x96x24xf32>
    %197 = arith.mulf %192, %196 : vector<4x96x24xf32>
    %198 = arith.truncf %197 : vector<4x96x24xf32> to vector<4x96x24xbf16>
    "tpu.trace_start"() <{level = 10 : i32, message = "nrk,nkd->nrd"}> : () -> ()
    %cst_62 = arith.constant dense<0.000000e+00> : vector<4x96x32xf32>
    %199 = tpu.matmul %198, %172, %cst_62 {dimension_numbers = #tpu.dot_dimension_numbers<[2], [1], [1], [2], [0, 0, 0, 1, 1, 2], [0], [0]>} : vector<4x96x24xbf16>, vector<4x24x32xbf16>, vector<4x96x32xf32> -> vector<4x96x32xf32>
    "tpu.trace_stop"() : () -> ()
    %200 = vector.extract_strided_slice %199 {offsets = [0, 0, 0], sizes = [4, 24, 8], strides = [1, 1, 1]} : vector<4x96x32xf32> to vector<4x24x8xf32>
    %201 = vector.extract_strided_slice %199 {offsets = [0, 24, 8], sizes = [4, 24, 8], strides = [1, 1, 1]} : vector<4x96x32xf32> to vector<4x24x8xf32>
    %202 = vector.extract_strided_slice %199 {offsets = [0, 48, 16], sizes = [4, 24, 8], strides = [1, 1, 1]} : vector<4x96x32xf32> to vector<4x24x8xf32>
    %203 = vector.extract_strided_slice %199 {offsets = [0, 72, 24], sizes = [4, 24, 8], strides = [1, 1, 1]} : vector<4x96x32xf32> to vector<4x24x8xf32>
    %204 = tpu.concatenate %200, %201, %202, %203 in 2 : vector<4x24x8xf32>, vector<4x24x8xf32>, vector<4x24x8xf32>, vector<4x24x8xf32> -> vector<4x24x32xf32>
    %205 = vector.shape_cast %204 : vector<4x24x32xf32> to vector<96x32xf32>
    %206 = arith.truncf %205 : vector<96x32xf32> to vector<96x32xbf16>
    %cst_63 = arith.constant dense<0.000000e+00> : vector<96x32xf32>
    %207 = tpu.matmul %206, %157, %cst_63 {dimension_numbers = #tpu.dot_dimension_numbers<[1], [0], [0], [1], [0, 0, 1, 1], [], []>} : vector<96x32xbf16>, vector<32x32xbf16>, vector<96x32xf32> -> vector<96x32xf32>
    %208 = vector.broadcast %147 : vector<1x32xf32> to vector<96x32xf32>
    %209 = arith.addf %207, %208 : vector<96x32xf32>
    %210 = arith.addf %145, %209 : vector<96x32xf32>
    %cst_64 = arith.constant dense<0.000000e+00> : vector<96xf32>
    %211 = vector.multi_reduction <add>, %210, %cst_64 [1] : vector<96x32xf32> to vector<96xf32>
    %212 = vector.shape_cast %211 : vector<96xf32> to vector<96x1xf32>
    %cst_65 = arith.constant 3.200000e+01 : f32
    %213 = vector.broadcast %cst_65 : f32 to vector<96x1xf32>
    %214 = arith.divf %212, %213 : vector<96x1xf32>
    %215 = vector.broadcast %214 : vector<96x1xf32> to vector<96x32xf32>
    %216 = arith.subf %210, %215 : vector<96x32xf32>
    %217 = arith.mulf %216, %216 : vector<96x32xf32>
    %cst_66 = arith.constant dense<0.000000e+00> : vector<96xf32>
    %218 = vector.multi_reduction <add>, %217, %cst_66 [1] : vector<96x32xf32> to vector<96xf32>
    %219 = vector.shape_cast %218 : vector<96xf32> to vector<96x1xf32>
    %cst_67 = arith.constant 3.200000e+01 : f32
    %220 = vector.broadcast %cst_67 : f32 to vector<96x1xf32>
    %221 = arith.divf %219, %220 : vector<96x1xf32>
    %cst_68 = arith.constant 9.99999974E-6 : f32
    %222 = vector.broadcast %cst_68 : f32 to vector<96x1xf32>
    %223 = arith.addf %221, %222 : vector<96x1xf32>
    %224 = math.rsqrt %223 : vector<96x1xf32>
    %225 = vector.broadcast %224 : vector<96x1xf32> to vector<96x32xf32>
    %226 = arith.mulf %216, %225 : vector<96x32xf32>
    %227 = vector.broadcast %150 : vector<1x32xf32> to vector<96x32xf32>
    %228 = arith.mulf %226, %227 : vector<96x32xf32>
    %229 = vector.broadcast %151 : vector<1x32xf32> to vector<96x32xf32>
    %230 = arith.addf %228, %229 : vector<96x32xf32>
    %231 = arith.truncf %230 : vector<96x32xf32> to vector<96x32xbf16>
    %cst_69 = arith.constant dense<0.000000e+00> : vector<96x64xf32>
    %232 = tpu.matmul %231, %159, %cst_69 {dimension_numbers = #tpu.dot_dimension_numbers<[1], [0], [0], [1], [0, 0, 1, 1], [], []>} : vector<96x32xbf16>, vector<32x64xbf16>, vector<96x64xf32> -> vector<96x64xf32>
    %233 = vector.broadcast %148 : vector<1x64xf32> to vector<96x64xf32>
    %234 = arith.addf %232, %233 : vector<96x64xf32>
    %cst_70 = arith.constant 0.000000e+00 : f32
    %235 = vector.broadcast %cst_70 : f32 to vector<96x64xf32>
    %236 = arith.maximumf %234, %235 : vector<96x64xf32>
    %237 = arith.truncf %236 : vector<96x64xf32> to vector<96x64xbf16>
    %cst_71 = arith.constant dense<0.000000e+00> : vector<96x32xf32>
    %238 = tpu.matmul %237, %161, %cst_71 {dimension_numbers = #tpu.dot_dimension_numbers<[1], [0], [0], [1], [0, 0, 1, 1], [], []>} : vector<96x64xbf16>, vector<64x32xbf16>, vector<96x32xf32> -> vector<96x32xf32>
    %239 = vector.broadcast %149 : vector<1x32xf32> to vector<96x32xf32>
    %240 = arith.addf %238, %239 : vector<96x32xf32>
    %241 = arith.addf %230, %240 : vector<96x32xf32>
    %cst_72 = arith.constant dense<0.000000e+00> : vector<96xf32>
    %242 = vector.multi_reduction <add>, %241, %cst_72 [1] : vector<96x32xf32> to vector<96xf32>
    %243 = vector.shape_cast %242 : vector<96xf32> to vector<96x1xf32>
    %cst_73 = arith.constant 3.200000e+01 : f32
    %244 = vector.broadcast %cst_73 : f32 to vector<96x1xf32>
    %245 = arith.divf %243, %244 : vector<96x1xf32>
    %246 = vector.broadcast %245 : vector<96x1xf32> to vector<96x32xf32>
    %247 = arith.subf %241, %246 : vector<96x32xf32>
    %248 = arith.mulf %247, %247 : vector<96x32xf32>
    %cst_74 = arith.constant dense<0.000000e+00> : vector<96xf32>
    %249 = vector.multi_reduction <add>, %248, %cst_74 [1] : vector<96x32xf32> to vector<96xf32>
    %250 = vector.shape_cast %249 : vector<96xf32> to vector<96x1xf32>
    %cst_75 = arith.constant 3.200000e+01 : f32
    %251 = vector.broadcast %cst_75 : f32 to vector<96x1xf32>
    %252 = arith.divf %250, %251 : vector<96x1xf32>
    %cst_76 = arith.constant 9.99999974E-6 : f32
    %253 = vector.broadcast %cst_76 : f32 to vector<96x1xf32>
    %254 = arith.addf %252, %253 : vector<96x1xf32>
    %255 = math.rsqrt %254 : vector<96x1xf32>
    %256 = vector.broadcast %255 : vector<96x1xf32> to vector<96x32xf32>
    %257 = arith.mulf %247, %256 : vector<96x32xf32>
    %258 = vector.broadcast %152 : vector<1x32xf32> to vector<96x32xf32>
    %259 = arith.mulf %257, %258 : vector<96x32xf32>
    %260 = vector.broadcast %153 : vector<1x32xf32> to vector<96x32xf32>
    %261 = arith.addf %259, %260 : vector<96x32xf32>
    %262 = vector.shape_cast %261 : vector<96x32xf32> to vector<4x24x32xf32>
    %263 = vector.extract_strided_slice %262 {offsets = [0, 0, 0], sizes = [4, 1, 32], strides = [1, 1, 1]} : vector<4x24x32xf32> to vector<4x1x32xf32>
    %264 = vector.shape_cast %263 : vector<4x1x32xf32> to vector<4x32xf32>
    %cst_77 = arith.constant dense<0.000000e+00> : vector<4xf32>
    %265 = vector.multi_reduction <add>, %264, %cst_77 [1] : vector<4x32xf32> to vector<4xf32>
    %266 = vector.shape_cast %265 : vector<4xf32> to vector<4x1xf32>
    %cst_78 = arith.constant 3.200000e+01 : f32
    %267 = vector.broadcast %cst_78 : f32 to vector<4x1xf32>
    %268 = arith.divf %266, %267 : vector<4x1xf32>
    %269 = vector.broadcast %268 : vector<4x1xf32> to vector<4x32xf32>
    %270 = arith.subf %264, %269 : vector<4x32xf32>
    %271 = arith.mulf %270, %270 : vector<4x32xf32>
    %cst_79 = arith.constant dense<0.000000e+00> : vector<4xf32>
    %272 = vector.multi_reduction <add>, %271, %cst_79 [1] : vector<4x32xf32> to vector<4xf32>
    %273 = vector.shape_cast %272 : vector<4xf32> to vector<4x1xf32>
    %cst_80 = arith.constant 3.200000e+01 : f32
    %274 = vector.broadcast %cst_80 : f32 to vector<4x1xf32>
    %275 = arith.divf %273, %274 : vector<4x1xf32>
    %cst_81 = arith.constant 9.99999974E-6 : f32
    %276 = vector.broadcast %cst_81 : f32 to vector<4x1xf32>
    %277 = arith.addf %275, %276 : vector<4x1xf32>
    %278 = math.rsqrt %277 : vector<4x1xf32>
    %279 = vector.broadcast %278 : vector<4x1xf32> to vector<4x32xf32>
    %280 = arith.mulf %270, %279 : vector<4x32xf32>
    %281 = vector.broadcast %2 : vector<1x32xf32> to vector<4x32xf32>
    %282 = arith.mulf %280, %281 : vector<4x32xf32>
    %283 = vector.broadcast %3 : vector<1x32xf32> to vector<4x32xf32>
    %284 = arith.addf %282, %283 : vector<4x32xf32>
    %cst_82 = arith.constant 0.000000e+00 : f32
    %285 = vector.broadcast %cst_82 : f32 to vector<4x96xf32>
    %286 = tpu.concatenate %284, %285 in 1 : vector<4x32xf32>, vector<4x96xf32> -> vector<4x128xf32>
    %c0_83 = arith.constant 0 : index
    %c0_84 = arith.constant 0 : index
    %287 = vector.load %arg8[%c0_83, %c0_84] : memref<4x128xf32, #tpu.memory_space<vmem>>, vector<4x128xf32>
    tpu.vector_store %arg8[%c0_83, %c0_84], %286 {strides = array<i32>} : memref<4x128xf32, #tpu.memory_space<vmem>>, vector<4x128xf32>,
    return
  }
}

</mosaic_0001>

<bundles_post_ra>
// kernel: spatial_transformer_forward.1
= control target key start
LH: loop header
LB: loop body
LE: loop exit
PB: predicated region body
PF: predicated region fallthrough
CT: control target
= control target key end

     0   :  { %vm128_vm0 = vcmask 785408   ;;  %s10770_s0 = inlined_call_operand.vmem [shape: bf16[96,96], index: 0, kind: input, shape index: {}]   ;;  %s10771_s1 = inlined_call_operand.vmem [shape: f32[1,24,32], index: 1, kind: input, shape index: {}]   ;;  %s10772_s2 = inlined_call_operand.vmem [shape: f32[20,128], index: 2, kind: input, shape index: {}]   ;;  %s10773_s3 = inlined_call_operand.vmem [shape: bf16[96,32], index: 3, kind: input, shape index: {}]   ;;  %s10774_s4 = inlined_call_operand.vmem [shape: bf16[2,32,96], index: 4, kind: input, shape index: {}]   ;;  %s10775_s5 = inlined_call_operand.vmem [shape: bf16[2,32,32], index: 5, kind: input, shape index: {}]   ;;  %s10776_s6 = inlined_call_operand.vmem [shape: bf16[2,32,64], index: 6, kind: input, shape index: {}]   ;;  %s10777_s7 = inlined_call_operand.vmem [shape: bf16[2,64,32], index: 7, kind: input, shape index: {}]   ;;  %s10778_s8 = inlined_call_operand.hbm [shape: f32[4,128], index: 8, kind: output, shape index: {}]  }
   0x1   :  { %v7534_v0 = vld [vmem:[%s10773_s3 + $0x28] sm:$0xff]   ;;  %v7535_v1 = vld [vmem:[%s10773_s3 + $0x20] sm:$0xff]   ;;  %v7536_v2 = vld [vmem:[%s10773_s3 + $0x18] sm:$0xff]  }
   0x2   :  { %6908 = vmatprep.subr.bf16.mxu0 %v7534_v0  ;;  %v7540_v3 = vld [vmem:[%s10770_s0] sm:$0xff]   ;;  %v7537_v4 = vld [vmem:[%s10773_s3 + $0x10] sm:$0xff]   ;;  %v7538_v5 = vld [vmem:[%s10773_s3 + $0x8] sm:$0xff]  }
   0x3   :  { %6909 = vmatpush3.bf16.msra.mxu0 %v7534_v0  ;;  %6920 = vmatprep.mubr.msk.bf16.mxu0 %vm128_vm0, %v7540_v3  ;;  %v7539_v6 = vld [vmem:[%s10773_s3] sm:$0xff]   ;;  %v7541_v7 = vld [vmem:[%s10770_s0 + $0x8] sm:$0xff]   ;;  %v7542_v8 = vld [vmem:[%s10770_s0 + $0x10] sm:$0xff]  }
   0x4   :  { %6910 = vmatprep.subr.bf16.mxu0 %v7535_v1 }
   0x7   :  { %6911 = vmatpush3.bf16.msra.mxu0 %v7535_v1 }
   0x8   :  { %6912 = vmatprep.subr.bf16.mxu0 %v7536_v2 }
   0xb   :  { %6913 = vmatpush3.bf16.msra.mxu0 %v7536_v2 }
   0xc   :  { %6914 = vmatprep.subr.bf16.mxu0 %v7537_v4 }
   0xf   :  { %6915 = vmatpush3.bf16.msra.mxu0 %v7537_v4 }
  0x10   :  { %6916 = vmatprep.subr.bf16.mxu0 %v7538_v5 }
  0x13   :  { %6917 = vmatpush3.bf16.msra.mxu0 %v7538_v5 }
  0x14   :  { %6918 = vmatprep.subr.bf16.mxu0 %v7539_v6 }
  0x17   :  { %6919 = vmatpush3.bf16.msra.mxu0 %v7539_v6 }
  0x18   :  { %13 = vsyncpa [#allocation3], 0  ;;  %v7543_v9 = vld [vmem:[%s10770_s0 + $0x18] sm:$0xff]   ;;  %v7544_v10 = vld [vmem:[%s10770_s0 + $0x20] sm:$0xff]   ;;  %v58_v14 = vlaneseq  ;;  %vm318_vm2 = vcmask 261120   ;;  %vm432_vm3 = vcmask 64512  }
  0x19   :  { %v7545_v11 = vld [vmem:[%s10770_s0 + $0x28] sm:$0xff]   ;;  %v7547_v13 = vld [vmem:[%s10774_s4] sm:$0xff]   ;;  %v259_v31 = vld [vmem:[%s10771_s1 + $0x10] sm:$0xff]  ;;  %s8058_s17 = smov 88   ;;  %s8059_s18 = smov 120   ;;  %vm2131_vm4 = vcmask 1043456  }
  0x1a   :  { %6921 = vmatmul.mubr.msk.bf16.vlgmr.msra.gmra.mxu0 %vm128_vm0, %v7541_v7  ;;  %v7546_v12 = vld [vmem:[%s10774_s4 + $0x8] sm:$0xff]   ;;  %v8161_v15 = vshrl.u32 %v58_v14, 7  ;;  %v31_v17 = vld [vmem:[%s10772_s2] sm:$0xff]  ;;  %s8060_s19 = smov 80   ;;  %s8061_s20 = smov 112   ;;  %vm1555_vm6 = vcmask 195584  }
  0x1b   :  { %6924 = vmatprep.mubr.msk.bf16.mxu0 %vm128_vm0, %v7542_v8  ;;  %6932 = vmatprep.subr.bf16.mxu1 %v7546_v12  ;;  %v257_v27 = vld [vmem:[%s10771_s1] sm:$0xff]  ;;  %v258_v29 = vld [vmem:[%s10771_s1 + $0x8] sm:$0xff]  ;;  %s8057_s1 = smov 96   ;;  %s8062_s21 = smov 72   ;;  %vm2549_vm7 = vcmask 130048   ;;  %vm3063_vm8 = vcmask 523264  }
  0x1c   :  { %6933 = vmatpush3.bf16.msra.mxu1 %v7546_v12  ;;  %10830 = vst [vmem:[#allocation5_spill] sm:$0xff] %v8161_v15  ;;  %v8164_v16 = vsub.s32 0, %v8161_v15  ;;  %v8170_v18 = vsub.s32 3, %v8161_v15  ;;  %vm232_vm1 = vcmp.eq.s32.totalorder %v8161_v15, 0  ;;  %v10779_v6 = vsub.s32 4, %v8161_v15  ;;  %s8063_s22 = smov 104  }
  0x1d   :  { %6934 = vmatprep.subr.bf16.mxu1 %v7547_v13  ;;  %s8064_s23 = smov 64   ;;  %vm6316_vm9 = vcmask 1041409   ;;  %vm6319_vm10 = vcmask 1042434   ;;  %vm6322_vm11 = vcmask 1043459   ;;  %vm6325_vm12 = vcmask 257024  }
  0x1e   :  { %10831 = vst [vmem:[#allocation6_spill] sm:$0xff] %v8164_v16  ;;  %10832 = vst [vmem:[#allocation7_spill] sm:$0xff] %v8170_v18  ;;  %v61_v20 = vrot.slane %v31_v17, %v8164_v16  ;;  %v244_v22 = vrot.slane %v31_v17, %v8170_v18  ;;  %v305_v7 = vrot.slane %v31_v17, %v10779_v6 }
  0x20   :  { %6935 = vmatpush3.bf16.msra.mxu1 %v7547_v13 }
  0x22   :  { %6925 = vmatmul.mubr.msk.bf16.gmra.mxu0 %vm128_vm0, %v7543_v9 }
  0x23   :  { %6928 = vmatprep.mubr.msk.bf16.mxu0 %vm128_vm0, %v7544_v10 }
  0x2a   :  { %6929 = vmatmul.mubr.msk.bf16.gmra.mxu0 %vm128_vm0, %v7545_v11 }
  0xda   :  { %v6922_v19 = vpop.f32.mrf.mxu0 }
  0xdb   :  { %v190_v26 = vadd.f32 %v6922_v19, %v61_v20 }
  0xdc   :  { %v181_v21 = vpop.f32.mrf.mxu0 }
  0xdd   :  { %v182_v23 = vadd.f32 %v181_v21, %v61_v20  ;;  %v8194_v38 = vadd.f32 %v259_v31, %v190_v26 }
  0xde   :  { %v6923_v24 = vpop.f32.mrf.mxu0 }
  0xdf   :  { %v193_v25 = vadd.f32 %v6923_v24, %v61_v20  ;;  %v245_v30 = vsel %vm232_vm1, %v244_v22, %v182_v23  ;;  %10836 = vst [vmem:[#allocation11_spill] sm:$0xff] %v8194_v38 }
  0xe0   :  { %v184_v28 = vpop.f32.mrf.mxu0  ;;  %v8190_v36 = vadd.f32 %v257_v27, %v245_v30 }
  0xe1   :  { %v248_v32 = vsel %vm232_vm1, %v244_v22, %v193_v25  ;;  %v185_v33 = vadd.f32 %v184_v28, %v61_v20 }
  0xe2   :  { %v8188_v34 = vadd.f32 %v257_v27, %v248_v32  ;;  %v6926_v35 = vpop.f32.mrf.mxu0  ;;  %10834 = vst [vmem:[#allocation9_spill] sm:$0xff] %v8190_v36 }
  0xe3   :  { %v8192_v37 = vadd.f32 %v258_v29, %v185_v33  ;;  %v206_v40 = vadd.f32 %v6926_v35, %v61_v20 }
  0xe4   :  { %10833 = vst [vmem:[#allocation8_spill] sm:$0xff] %v8188_v34  ;;  %v197_v39 = vpop.f32.mrf.mxu0  ;;  %v297_v43 = vpack.c.bf16 %v8188_v34, %v8194_v38 }
  0xe5   :  { %10835 = vst [vmem:[#allocation10_spill] sm:$0xff] %v8192_v37  ;;  %v296_v41 = vpack.c.bf16 %v8192_v37, %v8190_v36  ;;  %v198_v44 = vadd.f32 %v197_v39, %v61_v20  ;;  %v251_v47 = vsel %vm232_vm1, %v244_v22, %v206_v40 }
  0xe6   :  { %v6927_v42 = vpop.f32.mrf.mxu0  ;;  %v8210_v53 = vadd.f32 %v257_v27, %v251_v47 }
  0xe7   :  { %v209_v45 = vadd.f32 %v6927_v42, %v61_v20  ;;  %6936 = vmatprep.mubr.msk.bf16.mxu1 %vm318_vm2, %v296_v41  ;;  %v8206_v51 = vadd.f32 %v258_v29, %v198_v44 }
  0xe8   :  { %v200_v46 = vpop.f32.mrf.mxu0  ;;  %6937 = vmatmul.mubr.msk.bf16.vlgmr.msra.gmra.mxu1 %vm318_vm2, %v297_v43  ;;  %10840 = vst [vmem:[#allocation15_spill] sm:$0xff] %v8210_v53 }
  0xe9   :  { %v201_v48 = vadd.f32 %v200_v46, %v61_v20  ;;  %v8204_v49 = vadd.f32 %v258_v29, %v209_v45  ;;  %10838 = vst [vmem:[#allocation13_spill] sm:$0xff] %v8206_v51 }
  0xea   :  { %v6930_v50 = vpop.f32.mrf.mxu0 }
  0xeb   :  { %10837 = vst [vmem:[#allocation12_spill] sm:$0xff] %v8204_v49  ;;  %v8208_v52 = vadd.f32 %v259_v31, %v201_v48  ;;  %v222_v56 = vadd.f32 %v6930_v50, %v61_v20  ;;  %v299_v57 = vpack.c.bf16 %v8204_v49, %v8210_v53 }
  0xec   :  { %v213_v54 = vpop.f32.mrf.mxu0 }
  0xed   :  { %10839 = vst [vmem:[#allocation14_spill] sm:$0xff] %v8208_v52  ;;  %v298_v55 = vpack.c.bf16 %v8208_v52, %v8206_v51  ;;  %v214_v58 = vadd.f32 %v213_v54, %v61_v20  ;;  %v8218_v62 = vadd.f32 %v258_v29, %v222_v56 }
  0xee   :  { %v6931_v59 = vpop.f32.mrf.mxu0 }
  0xef   :  { %v225_v60 = vadd.f32 %v6931_v59, %v61_v20  ;;  %6940 = vmatprep.mubr.msk.bf16.mxu1 %vm318_vm2, %v298_v55  ;;  %10841 = vst [vmem:[#allocation16_spill] sm:$0xff] %v8218_v62  ;;  %v8222_v1 = vadd.f32 %v259_v31, %v214_v58 }
  0xf0   :  { %v216_v61 = vpop.f32.mrf.mxu0  ;;  %6941 = vmatmul.mubr.msk.bf16.gmra.mxu1 %vm318_vm2, %v299_v57 }
  0xf1   :  { %v8220_v63 = vadd.f32 %v259_v31, %v225_v60  ;;  %v217_v0 = vadd.f32 %v216_v61, %v61_v20  ;;  %10843 = vst [vmem:[#allocation18_spill] sm:$0xff] %v8222_v1 }
  0xf3   :  { %10842 = vst [vmem:[#allocation17_spill] sm:$0xff] %v8220_v63  ;;  %v254_v2 = vsel %vm232_vm1, %v244_v22, %v217_v0  ;;  %v301_v4 = vpack.c.bf16 %v8220_v63, %v8218_v62 }
  0xf4   :  { %v8226_v3 = vadd.f32 %v257_v27, %v254_v2 }
  0xf6   :  { %10844 = vst [vmem:[#allocation19_spill] sm:$0xff] %v8226_v3  ;;  %v300_v5 = vpack.c.bf16 %v8226_v3, %v8222_v1 }
  0xf8   :  { %6944 = vmatprep.mubr.msk.bf16.mxu1 %vm318_vm2, %v300_v5 }
  0xf9   :  { %6945 = vmatmul.mubr.msk.bf16.gmra.mxu1 %vm318_vm2, %v301_v4 }
 0x1a8   :  { %v6938_v8 = vpop.f32.mrf.mxu1 }
 0x1a9   :  { %v380_v9 = vadd.f32 %v6938_v8, %v305_v7 }
 0x1aa   :  { %v371_v10 = vpop.f32.mrf.mxu1 }
 0x1ab   :  { %v8237_v11 = vpack.c.bf16 %v380_v9, %v380_v9  ;;  %v372_v19 = vadd.f32 %v371_v10, %v305_v7 }
 0x1ac   :  { %v6939_v12 = vpop.f32.mrf.mxu1 }
 0x1ad   :  { %430 = vrot.lane.b32.xlu0 %v8237_v11, %s8057_s1  ;;  %v383_v24 = vadd.f32 %v6939_v12, %v305_v7 }
 0x1ae   :  { %v374_v13 = vpop.f32.mrf.mxu1 }
 0x1af   :  { %v375_v20 = vadd.f32 %v374_v13, %v305_v7 }
 0x1b0   :  { %v6942_v21 = vpop.f32.mrf.mxu1 }
 0x1b1   :  { %v8241_v22 = vpack.c.bf16 %v375_v20, %v372_v19  ;;  %v396_v42 = vadd.f32 %v6942_v21, %v305_v7 }
 0x1b2   :  { %v387_v23 = vpop.f32.mrf.mxu1 }
 0x1b3   :  { %v388_v17 = vadd.f32 %v387_v23, %v305_v7  ;;  %428 = vrot.lane.b32.xlu0 %v8241_v22, %s8057_s1  ;;  %6952 = vmatprep.mubr.msk.bf16.mxu1 %vm432_vm3, %v8241_v22 }
 0x1b4   :  { %v6943_v25 = vpop.f32.mrf.mxu1 }
 0x1b5   :  { %v8247_v26 = vpack.c.bf16 %v388_v17, %v383_v24  ;;  %v399_v35 = vadd.f32 %v6943_v25, %v305_v7 }
 0x1b6   :  { %v390_v27 = vpop.f32.mrf.mxu1 }
 0x1b7   :  { %v391_v28 = vadd.f32 %v390_v27, %v305_v7  ;;  %6960 = vmatprep.mubr.msk.bf16.mxu0 %vm432_vm3, %v8247_v26  ;;  %495 = vrot.lane.b32.xlu0 %v8247_v26, %s8057_s1  ;;  %v8263_v45 = vpack.c.bf16 %v399_v35, %v396_v42 }
 0x1b9   :  { %v8253_v29 = vpack.c.bf16 %v391_v28, %v391_v28  ;;  %v6946_v30 = vpop.f32.mrf.mxu1 }
 0x1ba   :  { %v412_v46 = vadd.f32 %v6946_v30, %v305_v7 }
 0x1bb   :  { %v403_v31 = vpop.f32.mrf.mxu1  ;;  %497 = vrot.lane.b32.xlu1 %v8253_v29, %s8057_s1 }
 0x1bc   :  { %v404_v32 = vadd.f32 %v403_v31, %v305_v7 }
 0x1bd   :  { %v6947_v33 = vpop.f32.mrf.mxu1 }
 0x1be   :  { %v8257_v39 = vpack.c.bf16 %v404_v32, %v404_v32  ;;  %v415_v40 = vadd.f32 %v6947_v33, %v305_v7 }
 0x1bf   :  { %v406_v41 = vpop.f32.mrf.mxu1 }
 0x1c0   :  { %v8259_v43 = vpack.c.bf16 %v415_v40, %v415_v40  ;;  %v407_v44 = vadd.f32 %v406_v41, %v305_v7  ;;  %563 = vrot.lane.b32.xlu1 %v8257_v39, %s8057_s1 }
 0x1c2   :  { %629 = vrot.lane.b32.xlu0 %v8259_v43, %s8057_s1  ;;  %v8267_v47 = vpack.c.bf16 %v412_v46, %v407_v44 }
 0x1c4   :  { %561 = vrot.lane.b32.xlu1 %v8263_v45, %s8057_s1 }
 0x1c6   :  { %627 = vrot.lane.b32.xlu0 %v8267_v47, %s8057_s1 }
 0x1c8   :  { %697 = vrot.lane.b32.xlu1 %v8237_v11, %s8058_s17 }
 0x1ca   :  { %765 = vrot.lane.b32.xlu0 %v8253_v29, %s8058_s17 }
 0x1cc   :  { %695 = vrot.lane.b32.xlu1 %v8241_v22, %s8058_s17 }
 0x1ce   :  { %833 = vrot.lane.b32.xlu0 %v8257_v39, %s8058_s17 }
 0x1d0   :  { %691 = vrot.lane.b32.xlu1 %v8241_v22, %s8059_s18 }
 0x1d2   :  { %763 = vrot.lane.b32.xlu0 %v8247_v26, %s8058_s17 }
 0x1d4   :  { %693 = vrot.lane.b32.xlu1 %v8237_v11, %s8059_s18 }
 0x1d6   :  { %759 = vrot.lane.b32.xlu0 %v8247_v26, %s8059_s18 }
 0x1d8   :  { %831 = vrot.lane.b32.xlu1 %v8263_v45, %s8058_s17 }
 0x1da   :  { %761 = vrot.lane.b32.xlu0 %v8253_v29, %s8059_s18 }
 0x1dc   :  { %901 = vrot.lane.b32.xlu1 %v8259_v43, %s8058_s17 }
 0x1de   :  { %969 = vrot.lane.b32.xlu0 %v8237_v11, %s8060_s19 }
 0x1e0   :  { %827 = vrot.lane.b32.xlu1 %v8263_v45, %s8059_s18 }
 0x1e2   :  { %899 = vrot.lane.b32.xlu0 %v8267_v47, %s8058_s17 }
 0x1e4   :  { %829 = vrot.lane.b32.xlu1 %v8257_v39, %s8059_s18 }
 0x1e6   :  { %897 = vrot.lane.b32.xlu0 %v8259_v43, %s8059_s18 }
 0x1e8   :  { %967 = vrot.lane.b32.xlu1 %v8241_v22, %s8060_s19 }
 0x1ea   :  { %895 = vrot.lane.b32.xlu0 %v8267_v47, %s8059_s18 }
 0x1ec   :  { %1037 = vrot.lane.b32.xlu1 %v8253_v29, %s8060_s19 }
 0x1ee   :  { %1105 = vrot.lane.b32.xlu0 %v8257_v39, %s8060_s19 }
 0x1f0   :  { %963 = vrot.lane.b32.xlu1 %v8241_v22, %s8061_s20 }
 0x1f2   :  { %1035 = vrot.lane.b32.xlu0 %v8247_v26, %s8060_s19 }
 0x1f4   :  { %965 = vrot.lane.b32.xlu1 %v8237_v11, %s8061_s20 }
 0x1f6   :  { %1031 = vrot.lane.b32.xlu0 %v8247_v26, %s8061_s20 }
 0x1f8   :  { %1103 = vrot.lane.b32.xlu1 %v8263_v45, %s8060_s19 }
 0x1fa   :  { %1033 = vrot.lane.b32.xlu0 %v8253_v29, %s8061_s20 }
 0x1fc   :  { %1173 = vrot.lane.b32.xlu1 %v8259_v43, %s8060_s19 }
 0x1fe   :  { %1241 = vrot.lane.b32.xlu0 %v8237_v11, %s8062_s21 }
 0x200   :  { %1099 = vrot.lane.b32.xlu1 %v8263_v45, %s8061_s20 }
 0x202   :  { %1171 = vrot.lane.b32.xlu0 %v8267_v47, %s8060_s19 }
 0x204   :  { %1101 = vrot.lane.b32.xlu1 %v8257_v39, %s8061_s20 }
 0x206   :  { %1169 = vrot.lane.b32.xlu0 %v8259_v43, %s8061_s20 }
 0x208   :  { %1239 = vrot.lane.b32.xlu1 %v8241_v22, %s8062_s21 }
 0x20a   :  { %1167 = vrot.lane.b32.xlu0 %v8267_v47, %s8061_s20 }
 0x20c   :  { %1309 = vrot.lane.b32.xlu1 %v8253_v29, %s8062_s21 }
 0x20e   :  { %1237 = vrot.lane.b32.xlu0 %v8237_v11, %s8063_s22 }
 0x210   :  { %1235 = vrot.lane.b32.xlu1 %v8241_v22, %s8063_s22 }
 0x212   :  { %1377 = vrot.lane.b32.xlu0 %v8257_v39, %s8062_s21 }
 0x214   :  { %1307 = vrot.lane.b32.xlu1 %v8247_v26, %s8062_s21 }
 0x216   :  { %1305 = vrot.lane.b32.xlu0 %v8253_v29, %s8063_s22 }
 0x218   :  { %1303 = vrot.lane.b32.xlu1 %v8247_v26, %s8063_s22 }
 0x21a   :  { %1445 = vrot.lane.b32.xlu0 %v8259_v43, %s8062_s21 }
 0x21c   :  { %1375 = vrot.lane.b32.xlu1 %v8263_v45, %s8062_s21 }
 0x21e   :  { %1373 = vrot.lane.b32.xlu0 %v8257_v39, %s8063_s22 }
 0x21f   :  { %v431_v48 = vpop.permute.xlu0 %430 }
 0x220   :  { %7452 = vmatprep.subr.msk.bf16.mxu1 %vm432_vm3, %v431_v48  ;;  %1371 = vrot.lane.b32.xlu1 %v8263_v45, %s8063_s22  ;;  %v443_v50 = vsel %vm432_vm3, %v431_v48, 0 }
 0x221   :  { %6949 = vmatpush3.bf16.xpose.msra.mxu1 %v443_v50 }
 0x222   :  { %1439 = vrot.lane.b32.xlu0 %v8267_v47, %s8063_s22 }
 0x224   :  { %1443 = vrot.lane.b32.xlu1 %v8267_v47, %s8062_s21 }
 0x225   :  { %v429_v54 = vpop.permute.xlu0 %428 }
 0x226   :  { %2218 = vrot.lane.b32.xlu0 %v8253_v29, %s8064_s23  ;;  %7453 = vmatprep.subr.msk.bf16.mxu1 %vm432_vm3, %v429_v54  ;;  %v440_v55 = vsel %vm432_vm3, %v429_v54, 0 }
 0x228   :  { %1441 = vrot.lane.b32.xlu1 %v8259_v43, %s8063_s22 }
 0x229   :  { %6951 = vmatpush3.bf16.xpose.msra.mxu1 %v440_v55  ;;  %v496_v58 = vpop.permute.xlu0 %495 }
 0x22a   :  { %2325 = vrot.lane.b32.xlu0 %v8257_v39, %s8064_s23  ;;  %v506_v2 = vsel %vm432_vm3, %v496_v58, 0 }
 0x22c   :  { %2110 = vrot.lane.b32.xlu1 %v8237_v11, %s8064_s23 }
 0x22d   :  { %v498_v56 = vpop.permute.xlu1 %497 }
 0x22e   :  { %7454 = vmatprep.subr.msk.bf16.mxu0 %vm432_vm3, %v498_v56  ;;  %v509_v57 = vsel %vm432_vm3, %v498_v56, 0 }
 0x22f   :  { %6957 = vmatpush3.bf16.xpose.msra.mxu0 %v509_v57 }
 0x230   :  { %2108 = vrot.lane.b32.xlu1 %v8241_v22, %s8064_s23  ;;  %6953 = vmatmul.mubr.msk.bf16.vlgmr.msra.gmra.mxu1 %vm432_vm3, %v8237_v11 }
 0x231   :  { %7455 = vmatprep.subr.msk.bf16.mxu0 %vm432_vm3, %v496_v58  ;;  %6968 = vmatprep.mubr.msk.bf16.mxu1 %vm432_vm3, %v8263_v45 }
 0x232   :  { %v564_v59 = vpop.permute.xlu1 %563 }
 0x233   :  { %7456 = vmatprep.subr.msk.bf16.mxu1 %vm432_vm3, %v564_v59  ;;  %v575_v60 = vsel %vm432_vm3, %v564_v59, 0 }
 0x234   :  { %2216 = vrot.lane.b32.xlu1 %v8247_v26, %s8064_s23  ;;  %v630_v61 = vpop.permute.xlu0 %629  ;;  %6965 = vmatpush3.bf16.xpose.msra.mxu1 %v575_v60 }
 0x235   :  { %v641_v10 = vsel %vm432_vm3, %v630_v61, 0 }
 0x236   :  { %v562_v0 = vpop.permute.xlu1 %561 }
 0x237   :  { %6959 = vmatpush3.bf16.xpose.msra.mxu0 %v506_v2  ;;  %7457 = vmatprep.subr.msk.bf16.mxu1 %vm432_vm3, %v562_v0  ;;  %v572_v7 = vsel %vm432_vm3, %v562_v0, 0 }
 0x238   :  { %7458 = vmatprep.subr.msk.bf16.mxu0 %vm432_vm3, %v630_v61  ;;  %v628_v4 = vpop.permute.xlu0 %627 }
 0x239   :  { %v638_v21 = vsel %vm432_vm3, %v628_v4, 0 }
 0x23a   :  { %v698_v5 = vpop.permute.xlu1 %697 }
 0x23b   :  { %v709_v13 = vsel %vm432_vm3, %v698_v5, 0 }
 0x23c   :  { %v766_v8 = vpop.permute.xlu0 %765  ;;  %6967 = vmatpush3.bf16.xpose.msra.mxu1 %v572_v7 }
 0x23d   :  { %7460 = vmatprep.subr.msk.bf16.mxu1 %vm432_vm3, %v698_v5  ;;  %v777_v26 = vsel %vm432_vm3, %v766_v8, 0 }
 0x23e   :  { %v696_v9 = vpop.permute.xlu1 %695  ;;  %6961 = vmatmul.mubr.msk.bf16.vlgmr.msra.gmra.mxu0 %vm432_vm3, %v8253_v29 }
 0x23f   :  { %6973 = vmatpush3.bf16.xpose.msra.mxu0 %v641_v10  ;;  %6976 = vmatprep.mubr.msk.bf16.mxu0 %vm432_vm3, %v8267_v47  ;;  %v706_v24 = vsel %vm432_vm3, %v696_v9, 0 }
 0x240   :  { %7459 = vmatprep.subr.msk.bf16.mxu0 %vm432_vm3, %v628_v4  ;;  %v834_v11 = vpop.permute.xlu0 %833 }
 0x241   :  { %v845_v29 = vsel %vm432_vm3, %v834_v11, 0 }
 0x242   :  { %v692_v12 = vpop.permute.xlu1 %691 }
 0x243   :  { %6969 = vmatmul.mubr.msk.bf16.vlgmr.msra.gmra.mxu1 %vm432_vm3, %v8257_v39 }
 0x244   :  { %v764_v19 = vpop.permute.xlu0 %763  ;;  %6981 = vmatpush3.bf16.xpose.msra.mxu1 %v709_v13  ;;  %6984 = vmatprep.mubr.msk.bf16.mxu1 %vm432_vm3, %v692_v12 }
 0x245   :  { %7461 = vmatprep.subr.msk.bf16.mxu1 %vm432_vm3, %v696_v9  ;;  %v774_v32 = vsel %vm432_vm3, %v764_v19, 0 }
 0x246   :  { %v694_v20 = vpop.permute.xlu1 %693 }
 0x247   :  { %6975 = vmatpush3.bf16.xpose.msra.mxu0 %v638_v21 }
 0x248   :  { %7462 = vmatprep.subr.msk.bf16.mxu0 %vm432_vm3, %v766_v8  ;;  %v760_v22 = vpop.permute.xlu0 %759 }
 0x24a   :  { %v832_v23 = vpop.permute.xlu1 %831 }
 0x24b   :  { %v842_v39 = vsel %vm432_vm3, %v832_v23, 0 }
 0x24c   :  { %v762_v17 = vpop.permute.xlu0 %761  ;;  %6983 = vmatpush3.bf16.xpose.msra.mxu1 %v706_v24 }
 0x24d   :  { %7464 = vmatprep.subr.msk.bf16.mxu1 %vm432_vm3, %v834_v11 }
 0x24e   :  { %v902_v25 = vpop.permute.xlu1 %901  ;;  %6977 = vmatmul.mubr.msk.bf16.vlgmr.msra.gmra.mxu0 %vm432_vm3, %v8259_v43 }
 0x24f   :  { %6989 = vmatpush3.bf16.xpose.msra.mxu0 %v777_v26  ;;  %6992 = vmatprep.mubr.msk.bf16.mxu0 %vm432_vm3, %v760_v22  ;;  %v913_v42 = vsel %vm432_vm3, %v902_v25, 0 }
 0x250   :  { %7463 = vmatprep.subr.msk.bf16.mxu0 %vm432_vm3, %v764_v19  ;;  %v970_v27 = vpop.permute.xlu0 %969 }
 0x251   :  { %v981_v48 = vsel %vm432_vm3, %v970_v27, 0 }
 0x252   :  { %v828_v28 = vpop.permute.xlu1 %827 }
 0x253   :  { %6985 = vmatmul.mubr.msk.bf16.vlgmr.msra.gmra.mxu1 %vm432_vm3, %v694_v20 }
 0x254   :  { %v900_v30 = vpop.permute.xlu0 %899  ;;  %6997 = vmatpush3.bf16.xpose.msra.mxu1 %v845_v29  ;;  %7000 = vmatprep.mubr.msk.bf16.mxu1 %vm432_vm3, %v828_v28 }
 0x255   :  { %7465 = vmatprep.subr.msk.bf16.mxu1 %vm432_vm3, %v832_v23  ;;  %v910_v55 = vsel %vm432_vm3, %v900_v30, 0 }
 0x256   :  { %v830_v31 = vpop.permute.xlu1 %829 }
 0x257   :  { %6991 = vmatpush3.bf16.xpose.msra.mxu0 %v774_v32 }
 0x258   :  { %7466 = vmatprep.subr.msk.bf16.mxu0 %vm432_vm3, %v902_v25  ;;  %v898_v33 = vpop.permute.xlu0 %897 }
 0x25a   :  { %v968_v35 = vpop.permute.xlu1 %967 }
 0x25b   :  { %v978_v58 = vsel %vm432_vm3, %v968_v35, 0 }
 0x25c   :  { %v896_v40 = vpop.permute.xlu0 %895  ;;  %6999 = vmatpush3.bf16.xpose.msra.mxu1 %v842_v39 }
 0x25d   :  { %7468 = vmatprep.subr.msk.bf16.mxu1 %vm432_vm3, %v970_v27 }
 0x25e   :  { %v1038_v41 = vpop.permute.xlu1 %1037  ;;  %6993 = vmatmul.mubr.msk.bf16.vlgmr.msra.gmra.mxu0 %vm432_vm3, %v762_v17 }
 0x25f   :  { %7005 = vmatpush3.bf16.xpose.msra.mxu0 %v913_v42  ;;  %7008 = vmatprep.mubr.msk.bf16.mxu0 %vm432_vm3, %v896_v40  ;;  %v1049_v61 = vsel %vm432_vm3, %v1038_v41, 0 }
 0x260   :  { %7467 = vmatprep.subr.msk.bf16.mxu0 %vm432_vm3, %v900_v30  ;;  %v1106_v44 = vpop.permute.xlu0 %1105 }
 0x261   :  { %v1117_v4 = vsel %vm432_vm3, %v1106_v44, 0 }
 0x262   :  { %v964_v46 = vpop.permute.xlu1 %963 }
 0x263   :  { %7001 = vmatmul.mubr.msk.bf16.vlgmr.msra.gmra.mxu1 %vm432_vm3, %v830_v31 }
 0x264   :  { %v1036_v50 = vpop.permute.xlu0 %1035  ;;  %7013 = vmatpush3.bf16.xpose.msra.mxu1 %v981_v48  ;;  %7016 = vmatprep.mubr.msk.bf16.mxu1 %vm432_vm3, %v964_v46 }
 0x265   :  { %7469 = vmatprep.subr.msk.bf16.mxu1 %vm432_vm3, %v968_v35  ;;  %v1046_v8 = vsel %vm432_vm3, %v1036_v50, 0 }
 0x266   :  { %v966_v54 = vpop.permute.xlu1 %965 }
 0x267   :  { %7007 = vmatpush3.bf16.xpose.msra.mxu0 %v910_v55 }
 0x268   :  { %7470 = vmatprep.subr.msk.bf16.mxu0 %vm432_vm3, %v1038_v41  ;;  %v1032_v56 = vpop.permute.xlu0 %1031 }
 0x26a   :  { %v1104_v57 = vpop.permute.xlu1 %1103 }
 0x26b   :  { %v1114_v11 = vsel %vm432_vm3, %v1104_v57, 0 }
 0x26c   :  { %v1034_v59 = vpop.permute.xlu0 %1033  ;;  %7015 = vmatpush3.bf16.xpose.msra.mxu1 %v978_v58 }
 0x26d   :  { %7472 = vmatprep.subr.msk.bf16.mxu1 %vm432_vm3, %v1106_v44 }
 0x26e   :  { %v1174_v60 = vpop.permute.xlu1 %1173  ;;  %7009 = vmatmul.mubr.msk.bf16.vlgmr.msra.gmra.mxu0 %vm432_vm3, %v898_v33 }
 0x26f   :  { %7021 = vmatpush3.bf16.xpose.msra.mxu0 %v1049_v61  ;;  %7024 = vmatprep.mubr.msk.bf16.mxu0 %vm432_vm3, %v1032_v56  ;;  %v1185_v19 = vsel %vm432_vm3, %v1174_v60, 0 }
 0x270   :  { %7471 = vmatprep.subr.msk.bf16.mxu0 %vm432_vm3, %v1036_v50  ;;  %v1242_v0 = vpop.permute.xlu0 %1241 }
 0x271   :  { %v1253_v22 = vsel %vm432_vm3, %v1242_v0, 0 }
 0x272   :  { %v1100_v2 = vpop.permute.xlu1 %1099 }
 0x273   :  { %7017 = vmatmul.mubr.msk.bf16.vlgmr.msra.gmra.mxu1 %vm432_vm3, %v966_v54 }
 0x274   :  { %v1172_v5 = vpop.permute.xlu0 %1171  ;;  %7029 = vmatpush3.bf16.xpose.msra.mxu1 %v1117_v4  ;;  %7032 = vmatprep.mubr.msk.bf16.mxu1 %vm432_vm3, %v1100_v2 }
 0x275   :  { %7473 = vmatprep.subr.msk.bf16.mxu1 %vm432_vm3, %v1104_v57  ;;  %v1182_v17 = vsel %vm432_vm3, %v1172_v5, 0 }
 0x276   :  { %v1102_v7 = vpop.permute.xlu1 %1101 }
 0x277   :  { %7023 = vmatpush3.bf16.xpose.msra.mxu0 %v1046_v8 }
 0x278   :  { %7474 = vmatprep.subr.msk.bf16.mxu0 %vm432_vm3, %v1174_v60  ;;  %v1170_v9 = vpop.permute.xlu0 %1169  ;;  %v8065_v60 = vmov 0.0  }
 0x27a   :  { %v1240_v10 = vpop.permute.xlu1 %1239 }
 0x27b   :  { %v1250_v27 = vsel %vm432_vm3, %v1240_v10, 0 }
 0x27c   :  { %v1168_v12 = vpop.permute.xlu0 %1167  ;;  %7031 = vmatpush3.bf16.xpose.msra.mxu1 %v1114_v11 }
 0x27d   :  { %7476 = vmatprep.subr.msk.bf16.mxu1 %vm432_vm3, %v1242_v0 }
 0x27e   :  { %v1310_v13 = vpop.permute.xlu1 %1309  ;;  %7025 = vmatmul.mubr.msk.bf16.vlgmr.msra.gmra.mxu0 %vm432_vm3, %v1034_v59  ;;  %v273_v59 = vand.u32 127, %v58_v14 }
 0x27f   :  { %7037 = vmatpush3.bf16.xpose.msra.mxu0 %v1185_v19  ;;  %7040 = vmatprep.mubr.msk.bf16.mxu0 %vm432_vm3, %v1168_v12  ;;  %v1321_v29 = vsel %vm432_vm3, %v1310_v13, 0 }
 0x280   :  { %7475 = vmatprep.subr.msk.bf16.mxu0 %vm432_vm3, %v1172_v5  ;;  %v1238_v20 = vpop.permute.xlu0 %1237  ;;  %vm274_vm5 = vcmp.ge.s32.totalorder %v273_v59, 17 }
 0x281   :  { %v8488_v61 = vsel %vm274_vm5, -1e+09, %v8065_v60 }
 0x282   :  { %v1236_v21 = vpop.permute.xlu1 %1235  ;;  %10846 = vst [vmem:[#allocation21_spill] sm:$0xff] %v8488_v61 }
 0x283   :  { %7033 = vmatmul.mubr.msk.bf16.vlgmr.msra.gmra.mxu1 %vm432_vm3, %v1102_v7 }
 0x284   :  { %v1378_v23 = vpop.permute.xlu0 %1377  ;;  %7045 = vmatpush3.bf16.xpose.msra.mxu1 %v1253_v22  ;;  %7048 = vmatprep.mubr.msk.bf16.mxu1 %vm432_vm3, %v1236_v21 }
 0x285   :  { %7477 = vmatprep.subr.msk.bf16.mxu1 %vm432_vm3, %v1240_v10  ;;  %v1389_v32 = vsel %vm432_vm3, %v1378_v23, 0 }
 0x286   :  { %v1308_v24 = vpop.permute.xlu1 %1307 }
 0x287   :  { %7039 = vmatpush3.bf16.xpose.msra.mxu0 %v1182_v17  ;;  %v1318_v39 = vsel %vm432_vm3, %v1308_v24, 0 }
 0x288   :  { %7478 = vmatprep.subr.msk.bf16.mxu0 %vm432_vm3, %v1310_v13  ;;  %v1306_v25 = vpop.permute.xlu0 %1305 }
 0x28a   :  { %v1304_v26 = vpop.permute.xlu1 %1303 }
 0x28c   :  { %7047 = vmatpush3.bf16.xpose.msra.mxu1 %v1250_v27  ;;  %v1446_v30 = vpop.permute.xlu0 %1445 }
 0x28d   :  { %7480 = vmatprep.subr.msk.bf16.mxu1 %vm432_vm3, %v1378_v23  ;;  %v1457_v46 = vsel %vm432_vm3, %v1446_v30, 0 }
 0x28e   :  { %v1376_v28 = vpop.permute.xlu1 %1375  ;;  %7041 = vmatmul.mubr.msk.bf16.vlgmr.msra.gmra.mxu0 %vm432_vm3, %v1170_v9 }
 0x28f   :  { %7053 = vmatpush3.bf16.xpose.msra.mxu0 %v1321_v29  ;;  %7056 = vmatprep.mubr.msk.bf16.mxu0 %vm432_vm3, %v1304_v26  ;;  %v1386_v41 = vsel %vm432_vm3, %v1376_v28, 0 }
 0x290   :  { %7479 = vmatprep.subr.msk.bf16.mxu0 %vm432_vm3, %v1308_v24  ;;  %v1374_v33 = vpop.permute.xlu0 %1373 }
 0x292   :  { %v1372_v31 = vpop.permute.xlu1 %1371 }
 0x293   :  { %7049 = vmatmul.mubr.msk.bf16.vlgmr.msra.gmra.mxu1 %vm432_vm3, %v1238_v20 }
 0x294   :  { %7061 = vmatpush3.bf16.xpose.msra.mxu1 %v1389_v32  ;;  %7064 = vmatprep.mubr.msk.bf16.mxu1 %vm432_vm3, %v1372_v31  ;;  %v1440_v42 = vpop.permute.xlu0 %1439 }
 0x295   :  { %7481 = vmatprep.subr.msk.bf16.mxu1 %vm432_vm3, %v1376_v28 }
 0x296   :  { %v1444_v35 = vpop.permute.xlu1 %1443 }
 0x297   :  { %7055 = vmatpush3.bf16.xpose.msra.mxu0 %v1318_v39  ;;  %v1454_v55 = vsel %vm432_vm3, %v1444_v35, 0 }
 0x298   :  { %7482 = vmatprep.subr.msk.bf16.mxu0 %vm432_vm3, %v1446_v30  ;;  %v2219_v48 = vpop.permute.xlu0 %2218 }
 0x299   :  { %v2240_v57 = vsel %vm2131_vm4, %v2219_v48, 0 }
 0x29a   :  { %v1442_v40 = vpop.permute.xlu1 %1441 }
 0x29c   :  { %7063 = vmatpush3.bf16.xpose.msra.mxu1 %v1386_v41  ;;  %v8480_v56 = vpop.permute.xlu0 %2325 }
 0x29d   :  { %10845 = vst [vmem:[#allocation20_spill] sm:$0xff] %v8480_v56 }
 0x29e   :  { %v2111_v44 = vpop.permute.xlu1 %2110  ;;  %7057 = vmatmul.mubr.msk.bf16.vlgmr.msra.gmra.mxu0 %vm432_vm3, %v1306_v25 }
 0x29f   :  { %7069 = vmatpush3.bf16.xpose.msra.mxu0 %v1457_v46  ;;  %7072 = vmatprep.mubr.msk.bf16.mxu0 %vm432_vm3, %v1440_v42  ;;  %v2133_v50 = vsel %vm2131_vm4, %v2111_v44, 0 }
 0x2a0   :  { %7484 = vmatprep.subr.msk.bf16.mxu1 %vm2131_vm4, %v2111_v44  ;;  %7483 = vmatprep.subr.msk.bf16.mxu0 %vm432_vm3, %v1444_v35 }
 0x2a2   :  { %v2109_v54 = vpop.permute.xlu1 %2108 }
 0x2a3   :  { %7065 = vmatmul.mubr.msk.bf16.vlgmr.msra.gmra.mxu1 %vm432_vm3, %v1374_v33 }
 0x2a4   :  { %7077 = vmatpush3.bf16.msra.mxu1 %v2133_v50 }
 0x2a5   :  { %7078 = vmatprep.subr.bf16.mxu1 %v2109_v54 }
 0x2a6   :  { %v2217_v58 = vpop.permute.xlu1 %2216 }
 0x2a7   :  { %7071 = vmatpush3.bf16.xpose.msra.mxu0 %v1454_v55 }
 0x2a8   :  { %7079 = vmatpush3.bf16.msra.mxu1 %v2109_v54  ;;  %7485 = vmatprep.subr.msk.bf16.mxu0 %vm2131_vm4, %v2219_v48 }
 0x2a9   :  { %7486 = vmatprep.subr.msk.bf16.mxu1 %vm2131_vm4, %v8480_v56 }
 0x2ae   :  { %7073 = vmatmul.mubr.msk.bf16.vlgmr.msra.gmra.mxu0 %vm432_vm3, %v1442_v40 }
 0x2af   :  { %7093 = vmatpush3.bf16.msra.mxu0 %v2240_v57 }
 0x2b0   :  { %7094 = vmatprep.subr.bf16.mxu0 %v2217_v58 }
 0x2b3   :  { %7095 = vmatpush3.bf16.msra.mxu0 %v2217_v58 }
 0x2f0   :  { %v6954_v0 = vpop.f32.mrf.mxu1 }
 0x2f1   :  { %v8491_v2 = vadd.f32 %v6954_v0, %v8488_v61 }
 0x2f2   :  { %v479_v4 = vpop.f32.mrf.mxu1 }
 0x2f3   :  { %v8494_v5 = vadd.f32 %v479_v4, %v8488_v61  ;;  %v1562_v7 = vsel %vm1555_vm6, %v8491_v2, -inf }
 0x2f4   :  { %1563 = vmax.xlane.f32.xlu0 %v1562_v7  ;;  %v6955_v8 = vpop.f32.mrf.mxu1 }
 0x2f5   :  { %v1556_v10 = vsel %vm1555_vm6, %v8494_v5, -inf }
 0x2f6   :  { %v482_v9 = vpop.f32.mrf.mxu1 }
 0x2f7   :  { %v8499_v14 = vadd.f32 %v482_v9, %v8488_v61 }
 0x2f8   :  { %1557 = vmax.xlane.f32.xlu0 %v1556_v10 }
 0x2f9   :  { %v1559_v11 = vsel %vm1555_vm6, %v8499_v14, -inf }
 0x2fa   :  { %1560 = vmax.xlane.f32.xlu1 %v1559_v11 }
 0x2fe   :  { %v6962_v12 = vpop.f32.mrf.mxu0 }
 0x2ff   :  { %v8506_v13 = vadd.f32 %v6962_v12, %v8488_v61 }
 0x300   :  { %v545_v19 = vpop.f32.mrf.mxu0 }
 0x301   :  { %v8509_v20 = vadd.f32 %v545_v19, %v8488_v61  ;;  %v1598_v21 = vsel %vm1555_vm6, %v8506_v13, -inf }
 0x302   :  { %v6963_v22 = vpop.f32.mrf.mxu0  ;;  %1599 = vmax.xlane.f32.xlu1 %v1598_v21 }
 0x303   :  { %v6970_v23 = vpop.f32.mrf.mxu1  ;;  %v1592_v27 = vsel %vm1555_vm6, %v8509_v20, -inf }
 0x304   :  { %v548_v24 = vpop.f32.mrf.mxu0  ;;  %v8514_v17 = vadd.f32 %v6970_v23, %v8488_v61 }
 0x305   :  { %v8517_v25 = vadd.f32 %v548_v24, %v8488_v61  ;;  %v611_v26 = vpop.f32.mrf.mxu1 }
 0x306   :  { %1593 = vmax.xlane.f32.xlu1 %v1592_v27  ;;  %v8524_v30 = vadd.f32 %v611_v26, %v8488_v61  ;;  %v1634_v32 = vsel %vm1555_vm6, %v8514_v17, -inf }
 0x307   :  { %v6971_v28 = vpop.f32.mrf.mxu1  ;;  %v1595_v29 = vsel %vm1555_vm6, %v8517_v25, -inf }
 0x308   :  { %1596 = vmax.xlane.f32.xlu0 %v1595_v29  ;;  %v1628_v39 = vsel %vm1555_vm6, %v8524_v30, -inf }
 0x309   :  { %v614_v31 = vpop.f32.mrf.mxu1 }
 0x30a   :  { %v8529_v33 = vadd.f32 %v614_v31, %v8488_v61  ;;  %1635 = vmax.xlane.f32.xlu1 %v1634_v32 }
 0x30c   :  { %v1631_v35 = vsel %vm1555_vm6, %v8529_v33, -inf }
 0x30d   :  { %1632 = vmax.xlane.f32.xlu0 %v1631_v35 }
 0x30e   :  { %v6978_v40 = vpop.f32.mrf.mxu0  ;;  %1629 = vmax.xlane.f32.xlu1 %v1628_v39 }
 0x30f   :  { %v8536_v41 = vadd.f32 %v6978_v40, %v8488_v61 }
 0x310   :  { %v677_v42 = vpop.f32.mrf.mxu0 }
 0x311   :  { %v8539_v44 = vadd.f32 %v677_v42, %v8488_v61  ;;  %v1670_v46 = vsel %vm1555_vm6, %v8536_v41, -inf }
 0x312   :  { %v6979_v48 = vpop.f32.mrf.mxu0  ;;  %1671 = vmax.xlane.f32.xlu1 %v1670_v46 }
 0x313   :  { %v6986_v50 = vpop.f32.mrf.mxu1  ;;  %v1664_v58 = vsel %vm1555_vm6, %v8539_v44, -inf }
 0x314   :  { %v8544_v54 = vadd.f32 %v6986_v50, %v8488_v61  ;;  %v680_v55 = vpop.f32.mrf.mxu0 }
 0x315   :  { %v745_v57 = vpop.f32.mrf.mxu1  ;;  %v8549_v59 = vadd.f32 %v680_v55, %v8488_v61 }
 0x316   :  { %1665 = vmax.xlane.f32.xlu1 %v1664_v58  ;;  %v1571_v60 = vsel %vm1555_vm6, %v8544_v54, -inf  ;;  %v8554_v7 = vadd.f32 %v745_v57, %v8488_v61 }
 0x317   :  { %1572 = vmax.xlane.f32.xlu0 %v1571_v60  ;;  %v6987_v0 = vpop.f32.mrf.mxu1  ;;  %v1667_v9 = vsel %vm1555_vm6, %v8549_v59, -inf }
 0x318   :  { %v1565_v12 = vsel %vm1555_vm6, %v8554_v7, -inf }
 0x319   :  { %v748_v4 = vpop.f32.mrf.mxu1 }
 0x31a   :  { %v8557_v8 = vadd.f32 %v748_v4, %v8488_v61 }
 0x31b   :  { %1668 = vmax.xlane.f32.xlu0 %v1667_v9 }
 0x31c   :  { %v1568_v10 = vsel %vm1555_vm6, %v8557_v8, -inf }
 0x31d   :  { %1569 = vmax.xlane.f32.xlu1 %v1568_v10 }
 0x31e   :  { %v6994_v11 = vpop.f32.mrf.mxu0 }
 0x31f   :  { %v8566_v19 = vadd.f32 %v6994_v11, %v8488_v61  ;;  %1566 = vmax.xlane.f32.xlu0 %v1565_v12 }
 0x320   :  { %v813_v21 = vpop.f32.mrf.mxu0 }
 0x321   :  { %v1607_v22 = vsel %vm1555_vm6, %v8566_v19, -inf  ;;  %v8571_v23 = vadd.f32 %v813_v21, %v8488_v61 }
 0x322   :  { %v6995_v24 = vpop.f32.mrf.mxu0 }
 0x323   :  { %1608 = vmax.xlane.f32.xlu0 %v1607_v22  ;;  %v7002_v26 = vpop.f32.mrf.mxu1  ;;  %v1601_v32 = vsel %vm1555_vm6, %v8571_v23, -inf }
 0x324   :  { %v816_v27 = vpop.f32.mrf.mxu0  ;;  %v8577_v31 = vadd.f32 %v7002_v26, %v8488_v61 }
 0x325   :  { %v8574_v28 = vadd.f32 %v816_v27, %v8488_v61  ;;  %v881_v29 = vpop.f32.mrf.mxu1 }
 0x326   :  { %v8584_v42 = vadd.f32 %v881_v29, %v8488_v61  ;;  %v1643_v48 = vsel %vm1555_vm6, %v8577_v31, -inf }
 0x327   :  { %1602 = vmax.xlane.f32.xlu0 %v1601_v32  ;;  %v7003_v35 = vpop.f32.mrf.mxu1  ;;  %v1604_v39 = vsel %vm1555_vm6, %v8574_v28, -inf }
 0x328   :  { %1605 = vmax.xlane.f32.xlu1 %v1604_v39  ;;  %v1637_v57 = vsel %vm1555_vm6, %v8584_v42, -inf }
 0x329   :  { %v884_v40 = vpop.f32.mrf.mxu1 }
 0x32a   :  { %v8587_v46 = vadd.f32 %v884_v40, %v8488_v61 }
 0x32b   :  { %1644 = vmax.xlane.f32.xlu0 %v1643_v48 }
 0x32c   :  { %v1640_v50 = vsel %vm1555_vm6, %v8587_v46, -inf }
 0x32d   :  { %1641 = vmax.xlane.f32.xlu1 %v1640_v50 }
 0x32e   :  { %v7010_v55 = vpop.f32.mrf.mxu0 }
 0x32f   :  { %v8596_v58 = vadd.f32 %v7010_v55, %v8488_v61  ;;  %1638 = vmax.xlane.f32.xlu0 %v1637_v57 }
 0x330   :  { %v949_v60 = vpop.f32.mrf.mxu0 }
 0x331   :  { %v1679_v0 = vsel %vm1555_vm6, %v8596_v58, -inf  ;;  %v8601_v4 = vadd.f32 %v949_v60, %v8488_v61 }
 0x332   :  { %v7011_v9 = vpop.f32.mrf.mxu0 }
 0x333   :  { %1680 = vmax.xlane.f32.xlu0 %v1679_v0  ;;  %v7018_v10 = vpop.f32.mrf.mxu1  ;;  %v1673_v24 = vsel %vm1555_vm6, %v8601_v4, -inf }
 0x334   :  { %v8604_v11 = vadd.f32 %v7018_v10, %v8488_v61  ;;  %v952_v12 = vpop.f32.mrf.mxu0 }
 0x335   :  { %v1017_v21 = vpop.f32.mrf.mxu1  ;;  %v8607_v22 = vadd.f32 %v952_v12, %v8488_v61 }
 0x336   :  { %v1580_v26 = vsel %vm1555_vm6, %v8604_v11, -inf  ;;  %v8614_v32 = vadd.f32 %v1017_v21, %v8488_v61 }
 0x337   :  { %1674 = vmax.xlane.f32.xlu0 %v1673_v24  ;;  %1581 = vmax.xlane.f32.xlu1 %v1580_v26  ;;  %v7019_v27 = vpop.f32.mrf.mxu1  ;;  %v1676_v39 = vsel %vm1555_vm6, %v8607_v22, -inf }
 0x338   :  { %v1574_v50 = vsel %vm1555_vm6, %v8614_v32, -inf }
 0x339   :  { %v1020_v29 = vpop.f32.mrf.mxu1 }
 0x33a   :  { %v8617_v35 = vadd.f32 %v1020_v29, %v8488_v61 }
 0x33b   :  { %1677 = vmax.xlane.f32.xlu1 %v1676_v39 }
 0x33c   :  { %v1577_v40 = vsel %vm1555_vm6, %v8617_v35, -inf }
 0x33d   :  { %1578 = vmax.xlane.f32.xlu0 %v1577_v40 }
 0x33e   :  { %v7026_v48 = vpop.f32.mrf.mxu0 }
 0x33f   :  { %v8626_v55 = vadd.f32 %v7026_v48, %v8488_v61  ;;  %1575 = vmax.xlane.f32.xlu1 %v1574_v50 }
 0x340   :  { %v1085_v57 = vpop.f32.mrf.mxu0 }
 0x341   :  { %v1616_v60 = vsel %vm1555_vm6, %v8626_v55, -inf  ;;  %v8631_v0 = vadd.f32 %v1085_v57, %v8488_v61 }
 0x342   :  { %v7027_v9 = vpop.f32.mrf.mxu0 }
 0x343   :  { %1617 = vmax.xlane.f32.xlu1 %v1616_v60  ;;  %v7034_v10 = vpop.f32.mrf.mxu1  ;;  %v1610_v27 = vsel %vm1555_vm6, %v8631_v0, -inf }
 0x344   :  { %v1088_v12 = vpop.f32.mrf.mxu0  ;;  %v8637_v26 = vadd.f32 %v7034_v10, %v8488_v61 }
 0x345   :  { %v8634_v21 = vadd.f32 %v1088_v12, %v8488_v61  ;;  %v1153_v24 = vpop.f32.mrf.mxu1 }
 0x346   :  { %v8644_v48 = vadd.f32 %v1153_v24, %v8488_v61  ;;  %v1652_v57 = vsel %vm1555_vm6, %v8637_v26, -inf }
 0x347   :  { %1611 = vmax.xlane.f32.xlu1 %v1610_v27  ;;  %v7035_v29 = vpop.f32.mrf.mxu1  ;;  %v1613_v39 = vsel %vm1555_vm6, %v8634_v21, -inf }
 0x348   :  { %1614 = vmax.xlane.f32.xlu0 %v1613_v39  ;;  %v1646_v10 = vsel %vm1555_vm6, %v8644_v48, -inf }
 0x349   :  { %v1156_v40 = vpop.f32.mrf.mxu1 }
 0x34a   :  { %v8647_v50 = vadd.f32 %v1156_v40, %v8488_v61 }
 0x34b   :  { %1653 = vmax.xlane.f32.xlu1 %v1652_v57 }
 0x34c   :  { %v1649_v60 = vsel %vm1555_vm6, %v8647_v50, -inf }
 0x34d   :  { %1650 = vmax.xlane.f32.xlu0 %v1649_v60 }
 0x34e   :  { %v7042_v9 = vpop.f32.mrf.mxu0 }
 0x34f   :  { %v8656_v12 = vadd.f32 %v7042_v9, %v8488_v61  ;;  %1647 = vmax.xlane.f32.xlu1 %v1646_v10 }
 0x350   :  { %v1221_v24 = vpop.f32.mrf.mxu0 }
 0x351   :  { %v1688_v27 = vsel %vm1555_vm6, %v8656_v12, -inf  ;;  %v8661_v29 = vadd.f32 %v1221_v24, %v8488_v61 }
 0x352   :  { %v7043_v39 = vpop.f32.mrf.mxu0 }
 0x353   :  { %1689 = vmax.xlane.f32.xlu1 %v1688_v27  ;;  %v7050_v40 = vpop.f32.mrf.mxu1  ;;  %v1682_v9 = vsel %vm1555_vm6, %v8661_v29, -inf }
 0x354   :  { %v8664_v57 = vadd.f32 %v7050_v40, %v8488_v61  ;;  %v1224_v60 = vpop.f32.mrf.mxu0 }
 0x355   :  { %v1289_v6 = vpop.f32.mrf.mxu1  ;;  %v8667_v18 = vadd.f32 %v1224_v60, %v8488_v61 }
 0x356   :  { %v1589_v10 = vsel %vm1555_vm6, %v8664_v57, -inf  ;;  %v8674_v27 = vadd.f32 %v1289_v6, %v8488_v61 }
 0x357   :  { %1683 = vmax.xlane.f32.xlu1 %v1682_v9  ;;  %1590 = vmax.xlane.f32.xlu0 %v1589_v10  ;;  %v7051_v24 = vpop.f32.mrf.mxu1  ;;  %v1685_v60 = vsel %vm1555_vm6, %v8667_v18, -inf }
 0x358   :  { %v1583_v9 = vsel %vm1555_vm6, %v8674_v27, -inf }
 0x359   :  { %v1292_v39 = vpop.f32.mrf.mxu1 }
 0x35a   :  { %v8677_v40 = vadd.f32 %v1292_v39, %v8488_v61 }
 0x35b   :  { %1686 = vmax.xlane.f32.xlu0 %v1685_v60 }
 0x35c   :  { %v1586_v16 = vsel %vm1555_vm6, %v8677_v40, -inf }
 0x35d   :  { %1587 = vmax.xlane.f32.xlu1 %v1586_v16 }
 0x35e   :  { %v7058_v63 = vpop.f32.mrf.mxu0 }
 0x35f   :  { %v8686_v10 = vadd.f32 %v7058_v63, %v8488_v61  ;;  %1584 = vmax.xlane.f32.xlu0 %v1583_v9 }
 0x360   :  { %v1357_v6 = vpop.f32.mrf.mxu0 }
 0x361   :  { %v1625_v24 = vsel %vm1555_vm6, %v8686_v10, -inf  ;;  %v8691_v39 = vadd.f32 %v1357_v6, %v8488_v61 }
 0x362   :  { %v7059_v60 = vpop.f32.mrf.mxu0 }
 0x363   :  { %1626 = vmax.xlane.f32.xlu0 %v1625_v24  ;;  %v7066_v3 = vpop.f32.mrf.mxu1  ;;  %v1619_v63 = vsel %vm1555_vm6, %v8691_v39, -inf }
 0x364   :  { %v1360_v62 = vpop.f32.mrf.mxu0  ;;  %v8697_v49 = vadd.f32 %v7066_v3, %v8488_v61 }
 0x365   :  { %v8694_v16 = vadd.f32 %v1360_v62, %v8488_v61  ;;  %v1425_v1 = vpop.f32.mrf.mxu1 }
 0x366   :  { %v8704_v24 = vadd.f32 %v1425_v1, %v8488_v61  ;;  %v1661_v62 = vsel %vm1555_vm6, %v8697_v49, -inf }
 0x367   :  { %1620 = vmax.xlane.f32.xlu0 %v1619_v63  ;;  %v7067_v9 = vpop.f32.mrf.mxu1  ;;  %v1622_v6 = vsel %vm1555_vm6, %v8694_v16, -inf }
 0x368   :  { %1623 = vmax.xlane.f32.xlu1 %v1622_v6  ;;  %v1655_v3 = vsel %vm1555_vm6, %v8704_v24, -inf }
 0x36b   :  { %1662 = vmax.xlane.f32.xlu0 %v1661_v62 }
 0x36e   :  { %v7074_v60 = vpop.f32.mrf.mxu0 }
 0x36f   :  { %v8711_v52 = vadd.f32 %v7074_v60, %v8488_v61  ;;  %1656 = vmax.xlane.f32.xlu0 %v1655_v3 }
 0x370   :  { %v1493_v63 = vpop.f32.mrf.mxu0 }
 0x371   :  { %v1697_v9 = vsel %vm1555_vm6, %v8711_v52, -inf  ;;  %v8716_v6 = vadd.f32 %v1493_v63, %v8488_v61 }
 0x372   :  { %v7075_v1 = vpop.f32.mrf.mxu0 }
 0x373   :  { %1698 = vmax.xlane.f32.xlu0 %v1697_v9  ;;  %v1691_v62 = vsel %vm1555_vm6, %v8716_v6, -inf }
 0x377   :  { %1692 = vmax.xlane.f32.xlu0 %v1691_v62 }
 0x379   :  { %2323 = vrot.lane.b32.xlu1 %v8263_v45, %s8064_s23  ;;  %v1428_v45 = vpop.f32.mrf.mxu1 }
 0x37d   :  { %v1564_v3 = vpop.xlane.xlu0 %1563 }
 0x37e   :  { %v1702_v37 = vsub.f32 %v8491_v2, %v1564_v3 }
 0x380   :  { %v1752_v34 = vmul.f32 1.442695, %v1702_v37  ;;  %v8733_v37 = vadd.f32 %v1428_v45, %v8488_v61 }
 0x381   :  { %v1558_v63 = vpop.xlane.xlu0 %1557 }
 0x382   :  { %v1700_v1 = vsub.f32 %v8494_v5, %v1558_v63 }
 0x383   :  { %v1561_v53 = vpop.xlane.xlu1 %1560 }
 0x384   :  { %v1701_v60 = vsub.f32 %v8499_v14, %v1561_v53  ;;  %v1748_v15 = vmul.f32 1.442695, %v1700_v1  ;;  %v1658_v1 = vsel %vm1555_vm6, %v8733_v37, -inf }
 0x386   :  { %v1750_v51 = vmul.f32 1.442695, %v1701_v60 }
 0x388   :  { %7566 = vpow2.f32 %v1750_v51 }
 0x389   :  { %7568 = vpow2.f32 %v1752_v34 }
 0x38a   :  { %7570 = vpow2.f32 %v1748_v15 }
 0x38b   :  { %v1600_v38 = vpop.xlane.xlu1 %1599 }
 0x38c   :  { %v1714_v53 = vsub.f32 %v8506_v13, %v1600_v38 }
 0x38e   :  { %v1776_v3 = vmul.f32 1.442695, %v1714_v53 }
 0x38f   :  { %v1594_v9 = vpop.xlane.xlu1 %1593 }
 0x390   :  { %v1712_v34 = vsub.f32 %v8509_v20, %v1594_v9 }
 0x391   :  { %v1597_v36 = vpop.xlane.xlu0 %1596 }
 0x392   :  { %v1713_v62 = vsub.f32 %v8517_v25, %v1597_v36 }
 0x393   :  { %v1636_v56 = vpop.xlane.xlu1 %1635 }
 0x394   :  { %v1726_v14 = vsub.f32 %v8514_v17, %v1636_v56  ;;  %v1774_v60 = vmul.f32 1.442695, %v1713_v62  ;;  %v1496_v56 = vpop.f32.mrf.mxu0  ;;  %v1772_v62 = vmul.f32 1.442695, %v1712_v34 }
 0x395   :  { %v8728_v51 = vpop.eup %7566  ;;  %v8741_v15 = vadd.f32 %v1496_v56, %v8488_v61 }
 0x396   :  { %v1800_v2 = vmul.f32 1.442695, %v1726_v14  ;;  %v1847_v5 = vsel %vm1555_vm6, %v8728_v51, 0.0  ;;  %v1633_v36 = vpop.xlane.xlu0 %1632 }
 0x397   :  { %v1630_v25 = vpop.xlane.xlu1 %1629  ;;  %1848 = vadd.xlane.f32.xlu0 %v1847_v5  ;;  %v1725_v13 = vsub.f32 %v8529_v33, %v1633_v36  ;;  %v1694_v14 = vsel %vm1555_vm6, %v8741_v15, -inf }
 0x398   :  { %7572 = vpow2.f32 %v1800_v2  ;;  %v1724_v38 = vsub.f32 %v8524_v30, %v1630_v25 }
 0x399   :  { %7574 = vpow2.f32 %v1774_v60  ;;  %v1798_v20 = vmul.f32 1.442695, %v1725_v13  ;;  %v8747_v60 = vpop.eup %7568 }
 0x39a   :  { %v1796_v17 = vmul.f32 1.442695, %v1724_v38  ;;  %7576 = vpow2.f32 %v1776_v3  ;;  %v1850_v3 = vsel %vm1555_vm6, %v8747_v60, 0.0 }
 0x39b   :  { %v1672_v63 = vpop.xlane.xlu1 %1671 }
 0x39c   :  { %v1738_v45 = vsub.f32 %v8536_v41, %v1672_v63  ;;  %7578 = vpow2.f32 %v1796_v17  ;;  %v8750_v41 = vpop.eup %7570 }
 0x39d   :  { %1659 = vmax.xlane.f32.xlu1 %v1658_v1  ;;  %7580 = vpow2.f32 %v1772_v62  ;;  %v1844_v1 = vsel %vm1555_vm6, %v8750_v41, 0.0 }
 0x39e   :  { %v1824_v9 = vmul.f32 1.442695, %v1738_v45  ;;  %7582 = vpow2.f32 %v1798_v20 }
 0x39f   :  { %v1666_v30 = vpop.xlane.xlu1 %1665 }
 0x3a0   :  { %v1736_v33 = vsub.f32 %v8539_v44, %v1666_v30  ;;  %v1573_v53 = vpop.xlane.xlu0 %1572  ;;  %7584 = vpow2.f32 %v1824_v9 }
 0x3a1   :  { %v1705_v2 = vsub.f32 %v8544_v54, %v1573_v53  ;;  %1695 = vmax.xlane.f32.xlu1 %v1694_v14 }
 0x3a2   :  { %v1820_v36 = vmul.f32 1.442695, %v1736_v33 }
 0x3a3   :  { %v1758_v5 = vmul.f32 1.442695, %v1705_v2 }
 0x3a4   :  { %v1669_v25 = vpop.xlane.xlu0 %1668 }
 0x3a5   :  { %v8754_v44 = vpop.eup %7572  ;;  %v1737_v34 = vsub.f32 %v8549_v59, %v1669_v25  ;;  %1851 = vadd.xlane.f32.xlu1 %v1850_v3  ;;  %7586 = vpow2.f32 %v1758_v5 }
 0x3a6   :  { %v1570_v38 = vpop.xlane.xlu1 %1569  ;;  %v1922_v54 = vsel %vm1555_vm6, %v8754_v44, 0.0  ;;  %v8759_v56 = vpop.eup %7574  ;;  %7588 = vpow2.f32 %v1820_v36 }
 0x3a7   :  { %1923 = vadd.xlane.f32.xlu0 %v1922_v54  ;;  %v1822_v13 = vmul.f32 1.442695, %v1737_v34  ;;  %v1704_v17 = vsub.f32 %v8557_v8, %v1570_v38  ;;  %v8764_v62 = vpop.eup %7576  ;;  %v1883_v45 = vsel %vm1555_vm6, %v8759_v56, 0.0 }
 0x3a8   :  { %v1567_v63 = vpop.xlane.xlu0 %1566  ;;  %v1886_v8 = vsel %vm1555_vm6, %v8764_v62, 0.0 }
 0x3a9   :  { %v1703_v59 = vsub.f32 %v8554_v7, %v1567_v63  ;;  %1845 = vadd.xlane.f32.xlu1 %v1844_v1  ;;  %v8769_v20 = vpop.eup %7578  ;;  %7590 = vpow2.f32 %v1822_v13  ;;  %v1756_v9 = vmul.f32 1.442695, %v1704_v17 }
 0x3aa   :  { %v8773_v53 = vpop.eup %7580  ;;  %v1916_v7 = vsel %vm1555_vm6, %v8769_v20, 0.0 }
 0x3ab   :  { %v1754_v30 = vmul.f32 1.442695, %v1703_v59  ;;  %1884 = vadd.xlane.f32.xlu0 %v1883_v45  ;;  %v8778_v2 = vpop.eup %7582  ;;  %v1880_v25 = vsel %vm1555_vm6, %v8773_v53, 0.0 }
 0x3ac   :  { %v1609_v33 = vpop.xlane.xlu0 %1608  ;;  %v1919_v54 = vsel %vm1555_vm6, %v8778_v2, 0.0 }
 0x3ad   :  { %7592 = vpow2.f32 %v1754_v30  ;;  %v1717_v14 = vsub.f32 %v8566_v19, %v1609_v33  ;;  %1887 = vadd.xlane.f32.xlu1 %v1886_v8  ;;  %v8782_v3 = vpop.eup %7584 }
 0x3ae   :  { %7594 = vpow2.f32 %v1756_v9  ;;  %v1958_v59 = vsel %vm1555_vm6, %v8782_v3, 0.0 }
 0x3af   :  { %v1782_v5 = vmul.f32 1.442695, %v1717_v14  ;;  %1917 = vadd.xlane.f32.xlu0 %v1916_v7 }
 0x3b0   :  { %v1603_v36 = vpop.xlane.xlu0 %1602 }
 0x3b1   :  { %7596 = vpow2.f32 %v1782_v5  ;;  %v1715_v34 = vsub.f32 %v8571_v23, %v1603_v36  ;;  %v1606_v38 = vpop.xlane.xlu1 %1605  ;;  %1881 = vadd.xlane.f32.xlu1 %v1880_v25 }
 0x3b2   :  { %v1716_v19 = vsub.f32 %v8574_v28, %v1606_v38  ;;  %v8788_v13 = vpop.eup %7586 }
 0x3b3   :  { %v1778_v17 = vmul.f32 1.442695, %v1715_v34  ;;  %1920 = vadd.xlane.f32.xlu0 %v1919_v54  ;;  %v8792_v45 = vpop.eup %7588  ;;  %v1859_v30 = vsel %vm1555_vm6, %v8788_v13, 0.0 }
 0x3b4   :  { %v1780_v63 = vmul.f32 1.442695, %v1716_v19  ;;  %v1645_v1 = vpop.xlane.xlu0 %1644  ;;  %v1952_v14 = vsel %vm1555_vm6, %v8792_v45, 0.0 }
 0x3b5   :  { %7598 = vpow2.f32 %v1778_v17  ;;  %v1729_v23 = vsub.f32 %v8577_v31, %v1645_v1  ;;  %1959 = vadd.xlane.f32.xlu1 %v1958_v59 }
 0x3b6   :  { %7600 = vpow2.f32 %v1780_v63  ;;  %v1642_v28 = vpop.xlane.xlu1 %1641  ;;  %v8800_v7 = vpop.eup %7590 }
 0x3b7   :  { %v1806_v9 = vmul.f32 1.442695, %v1729_v23  ;;  %v1728_v33 = vsub.f32 %v8587_v46, %v1642_v28  ;;  %1860 = vadd.xlane.f32.xlu0 %v1859_v30  ;;  %v1955_v46 = vsel %vm1555_vm6, %v8800_v7, 0.0 }
 0x3b8   :  { %v1639_v8 = vpop.xlane.xlu0 %1638 }
 0x3b9   :  { %7602 = vpow2.f32 %v1806_v9  ;;  %v1727_v5 = vsub.f32 %v8584_v42, %v1639_v8  ;;  %1953 = vadd.xlane.f32.xlu1 %v1952_v14  ;;  %v1804_v36 = vmul.f32 1.442695, %v1728_v33 }
 0x3ba   :  { %v8803_v31 = vpop.eup %7592 }
 0x3bb   :  { %v1802_v25 = vmul.f32 1.442695, %v1727_v5  ;;  %v1853_v34 = vsel %vm1555_vm6, %v8803_v31, 0.0  ;;  %v8809_v19 = vpop.eup %7594 }
 0x3bc   :  { %v1681_v38 = vpop.xlane.xlu0 %1680  ;;  %1854 = vadd.xlane.f32.xlu0 %v1853_v34  ;;  %v1856_v23 = vsel %vm1555_vm6, %v8809_v19, 0.0 }
 0x3bd   :  { %7604 = vpow2.f32 %v1802_v25  ;;  %v1741_v54 = vsub.f32 %v8596_v58, %v1681_v38  ;;  %1956 = vadd.xlane.f32.xlu1 %v1955_v46 }
 0x3be   :  { %v8812_v42 = vpop.eup %7596  ;;  %7606 = vpow2.f32 %v1804_v36 }
 0x3bf   :  { %v1830_v17 = vmul.f32 1.442695, %v1741_v54  ;;  %v1895_v63 = vsel %vm1555_vm6, %v8812_v42, 0.0 }
 0x3c0   :  { %v1675_v1 = vpop.xlane.xlu0 %1674  ;;  %v1582_v59 = vpop.xlane.xlu1 %1581  ;;  %1896 = vadd.xlane.f32.xlu0 %v1895_v63 }
 0x3c1   :  { %v1739_v28 = vsub.f32 %v8601_v4, %v1675_v1  ;;  %v1708_v30 = vsub.f32 %v8604_v11, %v1582_v59  ;;  %1857 = vadd.xlane.f32.xlu1 %v1856_v23  ;;  %7608 = vpow2.f32 %v1830_v17 }
 0x3c2   :  { %v8820_v58 = vpop.eup %7598 }
 0x3c3   :  { %v8822_v9 = vpop.eup %7600  ;;  %v1826_v33 = vmul.f32 1.442695, %v1739_v28  ;;  %v1764_v8 = vmul.f32 1.442695, %v1708_v30  ;;  %v1889_v14 = vsel %vm1555_vm6, %v8820_v58, 0.0 }
 0x3c4   :  { %v1678_v5 = vpop.xlane.xlu1 %1677  ;;  %1890 = vadd.xlane.f32.xlu0 %v1889_v14  ;;  %v1892_v36 = vsel %vm1555_vm6, %v8822_v9, 0.0 }
 0x3c5   :  { %v1740_v4 = vsub.f32 %v8607_v22, %v1678_v5  ;;  %1893 = vadd.xlane.f32.xlu1 %v1892_v36  ;;  %7610 = vpow2.f32 %v1764_v8 }
 0x3c6   :  { %v8829_v11 = vpop.eup %7602  ;;  %v1579_v25 = vpop.xlane.xlu0 %1578  ;;  %7612 = vpow2.f32 %v1826_v33 }
 0x3c7   :  { %v1828_v34 = vmul.f32 1.442695, %v1740_v4  ;;  %v1707_v38 = vsub.f32 %v8617_v35, %v1579_v25  ;;  %v1931_v46 = vsel %vm1555_vm6, %v8829_v11, 0.0 }
 0x3c8   :  { %v1576_v54 = vpop.xlane.xlu1 %1575  ;;  %1932 = vadd.xlane.f32.xlu0 %v1931_v46 }
 0x3c9   :  { %v1706_v17 = vsub.f32 %v8614_v32, %v1576_v54  ;;  %7614 = vpow2.f32 %v1828_v34  ;;  %v1762_v22 = vmul.f32 1.442695, %v1707_v38 }
 0x3ca   :  { %v8835_v63 = vpop.eup %7604 }
 0x3cb   :  { %v1760_v1 = vmul.f32 1.442695, %v1706_v17  ;;  %v1925_v59 = vsel %vm1555_vm6, %v8835_v63, 0.0  ;;  %v8839_v23 = vpop.eup %7606 }
 0x3cc   :  { %v1618_v28 = vpop.xlane.xlu1 %1617  ;;  %1926 = vadd.xlane.f32.xlu0 %v1925_v59  ;;  %v1928_v32 = vsel %vm1555_vm6, %v8839_v23, 0.0 }
 0x3cd   :  { %7616 = vpow2.f32 %v1760_v1  ;;  %v1720_v35 = vsub.f32 %v8626_v55, %v1618_v28 }
 0x3ce   :  { %7618 = vpow2.f32 %v1762_v22  ;;  %v8844_v33 = vpop.eup %7608 }
 0x3cf   :  { %v1788_v30 = vmul.f32 1.442695, %v1720_v35  ;;  %v1967_v55 = vsel %vm1555_vm6, %v8844_v33, 0.0 }
 0x3d0   :  { %v1612_v8 = vpop.xlane.xlu1 %1611  ;;  %1929 = vadd.xlane.f32.xlu0 %v1928_v32 }
 0x3d1   :  { %v1718_v14 = vsub.f32 %v8631_v0, %v1612_v8  ;;  %v1615_v5 = vpop.xlane.xlu0 %1614  ;;  %7620 = vpow2.f32 %v1788_v30 }
 0x3d2   :  { %v1719_v36 = vsub.f32 %v8634_v21, %v1615_v5  ;;  %v8848_v4 = vpop.eup %7610 }
 0x3d3   :  { %v1784_v25 = vmul.f32 1.442695, %v1718_v14  ;;  %v8852_v34 = vpop.eup %7612  ;;  %v1868_v54 = vsel %vm1555_vm6, %v8848_v4, 0.0 }
 0x3d4   :  { %v1786_v38 = vmul.f32 1.442695, %v1719_v36  ;;  %v1654_v46 = vpop.xlane.xlu1 %1653  ;;  %1968 = vadd.xlane.f32.xlu0 %v1967_v55  ;;  %1869 = vadd.xlane.f32.xlu1 %v1868_v54  ;;  %v1961_v1 = vsel %vm1555_vm6, %v8852_v34, 0.0 }
 0x3d5   :  { %7622 = vpow2.f32 %v1784_v25  ;;  %v1732_v0 = vsub.f32 %v8637_v26, %v1654_v46 }
 0x3d6   :  { %7624 = vpow2.f32 %v1786_v38  ;;  %v1651_v21 = vpop.xlane.xlu0 %1650  ;;  %v8860_v59 = vpop.eup %7614 }
 0x3d7   :  { %v1812_v17 = vmul.f32 1.442695, %v1732_v0  ;;  %v1731_v22 = vsub.f32 %v8647_v50, %v1651_v21  ;;  %v1964_v8 = vsel %vm1555_vm6, %v8860_v59, 0.0 }
 0x3d8   :  { %v1648_v28 = vpop.xlane.xlu1 %1647  ;;  %1962 = vadd.xlane.f32.xlu0 %v1961_v1 }
 0x3d9   :  { %7626 = vpow2.f32 %v1812_v17  ;;  %v1730_v35 = vsub.f32 %v8644_v48, %v1648_v28  ;;  %v1810_v32 = vmul.f32 1.442695, %v1731_v22 }
 0x3da   :  { %v8863_v30 = vpop.eup %7616 }
 0x3db   :  { %v1808_v26 = vmul.f32 1.442695, %v1730_v35  ;;  %v1862_v50 = vsel %vm1555_vm6, %v8863_v30, 0.0  ;;  %v8869_v14 = vpop.eup %7618 }
 0x3dc   :  { %v1690_v5 = vpop.xlane.xlu1 %1689  ;;  %1965 = vadd.xlane.f32.xlu0 %v1964_v8  ;;  %1863 = vadd.xlane.f32.xlu1 %v1862_v50  ;;  %v1865_v48 = vsel %vm1555_vm6, %v8869_v14, 0.0 }
 0x3dd   :  { %7628 = vpow2.f32 %v1808_v26 }
 0x3de   :  { %7630 = vpow2.f32 %v1810_v32  ;;  %v8873_v36 = vpop.eup %7620 }
 0x3df   :  { %v1904_v22 = vsel %vm1555_vm6, %v8873_v36, 0.0 }
 0x3e0   :  { %v1684_v25 = vpop.xlane.xlu1 %1683  ;;  %v1591_v55 = vpop.xlane.xlu0 %1590  ;;  %1866 = vadd.xlane.f32.xlu0 %v1865_v48 }
 0x3e1   :  { %v1742_v38 = vsub.f32 %v8661_v29, %v1684_v25  ;;  %v1711_v46 = vsub.f32 %v8664_v57, %v1591_v55  ;;  %v1744_v57 = vsub.f32 %v8656_v12, %v1690_v5 }
 0x3e2   :  { %v8877_v54 = vpop.eup %7622 }
 0x3e3   :  { %v8879_v0 = vpop.eup %7624  ;;  %v1832_v21 = vmul.f32 1.442695, %v1742_v38  ;;  %v1770_v17 = vmul.f32 1.442695, %v1711_v46  ;;  %v1898_v1 = vsel %vm1555_vm6, %v8877_v54, 0.0 }
 0x3e4   :  { %v1687_v28 = vpop.xlane.xlu0 %1686  ;;  %1905 = vadd.xlane.f32.xlu0 %v1904_v22  ;;  %1899 = vadd.xlane.f32.xlu1 %v1898_v1  ;;  %v1901_v26 = vsel %vm1555_vm6, %v8879_v0, 0.0  ;;  %v1836_v12 = vmul.f32 1.442695, %v1744_v57 }
 0x3e5   :  { %7632 = vpow2.f32 %v1832_v21  ;;  %v1743_v29 = vsub.f32 %v8667_v18, %v1687_v28 }
 0x3e6   :  { %v8886_v35 = vpop.eup %7626  ;;  %v1588_v32 = vpop.xlane.xlu1 %1587  ;;  %7634 = vpow2.f32 %v1770_v17 }
 0x3e7   :  { %v1834_v8 = vmul.f32 1.442695, %v1743_v29  ;;  %v1710_v50 = vsub.f32 %v8677_v40, %v1588_v32  ;;  %v1940_v48 = vsel %vm1555_vm6, %v8886_v35, 0.0 }
 0x3e8   :  { %v1585_v25 = vpop.xlane.xlu0 %1584  ;;  %1902 = vadd.xlane.f32.xlu0 %v1901_v26  ;;  %1941 = vadd.xlane.f32.xlu1 %v1940_v48 }
 0x3e9   :  { %7636 = vpow2.f32 %v1834_v8  ;;  %v1768_v18 = vmul.f32 1.442695, %v1710_v50  ;;  %v1709_v55 = vsub.f32 %v8674_v27, %v1585_v25 }
 0x3ea   :  { %v8895_v38 = vpop.eup %7628 }
 0x3eb   :  { %7638 = vpow2.f32 %v1768_v18  ;;  %v1766_v5 = vmul.f32 1.442695, %v1709_v55  ;;  %v1934_v46 = vsel %vm1555_vm6, %v8895_v38, 0.0  ;;  %v8899_v21 = vpop.eup %7630 }
 0x3ec   :  { %v1627_v40 = vpop.xlane.xlu0 %1626  ;;  %1935 = vadd.xlane.f32.xlu0 %v1934_v46  ;;  %v1937_v27 = vsel %vm1555_vm6, %v8899_v21, 0.0 }
 0x3ed   :  { %7640 = vpow2.f32 %v1766_v5  ;;  %v1723_v17 = vsub.f32 %v8686_v10, %v1627_v40 }
 0x3ee   :  { %7642 = vpow2.f32 %v1836_v12 }
 0x3ef   :  { %v1794_v22 = vmul.f32 1.442695, %v1723_v17 }
 0x3f0   :  { %v1621_v1 = vpop.xlane.xlu0 %1620  ;;  %1938 = vadd.xlane.f32.xlu0 %v1937_v27 }
 0x3f1   :  { %7644 = vpow2.f32 %v1794_v22  ;;  %v1721_v28 = vsub.f32 %v8691_v39, %v1621_v1  ;;  %v1624_v29 = vpop.xlane.xlu1 %1623 }
 0x3f2   :  { %v8905_v57 = vpop.eup %7632  ;;  %v1722_v26 = vsub.f32 %v8694_v16, %v1624_v29 }
 0x3f3   :  { %10847 = vst [vmem:[#allocation22_spill] sm:$0xff] %v8905_v57  ;;  %v1790_v32 = vmul.f32 1.442695, %v1721_v28  ;;  %v1970_v8 = vsel %vm1555_vm6, %v8905_v57, 0.0  ;;  %v8910_v10 = vpop.eup %7634 }
 0x3f4   :  { %v1663_v50 = vpop.xlane.xlu0 %1662  ;;  %1971 = vadd.xlane.f32.xlu0 %v1970_v8  ;;  %v1792_v18 = vmul.f32 1.442695, %v1722_v26  ;;  %v1877_v55 = vsel %vm1555_vm6, %v8910_v10, 0.0 }
 0x3f5   :  { %7646 = vpow2.f32 %v1790_v32  ;;  %v1735_v48 = vsub.f32 %v8697_v49, %v1663_v50 }
 0x3f6   :  { %v8913_v25 = vpop.eup %7636 }
 0x3f7   :  { %10848 = vst [vmem:[#allocation23_spill] sm:$0xff] %v8913_v25  ;;  %v1818_v39 = vmul.f32 1.442695, %v1735_v48  ;;  %v1973_v16 = vsel %vm1555_vm6, %v8913_v25, 0.0 }
 0x3f8   :  { %v8919_v12 = vpop.eup %7638  ;;  %1878 = vadd.xlane.f32.xlu0 %v1877_v55  ;;  %v1657_v5 = vpop.xlane.xlu0 %1656  ;;  %1974 = vadd.xlane.f32.xlu1 %v1973_v16 }
 0x3f9   :  { %7648 = vpow2.f32 %v1818_v39  ;;  %v1733_v46 = vsub.f32 %v8704_v24, %v1657_v5  ;;  %v1874_v22 = vsel %vm1555_vm6, %v8919_v12, 0.0 }
 0x3fa   :  { %v8922_v40 = vpop.eup %7640  ;;  %7650 = vpow2.f32 %v1792_v18 }
 0x3fb   :  { %v1814_v49 = vmul.f32 1.442695, %v1733_v46  ;;  %v1871_v17 = vsel %vm1555_vm6, %v8922_v40, 0.0  ;;  %v8928_v27 = vpop.eup %7642 }
 0x3fc   :  { %10849 = vst [vmem:[#allocation24_spill] sm:$0xff] %v8928_v27  ;;  %1872 = vadd.xlane.f32.xlu0 %v1871_v17  ;;  %v1699_v1 = vpop.xlane.xlu0 %1698  ;;  %1875 = vadd.xlane.f32.xlu1 %v1874_v22  ;;  %v1976_v26 = vsel %vm1555_vm6, %v8928_v27, 0.0 }
 0x3fd   :  { %v1747_v28 = vsub.f32 %v8711_v52, %v1699_v1  ;;  %7652 = vpow2.f32 %v1814_v49  ;;  %v8959_v49 = vpop.permute.xlu1 %2323 }
 0x3fe   :  { %v8931_v29 = vpop.eup %7644 }
 0x3ff   :  { %v1842_v24 = vmul.f32 1.442695, %v1747_v28  ;;  %v1913_v32 = vsel %vm1555_vm6, %v8931_v29, 0.0 }
 0x400   :  { %1914 = vadd.xlane.f32.xlu0 %v1913_v32  ;;  %1977 = vadd.xlane.f32.xlu1 %v1976_v26  ;;  %v1693_v17 = vpop.xlane.xlu0 %1692 }
 0x401   :  { %7654 = vpow2.f32 %v1842_v24  ;;  %v1745_v22 = vsub.f32 %v8716_v6, %v1693_v17 }
 0x402   :  { %v8937_v8 = vpop.eup %7646 }
 0x403   :  { %v1907_v50 = vsel %vm1555_vm6, %v8937_v8, 0.0  ;;  %v1838_v24 = vmul.f32 1.442695, %v1745_v22 }
 0x404   :  { %1908 = vadd.xlane.f32.xlu1 %v1907_v50 }
 0x406   :  { %v8941_v52 = vpop.eup %7648 }
 0x407   :  { %v1949_v48 = vsel %vm1555_vm6, %v8941_v52, 0.0  ;;  %v8945_v18 = vpop.eup %7650 }
 0x408   :  { %1950 = vadd.xlane.f32.xlu0 %v1949_v48  ;;  %v1910_v39 = vsel %vm1555_vm6, %v8945_v18, 0.0 }
 0x40a   :  { %v8949_v55 = vpop.eup %7652 }
 0x40b   :  { %v1943_v5 = vsel %vm1555_vm6, %v8949_v55, 0.0 }
 0x40c   :  { %1911 = vadd.xlane.f32.xlu0 %v1910_v39 }
 0x40e   :  { %v8951_v16 = vpop.eup %7654 }
 0x40f   :  { %10850 = vst [vmem:[#allocation25_spill] sm:$0xff] %v8951_v16  ;;  %v1985_v46 = vsel %vm1555_vm6, %v8951_v16, 0.0 }
 0x410   :  { %1944 = vadd.xlane.f32.xlu0 %v1943_v5  ;;  %1986 = vadd.xlane.f32.xlu1 %v1985_v46 }
 0x420   :  { %v1849_v48 = vpop.xlane.xlu0 %1848 }
 0x421   :  { %2430 = vrot.lane.b32.xlu1 %v8267_v47, %s8064_s23 }
 0x426   :  { %v1660_v1 = vpop.xlane.xlu1 %1659 }
 0x427   :  { %v1734_v28 = vsub.f32 %v8733_v37, %v1660_v1 }
 0x429   :  { %v1816_v32 = vmul.f32 1.442695, %v1734_v28 }
 0x42a   :  { %v1696_v26 = vpop.xlane.xlu1 %1695 }
 0x42b   :  { %7656 = vpow2.f32 %v1816_v32  ;;  %v1746_v50 = vsub.f32 %v8741_v15, %v1696_v26 }
 0x42c   :  { %7658 = vpow2.f32 %v1838_v24 }
 0x42d   :  { %v1840_v39 = vmul.f32 1.442695, %v1746_v50  ;;  %7660 = vrcp.f32 %v1849_v48 }
 0x42e   :  { %v1852_v5 = vpop.xlane.xlu1 %1851 }
 0x42f   :  { %7662 = vpow2.f32 %v1840_v39 }
 0x430   :  { %v8964_v47 = vpop.xlane.xlu0 %1923 }
 0x432   :  { %v1846_v46 = vpop.xlane.xlu1 %1845 }
 0x433   :  { %7664 = vrcp.f32 %v1846_v46 }
 0x434   :  { %v1885_v6 = vpop.xlane.xlu0 %1884 }
 0x435   :  { %7666 = vrcp.f32 %v1885_v6 }
 0x436   :  { %v1888_v17 = vpop.xlane.xlu1 %1887 }
 0x438   :  { %v8966_v61 = vpop.eup %7656  ;;  %v8968_v37 = vpop.xlane.xlu0 %1917 }
 0x439   :  { %v1946_v15 = vsel %vm1555_vm6, %v8966_v61, 0.0  ;;  %v8972_v22 = vpop.eup %7658 }
 0x43a   :  { %10851 = vst [vmem:[#allocation26_spill] sm:$0xff] %v8972_v22  ;;  %1947 = vadd.xlane.f32.xlu0 %v1946_v15  ;;  %v1882_v1 = vpop.xlane.xlu1 %1881  ;;  %v7661_v24 = vpop.eup %7660  ;;  %v1979_v32 = vsel %vm1555_vm6, %v8972_v22, 0.0 }
 0x43b   :  { %7668 = vrcp.f32 %v1882_v1  ;;  %v2037_v15 = vmul.f32 %v7661_v24, %v8728_v51 }
 0x43c   :  { %v8974_v28 = vpop.xlane.xlu0 %1920  ;;  %v8978_v26 = vpop.eup %7662  ;;  %7670 = vrcp.f32 %v1852_v5 }
 0x43d   :  { %10852 = vst [vmem:[#allocation27_spill] sm:$0xff] %v8978_v26  ;;  %v1982_v46 = vsel %vm1555_vm6, %v8978_v26, 0.0 }
 0x43e   :  { %1980 = vadd.xlane.f32.xlu0 %v1979_v32  ;;  %v8980_v50 = vpop.xlane.xlu1 %1959 }
 0x440   :  { %v7665_v48 = vpop.eup %7664  ;;  %v1861_v39 = vpop.xlane.xlu0 %1860 }
 0x441   :  { %v2036_v6 = vmul.f32 %v7665_v48, %v8750_v41 }
 0x442   :  { %1983 = vadd.xlane.f32.xlu0 %v1982_v46  ;;  %v8986_v1 = vpop.xlane.xlu1 %1953  ;;  %v7667_v32 = vpop.eup %7666 }
 0x443   :  { %v2084_v16 = vpack.c.bf16 %v2037_v15, %v2036_v6  ;;  %v2049_v41 = vmul.f32 %v7667_v32, %v8759_v56 }
 0x445   :  { %v1855_v27 = vpop.xlane.xlu0 %1854  ;;  %7080 = vmatprep.mubr.msk.bf16.mxu1 %vm1555_vm6, %v2084_v16 }
 0x446   :  { %7672 = vrcp.f32 %v1855_v27  ;;  %v8989_v57 = vpop.xlane.xlu1 %1956 }
 0x447   :  { %7674 = vrcp.f32 %v1861_v39 }
 0x448   :  { %v7669_v22 = vpop.eup %7668 }
 0x449   :  { %v1897_v25 = vpop.xlane.xlu0 %1896  ;;  %v2048_v26 = vmul.f32 %v7669_v22, %v8773_v53  ;;  %v7671_v27 = vpop.eup %7670 }
 0x44a   :  { %v1858_v51 = vpop.xlane.xlu1 %1857  ;;  %v2038_v46 = vmul.f32 %v7671_v27, %v8747_v60 }
 0x44b   :  { %7676 = vrcp.f32 %v1858_v51  ;;  %v2090_v24 = vpack.c.bf16 %v2049_v41, %v2048_v26 }
 0x44c   :  { %7678 = vrcp.f32 %v1888_v17 }
 0x44d   :  { %7680 = vrcp.f32 %v1897_v25  ;;  %v1891_v5 = vpop.xlane.xlu0 %1890  ;;  %7096 = vmatprep.mubr.msk.bf16.mxu0 %vm1555_vm6, %v2090_v24  ;;  %v10853_v25 = vld [vmem:[#allocation20_spill] sm:$0xff] }
 0x44e   :  { %7682 = vrcp.f32 %v1891_v5  ;;  %v1894_v16 = vpop.xlane.xlu1 %1893  ;;  %v2347_v6 = vsel %vm2131_vm4, %v10853_v25, 0 }
 0x44f   :  { %7684 = vrcp.f32 %v1894_v16 }
 0x451   :  { %v8994_v48 = vpop.xlane.xlu0 %1932 }
 0x453   :  { %v7673_v39 = vpop.eup %7672 }
 0x454   :  { %v2039_v53 = vmul.f32 %v7673_v39, %v8803_v31  ;;  %v7675_v22 = vpop.eup %7674 }
 0x455   :  { %v8998_v56 = vpop.xlane.xlu0 %1926  ;;  %v2041_v31 = vmul.f32 %v7675_v22, %v8788_v13 }
 0x456   :  { %v2085_v26 = vpack.c.bf16 %v2039_v53, %v2038_v46 }
 0x458   :  { %v7677_v17 = vpop.eup %7676  ;;  %2432 = vrot.lane.b32.xlu0 %v8259_v43, %s8064_s23  ;;  %7081 = vmatmul.mubr.msk.bf16.vlgmr.msra.gmra.mxu1 %vm1555_vm6, %v2085_v26 }
 0x459   :  { %v7679_v15 = vpop.eup %7678  ;;  %7109 = vmatpush3.bf16.msra.mxu1 %v2347_v6  ;;  %v1930_v32 = vpop.xlane.xlu0 %1929  ;;  %v2040_v60 = vmul.f32 %v7677_v17, %v8809_v19 }
 0x45a   :  { %v7681_v41 = vpop.eup %7680  ;;  %7110 = vmatprep.subr.bf16.mxu1 %v8959_v49  ;;  %v2050_v43 = vmul.f32 %v7679_v15, %v8764_v62 }
 0x45b   :  { %v7683_v51 = vpop.eup %7682  ;;  %v2086_v24 = vpack.c.bf16 %v2041_v31, %v2040_v60  ;;  %v2053_v13 = vmul.f32 %v7681_v41, %v8812_v42 }
 0x45c   :  { %v7685_v5 = vpop.eup %7684  ;;  %v2051_v16 = vmul.f32 %v7683_v51, %v8820_v58 }
 0x45d   :  { %7111 = vmatpush3.bf16.msra.mxu1 %v8959_v49  ;;  %v9011_v27 = vpop.xlane.xlu0 %1968  ;;  %7084 = vmatprep.mubr.msk.bf16.mxu1 %vm1555_vm6, %v2086_v24  ;;  %v2052_v19 = vmul.f32 %v7685_v5, %v8822_v9  ;;  %v1870_v53 = vpop.xlane.xlu1 %1869 }
 0x45e   :  { %v2091_v39 = vpack.c.bf16 %v2051_v16, %v2050_v43 }
 0x45f   :  { %v2092_v46 = vpack.c.bf16 %v2053_v13, %v2052_v19 }
 0x460   :  { %7097 = vmatmul.mubr.msk.bf16.vlgmr.msra.gmra.mxu0 %vm1555_vm6, %v2091_v39 }
 0x461   :  { %v9017_v22 = vpop.xlane.xlu0 %1962  ;;  %7100 = vmatprep.mubr.msk.bf16.mxu0 %vm1555_vm6, %v2092_v46 }
 0x465   :  { %v9020_v62 = vpop.xlane.xlu0 %1965  ;;  %v1864_v58 = vpop.xlane.xlu1 %1863 }
 0x466   :  { %7686 = vrcp.f32 %v1864_v58 }
 0x469   :  { %v1867_v49 = vpop.xlane.xlu0 %1866 }
 0x46a   :  { %7688 = vrcp.f32 %v1867_v49 }
 0x46d   :  { %v1906_v26 = vpop.xlane.xlu0 %1905  ;;  %v1900_v17 = vpop.xlane.xlu1 %1899 }
 0x46e   :  { %7690 = vrcp.f32 %v1900_v17 }
 0x471   :  { %v1903_v9 = vpop.xlane.xlu0 %1902  ;;  %v1942_v24 = vpop.xlane.xlu1 %1941 }
 0x472   :  { %7692 = vrcp.f32 %v1903_v9 }
 0x473   :  { %v7687_v42 = vpop.eup %7686  ;;  %7694 = vrcp.f32 %v8968_v37 }
 0x474   :  { %v2042_v15 = vmul.f32 %v7687_v42, %v8863_v30  ;;  %7696 = vrcp.f32 %v8974_v28 }
 0x475   :  { %v1936_v25 = vpop.xlane.xlu0 %1935  ;;  %7698 = vrcp.f32 %v1870_v53 }
 0x477   :  { %v7689_v6 = vpop.eup %7688 }
 0x478   :  { %v2043_v60 = vmul.f32 %v7689_v6, %v8869_v14 }
 0x479   :  { %v1939_v31 = vpop.xlane.xlu0 %1938 }
 0x47a   :  { %v2087_v41 = vpack.c.bf16 %v2043_v60, %v2042_v15 }
 0x47b   :  { %v7691_v51 = vpop.eup %7690 }
 0x47c   :  { %7085 = vmatmul.mubr.msk.bf16.gmra.mxu1 %vm1555_vm6, %v2087_v41  ;;  %v2054_v16 = vmul.f32 %v7691_v51, %v8877_v54 }
 0x47d   :  { %v9025_v5 = vpop.xlane.xlu0 %1971 }
 0x47f   :  { %v7693_v43 = vpop.eup %7692 }
 0x480   :  { %v2055_v19 = vmul.f32 %v7693_v43, %v8879_v0  ;;  %v7695_v28 = vpop.eup %7694 }
 0x481   :  { %v1879_v13 = vpop.xlane.xlu0 %1878  ;;  %v9029_v39 = vpop.xlane.xlu1 %1974 }
 0x482   :  { %v2093_v30 = vpack.c.bf16 %v2055_v19, %v2054_v16  ;;  %7700 = vrcp.f32 %v1879_v13  ;;  %v7697_v53 = vpop.eup %7696 }
 0x483   :  { %v7699_v58 = vpop.eup %7698 }
 0x484   :  { %7101 = vmatmul.mubr.msk.bf16.gmra.mxu0 %vm1555_vm6, %v2093_v30 }
 0x485   :  { %v1873_v14 = vpop.xlane.xlu0 %1872  ;;  %v1876_v46 = vpop.xlane.xlu1 %1875 }
 0x486   :  { %7702 = vrcp.f32 %v1873_v14 }
 0x487   :  { %7704 = vrcp.f32 %v1876_v46 }
 0x488   :  { %7706 = vrcp.f32 %v8964_v47 }
 0x489   :  { %v9035_v54 = vpop.xlane.xlu1 %1977  ;;  %7708 = vrcp.f32 %v8998_v56  ;;  %v1915_v0 = vpop.xlane.xlu0 %1914 }
 0x48a   :  { %7710 = vrcp.f32 %v1930_v32  ;;  %v2044_v32 = vmul.f32 %v7699_v58, %v8848_v4 }
 0x48b   :  { %7712 = vrcp.f32 %v1906_v26  ;;  %v2061_v26 = vmul.f32 %v7697_v53, %v8778_v2 }
 0x48c   :  { %7714 = vrcp.f32 %v8994_v48 }
 0x48d   :  { %v1909_v37 = vpop.xlane.xlu1 %1908 }
 0x48e   :  { %7716 = vrcp.f32 %v1909_v37 }
 0x48f   :  { %7718 = vrcp.f32 %v8986_v1  ;;  %v7701_v17 = vpop.eup %7700 }
 0x490   :  { %7720 = vrcp.f32 %v8989_v57  ;;  %v2047_v1 = vmul.f32 %v7701_v17, %v8910_v10  ;;  %v2060_v57 = vmul.f32 %v7695_v28, %v8769_v20 }
 0x491   :  { %v9040_v49 = vpop.xlane.xlu0 %1950  ;;  %7722 = vrcp.f32 %v1939_v31 }
 0x492   :  { %7724 = vrcp.f32 %v1915_v0  ;;  %v2096_v4 = vpack.c.bf16 %v2061_v26, %v2060_v57 }
 0x493   :  { %v7703_v47 = vpop.eup %7702  ;;  %7726 = vrcp.f32 %v1936_v25 }
 0x494   :  { %v7705_v56 = vpop.eup %7704  ;;  %v2045_v48 = vmul.f32 %v7703_v47, %v8922_v40 }
 0x495   :  { %v1912_v9 = vpop.xlane.xlu0 %1911  ;;  %v2046_v42 = vmul.f32 %v7705_v56, %v8919_v12  ;;  %v7707_v6 = vpop.eup %7706 }
 0x496   :  { %7728 = vrcp.f32 %v1912_v9  ;;  %v2088_v15 = vpack.c.bf16 %v2045_v48, %v2044_v32  ;;  %v7709_v60 = vpop.eup %7708  ;;  %v2062_v43 = vmul.f32 %v7707_v6, %v8754_v44 }
 0x497   :  { %v2089_v31 = vpack.c.bf16 %v2047_v1, %v2046_v42  ;;  %v7711_v41 = vpop.eup %7710  ;;  %7730 = vrcp.f32 %v1942_v24  ;;  %v2063_v12 = vmul.f32 %v7709_v60, %v8835_v63 }
 0x498   :  { %7088 = vmatprep.mubr.msk.bf16.mxu1 %vm1555_vm6, %v2088_v15  ;;  %v7713_v40 = vpop.eup %7712  ;;  %v2064_v24 = vmul.f32 %v7711_v41, %v8839_v23 }
 0x499   :  { %v1945_v2 = vpop.xlane.xlu0 %1944  ;;  %7089 = vmatmul.mubr.msk.bf16.gmra.mxu1 %vm1555_vm6, %v2089_v31  ;;  %v7715_v25 = vpop.eup %7714  ;;  %v2056_v20 = vmul.f32 %v7713_v40, %v8873_v36  ;;  %v2097_v14 = vpack.c.bf16 %v2063_v12, %v2062_v43  ;;  %v10856_v40 = vld [vmem:[#allocation22_spill] sm:$0xff] }
 0x49a   :  { %7732 = vrcp.f32 %v1945_v2  ;;  %7112 = vmatprep.mubr.msk.bf16.mxu1 %vm1555_vm6, %v2096_v4  ;;  %v2065_v13 = vmul.f32 %v7715_v25, %v8829_v11  ;;  %v10857_v25 = vld [vmem:[#allocation24_spill] sm:$0xff] }
 0x49b   :  { %v7717_v10 = vpop.eup %7716  ;;  %7734 = vrcp.f32 %v8980_v50 }
 0x49c   :  { %v2057_v51 = vmul.f32 %v7717_v10, %v8937_v8  ;;  %v7719_v16 = vpop.eup %7718  ;;  %v2098_v0 = vpack.c.bf16 %v2065_v13, %v2064_v24  ;;  %7736 = vrcp.f32 %v9017_v22  ;;  %v10858_v24 = vld [vmem:[#allocation27_spill] sm:$0xff] }
 0x49d   :  { %v7721_v30 = vpop.eup %7720  ;;  %v2072_v58 = vmul.f32 %v7719_v16, %v8792_v45  ;;  %7738 = vrcp.f32 %v9040_v49  ;;  %v10859_v16 = vld [vmem:[#allocation25_spill] sm:$0xff] }
 0x49e   :  { %v2094_v19 = vpack.c.bf16 %v2057_v51, %v2056_v20  ;;  %v7723_v46 = vpop.eup %7722  ;;  %v2073_v44 = vmul.f32 %v7721_v30, %v8800_v7  ;;  %7740 = vrcp.f32 %v9020_v62  ;;  %v7548_v30 = vld [vmem:[%s10775_s5 + $0x8] sm:$0xff]  }
 0x49f   :  { %v7725_v37 = vpop.eup %7724  ;;  %v2067_v23 = vmul.f32 %v7723_v46, %v8899_v21  ;;  %7140 = vmatprep.subr.bf16.mxu1 %v7548_v30 }
 0x4a0   :  { %7104 = vmatprep.mubr.msk.bf16.mxu0 %vm1555_vm6, %v2094_v19  ;;  %v7727_v63 = vpop.eup %7726  ;;  %v2059_v11 = vmul.f32 %v7725_v37, %v8931_v29  ;;  %v2102_v32 = vpack.c.bf16 %v2073_v44, %v2072_v58 }
 0x4a1   :  { %7113 = vmatmul.mubr.msk.bf16.vlgmr.msra.gmra.mxu1 %vm1555_vm6, %v2097_v14  ;;  %v2066_v53 = vmul.f32 %v7727_v63, %v8895_v38  ;;  %v1987_v38 = vpop.xlane.xlu1 %1986  ;;  %v7549_v14 = vld [vmem:[%s10775_s5] sm:$0xff]  }
 0x4a2   :  { %7116 = vmatprep.mubr.msk.bf16.mxu1 %vm1555_vm6, %v2098_v0  ;;  %7141 = vmatpush3.bf16.msra.mxu1 %v7548_v30 }
 0x4a3   :  { %v7729_v36 = vpop.eup %7728  ;;  %v2099_v56 = vpack.c.bf16 %v2067_v23, %v2066_v53  ;;  %7142 = vmatprep.subr.bf16.mxu1 %v7549_v14 }
 0x4a4   :  { %v2058_v8 = vmul.f32 %v7729_v36, %v8945_v18  ;;  %v7731_v28 = vpop.eup %7730 }
 0x4a5   :  { %v2068_v48 = vmul.f32 %v7731_v28, %v8886_v35  ;;  %v2431_v26 = vpop.permute.xlu1 %2430 }
 0x4a6   :  { %v2095_v17 = vpack.c.bf16 %v2059_v11, %v2058_v8  ;;  %7143 = vmatpush3.bf16.msra.mxu1 %v7549_v14 }
 0x4a7   :  { %v7733_v47 = vpop.eup %7732 }
 0x4a8   :  { %7105 = vmatmul.mubr.msk.bf16.gmra.mxu0 %vm1555_vm6, %v2095_v17  ;;  %v2069_v21 = vmul.f32 %v7733_v47, %v8949_v55  ;;  %v7735_v18 = vpop.eup %7734 }
 0x4a9   :  { %7117 = vmatmul.mubr.msk.bf16.gmra.mxu1 %vm1555_vm6, %v2099_v56  ;;  %7128 = vmatprep.mubr.msk.bf16.mxu0 %vm1555_vm6, %v2102_v32  ;;  %v7737_v55 = vpop.eup %7736  ;;  %v2074_v1 = vmul.f32 %v7735_v18, %v8782_v3  ;;  %v10855_v3 = vld [vmem:[#allocation26_spill] sm:$0xff] }
 0x4aa   :  { %v2100_v7 = vpack.c.bf16 %v2069_v21, %v2068_v48  ;;  %v7739_v50 = vpop.eup %7738  ;;  %v2075_v9 = vmul.f32 %v7737_v55, %v8852_v34 }
 0x4ab   :  { %v7741_v49 = vpop.eup %7740 }
 0x4ac   :  { %7120 = vmatprep.mubr.msk.bf16.mxu1 %vm1555_vm6, %v2100_v7  ;;  %v2076_v42 = vmul.f32 %v7741_v49, %v8860_v59  ;;  %v2103_v57 = vpack.c.bf16 %v2075_v9, %v2074_v1  ;;  %v10854_v59 = vld [vmem:[#allocation23_spill] sm:$0xff] }
 0x4c3   :  { %v1948_v45 = vpop.xlane.xlu0 %1947 }
 0x4c4   :  { %7742 = vrcp.f32 %v1948_v45 }
 0x4c5   :  { %7744 = vrcp.f32 %v9011_v27 }
 0x4c6   :  { %7746 = vrcp.f32 %v9029_v39 }
 0x4c7   :  { %v1981_v35 = vpop.xlane.xlu0 %1980 }
 0x4c8   :  { %7748 = vrcp.f32 %v1981_v35 }
 0x4c9   :  { %7750 = vrcp.f32 %v9025_v5 }
 0x4ca   :  { %7752 = vrcp.f32 %v9035_v54  ;;  %v2071_v54 = vmul.f32 %v7739_v50, %v8941_v52 }
 0x4cb   :  { %v1984_v29 = vpop.xlane.xlu0 %1983 }
 0x4cc   :  { %7754 = vrcp.f32 %v1984_v29 }
 0x4cd   :  { %7756 = vrcp.f32 %v1987_v38 }
 0x4cf   :  { %v2433_v22 = vpop.permute.xlu0 %2432 }
 0x4d0   :  { %7487 = vmatprep.subr.msk.bf16.mxu0 %vm2131_vm4, %v2433_v22  ;;  %v2454_v62 = vsel %vm2131_vm4, %v2433_v22, 0 }
 0x4d1   :  { %v7743_v27 = vpop.eup %7742  ;;  %7125 = vmatpush3.bf16.msra.mxu0 %v2454_v62 }
 0x4d2   :  { %v7745_v39 = vpop.eup %7744  ;;  %7126 = vmatprep.subr.bf16.mxu0 %v2431_v26  ;;  %v2070_v5 = vmul.f32 %v7743_v27, %v8966_v61 }
 0x4d3   :  { %v2077_v15 = vmul.f32 %v7745_v39, %v8844_v33  ;;  %v7747_v60 = vpop.eup %7746 }
 0x4d4   :  { %v2101_v6 = vpack.c.bf16 %v2071_v54, %v2070_v5  ;;  %v2079_v41 = vmul.f32 %v7747_v60, %v10854_v59 }
 0x4d5   :  { %7127 = vmatpush3.bf16.msra.mxu0 %v2431_v26  ;;  %v2104_v34 = vpack.c.bf16 %v2077_v15, %v2076_v42  ;;  %v7749_v31 = vpop.eup %7748 }
 0x4d6   :  { %7121 = vmatmul.mubr.msk.bf16.gmra.mxu1 %vm1555_vm6, %v2101_v6  ;;  %v7751_v61 = vpop.eup %7750  ;;  %v2081_v4 = vmul.f32 %v7749_v31, %v10855_v3 }
 0x4d7   :  { %v7753_v52 = vpop.eup %7752  ;;  %v2078_v2 = vmul.f32 %v7751_v61, %v10856_v40 }
 0x4d8   :  { %7129 = vmatmul.mubr.msk.bf16.vlgmr.msra.gmra.mxu0 %vm1555_vm6, %v2103_v57  ;;  %v2080_v33 = vmul.f32 %v7753_v52, %v10857_v25 }
 0x4d9   :  { %7132 = vmatprep.mubr.msk.bf16.mxu0 %vm1555_vm6, %v2104_v34  ;;  %v2105_v10 = vpack.c.bf16 %v2079_v41, %v2078_v2  ;;  %v7755_v12 = vpop.eup %7754 }
 0x4da   :  { %v2106_v20 = vpack.c.bf16 %v2081_v4, %v2080_v33  ;;  %v7757_v51 = vpop.eup %7756  ;;  %v2082_v43 = vmul.f32 %v7755_v12, %v10858_v24 }
 0x4db   :  { %v2083_v19 = vmul.f32 %v7757_v51, %v10859_v16 }
 0x4dd   :  { %v2107_v13 = vpack.c.bf16 %v2083_v19, %v2082_v43 }
 0x4e0   :  { %7133 = vmatmul.mubr.msk.bf16.gmra.mxu0 %vm1555_vm6, %v2105_v10 }
 0x4e1   :  { %7136 = vmatprep.mubr.msk.bf16.mxu0 %vm1555_vm6, %v2106_v20 }
 0x4e8   :  { %7137 = vmatmul.mubr.msk.bf16.gmra.mxu0 %vm1555_vm6, %v2107_v13 }
 0x518   :  { %v7082_v46 = vpop.f32.mrf.mxu1 }
 0x51a   :  { %v2169_v0 = vpop.f32.mrf.mxu1 }
 0x51c   :  { %v7083_v37 = vpop.f32.mrf.mxu1 }
 0x51d   :  { %v2537_v21 = vsel %vm432_vm3, %v2169_v0, %v7083_v37 }
 0x51e   :  { %v2172_v63 = vpop.f32.mrf.mxu1 }
 0x520   :  { %v7098_v23 = vpop.f32.mrf.mxu0 }
 0x522   :  { %v2276_v8 = vpop.f32.mrf.mxu0 }
 0x524   :  { %v7099_v28 = vpop.f32.mrf.mxu0 }
 0x525   :  { %v2540_v42 = vsel %vm432_vm3, %v2276_v8, %v7099_v28 }
 0x526   :  { %v2279_v58 = vpop.f32.mrf.mxu0 }
 0x53c   :  { %v7086_v36 = vpop.f32.mrf.mxu1 }
 0x53d   :  { %v2550_v45 = vsel %vm2549_vm7, %v2537_v21, %v7086_v36 }
 0x53e   :  { %v2185_v44 = vpop.f32.mrf.mxu1 }
 0x53f   :  { %v2538_v32 = vsel %vm432_vm3, %v2172_v63, %v2185_v44 }
 0x540   :  { %v7087_v11 = vpop.f32.mrf.mxu1 }
 0x541   :  { %v2551_v35 = vsel %vm2549_vm7, %v2538_v32, %v7087_v11 }
 0x542   :  { %v2188_v53 = vpop.f32.mrf.mxu1 }
 0x543   :  { %v2539_v26 = vsel %vm432_vm3, %v7082_v46, %v2188_v53 }
 0x544   :  { %v7102_v47 = vpop.f32.mrf.mxu0 }
 0x545   :  { %v2553_v1 = vsel %vm2549_vm7, %v2540_v42, %v7102_v47 }
 0x546   :  { %v2292_v7 = vpop.f32.mrf.mxu0 }
 0x547   :  { %v2541_v9 = vsel %vm432_vm3, %v2279_v58, %v2292_v7 }
 0x548   :  { %v7103_v50 = vpop.f32.mrf.mxu0 }
 0x549   :  { %v2554_v57 = vsel %vm2549_vm7, %v2541_v9, %v7103_v50 }
 0x54a   :  { %v2295_v22 = vpop.f32.mrf.mxu0 }
 0x54b   :  { %v2542_v62 = vsel %vm432_vm3, %v7098_v23, %v2295_v22  ;;  %v10860_v22 = vld [vmem:[#allocation5_spill] sm:$0xff] }
 0x559   :  { %v7090_v17 = vpop.f32.mrf.mxu1 }
 0x55a   :  { %v2563_v29 = vsel %vm1555_vm6, %v2551_v35, %v7090_v17 }
 0x55b   :  { %v2201_v56 = vpop.f32.mrf.mxu1 }
 0x55c   :  { %v2552_v5 = vsel %vm2549_vm7, %v2539_v26, %v2201_v56 }
 0x55d   :  { %v7091_v48 = vpop.f32.mrf.mxu1 }
 0x55e   :  { %v2564_v60 = vsel %vm1555_vm6, %v2552_v5, %v7091_v48 }
 0x55f   :  { %v2204_v38 = vpop.f32.mrf.mxu1 }
 0x560   :  { %v2562_v18 = vsel %vm1555_vm6, %v2550_v45, %v2204_v38 }
 0x561   :  { %v2574_v55 = vpack.c.bf16 %v2563_v29, %v2562_v18  ;;  %v7114_v59 = vpop.f32.mrf.mxu1 }
 0x563   :  { %7144 = vmatprep.mubr.msk.bf16.mxu1 %vm318_vm2, %v2574_v55  ;;  %v2383_v41 = vpop.f32.mrf.mxu1 }
 0x565   :  { %v7115_v3 = vpop.f32.mrf.mxu1 }
 0x566   :  { %v2543_v16 = vsel %vm432_vm3, %v2383_v41, %v7115_v3 }
 0x567   :  { %v2386_v4 = vpop.f32.mrf.mxu1 }
 0x568   :  { %v7106_v49 = vpop.f32.mrf.mxu0 }
 0x569   :  { %v2566_v31 = vsel %vm1555_vm6, %v2554_v57, %v7106_v49  ;;  %v7118_v40 = vpop.f32.mrf.mxu1  ;;  %v10809_v49 = vsub.s32 5, %v10860_v22  ;;  %v10862_v57 = vld [vmem:[#allocation8_spill] sm:$0xff] }
 0x56a   :  { %v2308_v27 = vpop.f32.mrf.mxu0  ;;  %v2556_v19 = vsel %vm2549_vm7, %v2543_v16, %v7118_v40 }
 0x56b   :  { %v2555_v39 = vsel %vm2549_vm7, %v2542_v62, %v2308_v27  ;;  %v2399_v2 = vpop.f32.mrf.mxu1  ;;  %v9153_v27 = vld [vmem:[%s10772_s2] sm:$0xff] }
 0x56c   :  { %v7107_v54 = vpop.f32.mrf.mxu0  ;;  %v2544_v51 = vsel %vm432_vm3, %v2386_v4, %v2399_v2  ;;  %v2583_v26 = vrot.slane %v9153_v27, %v10809_v49 }
 0x56d   :  { %v2567_v6 = vsel %vm1555_vm6, %v2555_v39, %v7107_v54  ;;  %v7119_v25 = vpop.f32.mrf.mxu1  ;;  %v10861_v54 = vld [vmem:[#allocation9_spill] sm:$0xff] }
 0x56e   :  { %v2311_v15 = vpop.f32.mrf.mxu0  ;;  %v2576_v52 = vpack.c.bf16 %v2567_v6, %v2566_v31  ;;  %v2557_v13 = vsel %vm2549_vm7, %v2544_v51, %v7119_v25 }
 0x56f   :  { %v2565_v34 = vsel %vm1555_vm6, %v2553_v1, %v2311_v15  ;;  %v2402_v33 = vpop.f32.mrf.mxu1 }
 0x570   :  { %v2575_v61 = vpack.c.bf16 %v2565_v34, %v2564_v60  ;;  %v2545_v58 = vsel %vm432_vm3, %v7114_v59, %v2402_v33  ;;  %v10864_v59 = vld [vmem:[#allocation11_spill] sm:$0xff] }
 0x572   :  { %7145 = vmatmul.mubr.msk.bf16.vlgmr.msra.gmra.mxu1 %vm318_vm2, %v2575_v61  ;;  %v10863_v61 = vld [vmem:[#allocation10_spill] sm:$0xff] }
 0x573   :  { %7148 = vmatprep.mubr.msk.bf16.mxu1 %vm318_vm2, %v2576_v52 }
 0x596   :  { %v7122_v10 = vpop.f32.mrf.mxu1 }
 0x597   :  { %v2569_v46 = vsel %vm1555_vm6, %v2557_v13, %v7122_v10 }
 0x598   :  { %v2415_v12 = vpop.f32.mrf.mxu1  ;;  %v7130_v20 = vpop.f32.mrf.mxu0 }
 0x599   :  { %v2558_v47 = vsel %vm2549_vm7, %v2545_v58, %v2415_v12  ;;  %v10869_v58 = vld [vmem:[#allocation18_spill] sm:$0xff] }
 0x59a   :  { %v7123_v24 = vpop.f32.mrf.mxu1  ;;  %v2490_v43 = vpop.f32.mrf.mxu0 }
 0x59b   :  { %v2570_v35 = vsel %vm1555_vm6, %v2558_v47, %v7123_v24 }
 0x59c   :  { %v2418_v30 = vpop.f32.mrf.mxu1  ;;  %v7131_v14 = vpop.f32.mrf.mxu0 }
 0x59d   :  { %v2568_v0 = vsel %vm1555_vm6, %v2556_v19, %v2418_v30  ;;  %v2546_v48 = vsel %vm432_vm3, %v2490_v43, %v7131_v14  ;;  %v10866_v43 = vld [vmem:[#allocation15_spill] sm:$0xff]  ;;  %v10867_v14 = vld [vmem:[#allocation14_spill] sm:$0xff] }
 0x59e   :  { %v2577_v37 = vpack.c.bf16 %v2569_v46, %v2568_v0  ;;  %v2493_v63 = vpop.f32.mrf.mxu0  ;;  %v10868_v0 = vld [vmem:[#allocation12_spill] sm:$0xff] }
 0x5a0   :  { %v7134_v36 = vpop.f32.mrf.mxu0  ;;  %7149 = vmatmul.mubr.msk.bf16.gmra.mxu1 %vm318_vm2, %v2577_v37 }
 0x5a1   :  { %v2559_v21 = vsel %vm2549_vm7, %v2546_v48, %v7134_v36 }
 0x5a2   :  { %v2506_v23 = vpop.f32.mrf.mxu0 }
 0x5a3   :  { %v2547_v56 = vsel %vm432_vm3, %v2493_v63, %v2506_v23 }
 0x5a4   :  { %v7135_v44 = vpop.f32.mrf.mxu0 }
 0x5a5   :  { %v2560_v38 = vsel %vm2549_vm7, %v2547_v56, %v7135_v44  ;;  %v10870_v56 = vld [vmem:[#allocation16_spill] sm:$0xff] }
 0x5a6   :  { %v2509_v8 = vpop.f32.mrf.mxu0 }
 0x5a7   :  { %v2548_v28 = vsel %vm432_vm3, %v7130_v20, %v2509_v8  ;;  %v10865_v20 = vld [vmem:[#allocation13_spill] sm:$0xff] }
 0x5a8   :  { %v7138_v11 = vpop.f32.mrf.mxu0 }
 0x5a9   :  { %v2572_v18 = vsel %vm1555_vm6, %v2560_v38, %v7138_v11  ;;  %v10872_v38 = vld [vmem:[#allocation17_spill] sm:$0xff] }
 0x5aa   :  { %v2522_v53 = vpop.f32.mrf.mxu0 }
 0x5ab   :  { %v2561_v17 = vsel %vm2549_vm7, %v2548_v28, %v2522_v53 }
 0x5ac   :  { %v7139_v32 = vpop.f32.mrf.mxu0 }
 0x5ad   :  { %v2573_v7 = vsel %vm1555_vm6, %v2561_v17, %v7139_v32 }
 0x5ae   :  { %v2525_v45 = vpop.f32.mrf.mxu0  ;;  %v2579_v50 = vpack.c.bf16 %v2573_v7, %v2572_v18 }
 0x5af   :  { %v2571_v29 = vsel %vm1555_vm6, %v2559_v21, %v2525_v45  ;;  %v10871_v45 = vld [vmem:[#allocation19_spill] sm:$0xff] }
 0x5b0   :  { %v2578_v55 = vpack.c.bf16 %v2571_v29, %v2570_v35 }
 0x5b2   :  { %7152 = vmatprep.mubr.msk.bf16.mxu1 %vm318_vm2, %v2578_v55 }
 0x5b3   :  { %7153 = vmatmul.mubr.msk.bf16.gmra.mxu1 %vm318_vm2, %v2579_v50 }
 0x632   :  { %v7146_v62 = vpop.f32.mrf.mxu1 }
 0x633   :  { %v2657_v15 = vadd.f32 %v7146_v62, %v2583_v26 }
 0x634   :  { %v2648_v39 = vpop.f32.mrf.mxu1 }
 0x635   :  { %v2649_v9 = vadd.f32 %v2648_v39, %v2583_v26  ;;  %v2697_v41 = vadd.f32 %v2657_v15, %v10864_v59 }
 0x636   :  { %v7147_v5 = vpop.f32.mrf.mxu1 }
 0x637   :  { %v2695_v42 = vadd.f32 %v2649_v9, %v10861_v54  ;;  %v2660_v1 = vadd.f32 %v7147_v5, %v2583_v26  ;;  %v2713_v40 = vsel %vm318_vm2, %v2697_v41, 0.0 }
 0x638   :  { %v2651_v6 = vpop.f32.mrf.mxu1 }
 0x639   :  { %v2698_v60 = vadd.f32 %v2660_v1, %v10862_v57  ;;  %v2652_v34 = vadd.f32 %v2651_v6, %v2583_v26  ;;  %v2707_v31 = vsel %vm318_vm2, %v2695_v42, 0.0 }
 0x63a   :  { %2708 = vadd.xlane.f32.xlu1 %v2707_v31 }
 0x63b   :  { %v2696_v52 = vadd.f32 %v2652_v34, %v10863_v61  ;;  %v2716_v4 = vsel %vm318_vm2, %v2698_v60, 0.0 }
 0x63d   :  { %v2710_v3 = vsel %vm318_vm2, %v2696_v52, 0.0 }
 0x63e   :  { %2711 = vadd.xlane.f32.xlu0 %v2710_v3  ;;  %2717 = vadd.xlane.f32.xlu1 %v2716_v4 }
 0x642   :  { %2714 = vadd.xlane.f32.xlu0 %v2713_v40 }
 0x660   :  { %v7150_v2 = vpop.f32.mrf.mxu1 }
 0x661   :  { %v2673_v33 = vadd.f32 %v7150_v2, %v2583_v26 }
 0x662   :  { %v2664_v25 = vpop.f32.mrf.mxu1 }
 0x663   :  { %v2665_v10 = vadd.f32 %v2664_v25, %v2583_v26  ;;  %v9170_v16 = vadd.f32 %v2673_v33, %v10866_v43  ;;  %v7551_v33 = vld [vmem:[%s10776_s6] sm:$0xff]  }
 0x664   :  { %v7151_v12 = vpop.f32.mrf.mxu1 }
 0x665   :  { %v9167_v51 = vadd.f32 %v2665_v10, %v10865_v20  ;;  %v2676_v19 = vadd.f32 %v7151_v12, %v2583_v26  ;;  %v2725_v63 = vsel %vm318_vm2, %v9170_v16, 0.0 }
 0x666   :  { %v2667_v24 = vpop.f32.mrf.mxu1 }
 0x667   :  { %v2668_v13 = vadd.f32 %v2667_v24, %v2583_v26  ;;  %v2719_v30 = vsel %vm318_vm2, %v9167_v51, 0.0  ;;  %v9178_v37 = vadd.f32 %v2676_v19, %v10868_v0 }
 0x668   :  { %2720 = vadd.xlane.f32.xlu0 %v2719_v30 }
 0x669   :  { %v9175_v46 = vadd.f32 %v2668_v13, %v10867_v14  ;;  %v2728_v23 = vsel %vm318_vm2, %v9178_v37, 0.0 }
 0x66b   :  { %v2722_v36 = vsel %vm318_vm2, %v9175_v46, 0.0 }
 0x66c   :  { %2726 = vadd.xlane.f32.xlu0 %v2725_v63  ;;  %2723 = vadd.xlane.f32.xlu1 %v2722_v36 }
 0x670   :  { %2729 = vadd.xlane.f32.xlu1 %v2728_v23 }
 0x673   :  { %v7154_v44 = vpop.f32.mrf.mxu1 }
 0x674   :  { %v2689_v11 = vadd.f32 %v7154_v44, %v2583_v26 }
 0x675   :  { %v2680_v8 = vpop.f32.mrf.mxu1 }
 0x676   :  { %v2681_v28 = vadd.f32 %v2680_v8, %v2583_v26  ;;  %v9190_v32 = vadd.f32 %v2689_v11, %v10870_v56 }
 0x677   :  { %v7155_v53 = vpop.f32.mrf.mxu1 }
 0x678   :  { %v9187_v17 = vadd.f32 %v2681_v28, %v10869_v58  ;;  %v2692_v48 = vadd.f32 %v7155_v53, %v2583_v26  ;;  %v2737_v55 = vsel %vm318_vm2, %v9190_v32, 0.0 }
 0x679   :  { %v2683_v47 = vpop.f32.mrf.mxu1 }
 0x67a   :  { %v2684_v21 = vadd.f32 %v2683_v47, %v2583_v26  ;;  %v2731_v7 = vsel %vm318_vm2, %v9187_v17, 0.0  ;;  %v9198_v29 = vadd.f32 %v2692_v48, %v10872_v38 }
 0x67b   :  { %2732 = vadd.xlane.f32.xlu0 %v2731_v7 }
 0x67c   :  { %v9195_v35 = vadd.f32 %v2684_v21, %v10871_v45  ;;  %v2740_v50 = vsel %vm318_vm2, %v9198_v29, 0.0 }
 0x67e   :  { %v2734_v18 = vsel %vm318_vm2, %v9195_v35, 0.0 }
 0x67f   :  { %2735 = vadd.xlane.f32.xlu1 %v2734_v18  ;;  %2738 = vadd.xlane.f32.xlu0 %v2737_v55 }
 0x683   :  { %2741 = vadd.xlane.f32.xlu1 %v2740_v50 }
 0x6c3   :  { %v2709_v62 = vpop.xlane.xlu1 %2708 }
 0x6c4   :  { %v2744_v26 = vmul.f32 0.03125, %v2709_v62 }
 0x6c6   :  { %v9206_v39 = vsub.f32 %v2695_v42, %v2744_v26 }
 0x6c7   :  { %v2712_v9 = vpop.xlane.xlu0 %2711  ;;  %v2718_v5 = vpop.xlane.xlu1 %2717 }
 0x6c8   :  { %v2745_v54 = vmul.f32 0.03125, %v2712_v9  ;;  %v2747_v1 = vmul.f32 0.03125, %v2718_v5  ;;  %v2768_v6 = vmul.f32 %v9206_v39, %v9206_v39  ;;  %v7552_v9 = vld [vmem:[%s10777_s7 + $0x18] sm:$0xff]  }
 0x6c9   :  { %7172 = vmatprep.subr.bf16.mxu1 %v7552_v9 }
 0x6ca   :  { %v9210_v15 = vsub.f32 %v2696_v52, %v2745_v54  ;;  %v9212_v57 = vsub.f32 %v2698_v60, %v2747_v1  ;;  %v2780_v34 = vsel %vm318_vm2, %v2768_v6, 0.0  ;;  %7173 = vmatpush3.bf16.msra.mxu1 %v7552_v9 }
 0x6cb   :  { %v2715_v31 = vpop.xlane.xlu0 %2714  ;;  %2781 = vadd.xlane.f32.xlu0 %v2780_v34 }
 0x6cc   :  { %v2746_v61 = vmul.f32 0.03125, %v2715_v31  ;;  %v2769_v42 = vmul.f32 %v9210_v15, %v9210_v15  ;;  %v2771_v4 = vmul.f32 %v9212_v57, %v9212_v57 }
 0x6ce   :  { %v9217_v59 = vsub.f32 %v2697_v41, %v2746_v61  ;;  %v2783_v3 = vsel %vm318_vm2, %v2769_v42, 0.0  ;;  %v2789_v40 = vsel %vm318_vm2, %v2771_v4, 0.0  ;;  %v7550_v41 = vld [vmem:[%s10776_s6 + $0x8] sm:$0xff]  }
 0x6cf   :  { %2784 = vadd.xlane.f32.xlu1 %v2783_v3  ;;  %7156 = vmatprep.subr.bf16.mxu0 %v7550_v41 }
 0x6d0   :  { %v2770_v60 = vmul.f32 %v9217_v59, %v9217_v59  ;;  %7157 = vmatpush3.bf16.msra.mxu0 %v7550_v41  ;;  %v10873_v41 = vld [vmem:[#allocation6_spill] sm:$0xff] }
 0x6d1   :  { %7158 = vmatprep.subr.bf16.mxu0 %v7551_v33 }
 0x6d2   :  { %v2786_v52 = vsel %vm318_vm2, %v2770_v60, 0.0 }
 0x6d3   :  { %2787 = vadd.xlane.f32.xlu0 %v2786_v52  ;;  %2790 = vadd.xlane.f32.xlu1 %v2789_v40  ;;  %v9286_v52 = vld [vmem:[%s10772_s2 + $0x8] sm:$0xff] }
 0x6d4   :  { %7159 = vmatpush3.bf16.msra.mxu0 %v7551_v33 }
 0x6f1   :  { %v2721_v2 = vpop.xlane.xlu0 %2720 }
 0x6f2   :  { %v2748_v25 = vmul.f32 0.03125, %v2721_v2  ;;  %v9290_v2 = vrot.slane %v9286_v52, %v10873_v41 }
 0x6f4   :  { %v9233_v10 = vsub.f32 %v9167_v51, %v2748_v25  ;;  %v9293_v25 = vsub.s32 1, %v10860_v22 }
 0x6f5   :  { %v2727_v12 = vpop.xlane.xlu0 %2726  ;;  %v2724_v20 = vpop.xlane.xlu1 %2723 }
 0x6f6   :  { %v2750_v24 = vmul.f32 0.03125, %v2727_v12  ;;  %v2749_v43 = vmul.f32 0.03125, %v2724_v20  ;;  %v2772_v19 = vmul.f32 %v9233_v10, %v9233_v10  ;;  %10874 = vst [vmem:[#allocation20_spill] sm:$0xff] %v9293_v25  ;;  %v9298_v20 = vrot.slane %v9286_v52, %v9293_v25 }
 0x6f8   :  { %v9238_v13 = vsub.f32 %v9170_v16, %v2750_v24  ;;  %v9241_v30 = vsub.f32 %v9175_v46, %v2749_v43  ;;  %v2792_v14 = vsel %vm318_vm2, %v2772_v19, 0.0 }
 0x6f9   :  { %2793 = vadd.xlane.f32.xlu0 %v2792_v14  ;;  %v2730_v51 = vpop.xlane.xlu1 %2729 }
 0x6fa   :  { %v2751_v0 = vmul.f32 0.03125, %v2730_v51  ;;  %v2774_v63 = vmul.f32 %v9238_v13, %v9238_v13  ;;  %v2773_v36 = vmul.f32 %v9241_v30, %v9241_v30 }
 0x6fc   :  { %v9249_v23 = vsub.f32 %v9178_v37, %v2751_v0  ;;  %v2798_v16 = vsel %vm318_vm2, %v2774_v63, 0.0  ;;  %v2795_v44 = vsel %vm318_vm2, %v2773_v36, 0.0 }
 0x6fd   :  { %2799 = vadd.xlane.f32.xlu0 %v2798_v16  ;;  %2796 = vadd.xlane.f32.xlu1 %v2795_v44 }
 0x6fe   :  { %v2775_v46 = vmul.f32 %v9249_v23, %v9249_v23 }
 0x700   :  { %v2801_v8 = vsel %vm318_vm2, %v2775_v46, 0.0 }
 0x701   :  { %2802 = vadd.xlane.f32.xlu1 %v2801_v8 }
 0x704   :  { %v2733_v11 = vpop.xlane.xlu0 %2732 }
 0x705   :  { %v2752_v28 = vmul.f32 0.03125, %v2733_v11 }
 0x707   :  { %v9257_v53 = vsub.f32 %v9187_v17, %v2752_v28 }
 0x708   :  { %v2739_v58 = vpop.xlane.xlu0 %2738  ;;  %v2736_v37 = vpop.xlane.xlu1 %2735 }
 0x709   :  { %v2754_v47 = vmul.f32 0.03125, %v2739_v58  ;;  %v2753_v56 = vmul.f32 0.03125, %v2736_v37  ;;  %v2776_v48 = vmul.f32 %v9257_v53, %v9257_v53 }
 0x70b   :  { %v9262_v21 = vsub.f32 %v9190_v32, %v2754_v47  ;;  %v9265_v7 = vsub.f32 %v9195_v35, %v2753_v56  ;;  %v2804_v45 = vsel %vm318_vm2, %v2776_v48, 0.0 }
 0x70c   :  { %2805 = vadd.xlane.f32.xlu0 %v2804_v45  ;;  %v2742_v38 = vpop.xlane.xlu1 %2741 }
 0x70d   :  { %v2755_v18 = vmul.f32 0.03125, %v2742_v38  ;;  %v2778_v17 = vmul.f32 %v9262_v21, %v9262_v21  ;;  %v2777_v55 = vmul.f32 %v9265_v7, %v9265_v7 }
 0x70f   :  { %v9273_v50 = vsub.f32 %v9198_v29, %v2755_v18  ;;  %v2810_v32 = vsel %vm318_vm2, %v2778_v17, 0.0  ;;  %v2807_v62 = vsel %vm318_vm2, %v2777_v55, 0.0 }
 0x710   :  { %2811 = vadd.xlane.f32.xlu0 %v2810_v32  ;;  %2808 = vadd.xlane.f32.xlu1 %v2807_v62 }
 0x711   :  { %v2779_v35 = vmul.f32 %v9273_v50, %v9273_v50 }
 0x713   :  { %v2813_v26 = vsel %vm318_vm2, %v2779_v35, 0.0 }
 0x714   :  { %2814 = vadd.xlane.f32.xlu1 %v2813_v26 }
 0x754   :  { %v2782_v29 = vpop.xlane.xlu0 %2781 }
 0x755   :  { %v2816_v5 = vmul.f32 0.03125, %v2782_v29 }
 0x757   :  { %v2828_v54 = vadd.f32 1e-05, %v2816_v5 }
 0x758   :  { %v2785_v1 = vpop.xlane.xlu1 %2784 }
 0x759   :  { %7758 = vrsqrt.f32 %v2828_v54  ;;  %v2817_v6 = vmul.f32 0.03125, %v2785_v1 }
 0x75b   :  { %v2829_v34 = vadd.f32 1e-05, %v2817_v6 }
 0x75c   :  { %v2788_v31 = vpop.xlane.xlu0 %2787  ;;  %v2791_v61 = vpop.xlane.xlu1 %2790 }
 0x75d   :  { %7760 = vrsqrt.f32 %v2829_v34  ;;  %v2818_v42 = vmul.f32 0.03125, %v2788_v31  ;;  %v2819_v3 = vmul.f32 0.03125, %v2791_v61 }
 0x75f   :  { %v2830_v4 = vadd.f32 1e-05, %v2818_v42  ;;  %v2831_v60 = vadd.f32 1e-05, %v2819_v3 }
 0x761   :  { %7762 = vrsqrt.f32 %v2830_v4 }
 0x762   :  { %7764 = vrsqrt.f32 %v2831_v60 }
 0x766   :  { %v7759_v40 = vpop.eup %7758 }
 0x767   :  { %v2852_v33 = vmul.f32 %v7759_v40, %v9206_v39 }
 0x769   :  { %v2868_v43 = vmul.f32 %v9290_v2, %v2852_v33 }
 0x76a   :  { %v7761_v12 = vpop.eup %7760 }
 0x76b   :  { %v2853_v24 = vmul.f32 %v7761_v12, %v9210_v15  ;;  %v9305_v63 = vadd.f32 %v9298_v20, %v2868_v43 }
 0x76d   :  { %v2869_v19 = vmul.f32 %v9290_v2, %v2853_v24 }
 0x76e   :  { %v7763_v14 = vpop.eup %7762 }
 0x76f   :  { %v7765_v51 = vpop.eup %7764  ;;  %v2854_v0 = vmul.f32 %v7763_v14, %v9217_v59  ;;  %v9308_v39 = vadd.f32 %v9298_v20, %v2869_v19 }
 0x770   :  { %v2855_v36 = vmul.f32 %v7765_v51, %v9212_v57 }
 0x771   :  { %v2870_v16 = vmul.f32 %v9290_v2, %v2854_v0  ;;  %v2896_v15 = vpack.c.bf16 %v9308_v39, %v9305_v63 }
 0x772   :  { %v2871_v44 = vmul.f32 %v9290_v2, %v2855_v36 }
 0x773   :  { %7160 = vmatprep.mubr.msk.bf16.mxu0 %vm318_vm2, %v2896_v15  ;;  %v9317_v46 = vadd.f32 %v9298_v20, %v2870_v16 }
 0x774   :  { %v9320_v59 = vadd.f32 %v9298_v20, %v2871_v44 }
 0x776   :  { %v2897_v8 = vpack.c.bf16 %v9320_v59, %v9317_v46 }
 0x778   :  { %7161 = vmatmul.mubr.msk.bf16.vlgmr.msra.gmra.mxu0 %vm318_vm2, %v2897_v8 }
 0x782   :  { %v2794_v57 = vpop.xlane.xlu0 %2793 }
 0x783   :  { %v2820_v11 = vmul.f32 0.03125, %v2794_v57 }
 0x785   :  { %v2832_v28 = vadd.f32 1e-05, %v2820_v11 }
 0x786   :  { %v2800_v58 = vpop.xlane.xlu0 %2799  ;;  %v2797_v37 = vpop.xlane.xlu1 %2796 }
 0x787   :  { %7766 = vrsqrt.f32 %v2832_v28  ;;  %v2822_v47 = vmul.f32 0.03125, %v2800_v58  ;;  %v2821_v56 = vmul.f32 0.03125, %v2797_v37 }
 0x789   :  { %v2834_v48 = vadd.f32 1e-05, %v2822_v47  ;;  %v2833_v45 = vadd.f32 1e-05, %v2821_v56 }
 0x78a   :  { %v2803_v38 = vpop.xlane.xlu1 %2802 }
 0x78b   :  { %7768 = vrsqrt.f32 %v2834_v48  ;;  %v2823_v18 = vmul.f32 0.03125, %v2803_v38  ;;  %v10808_v38 = vsub.s32 6, %v10860_v22 }
 0x78c   :  { %7770 = vrsqrt.f32 %v2833_v45  ;;  %v7554_v45 = vld [vmem:[%s10777_s7 + $0x8] sm:$0xff]  }
 0x78d   :  { %v2835_v17 = vadd.f32 1e-05, %v2823_v18 }
 0x78f   :  { %7772 = vrsqrt.f32 %v2835_v17  ;;  %v2905_v17 = vrot.slane %v9153_v27, %v10808_v38 }
 0x794   :  { %v7767_v55 = vpop.eup %7766 }
 0x795   :  { %v2806_v32 = vpop.xlane.xlu0 %2805  ;;  %v2856_v62 = vmul.f32 %v7767_v55, %v9233_v10 }
 0x796   :  { %v2824_v35 = vmul.f32 0.03125, %v2806_v32 }
 0x797   :  { %v2872_v1 = vmul.f32 %v9290_v2, %v2856_v62 }
 0x798   :  { %v7769_v26 = vpop.eup %7768  ;;  %v2836_v9 = vadd.f32 1e-05, %v2824_v35 }
 0x799   :  { %v7771_v29 = vpop.eup %7770  ;;  %v2812_v5 = vpop.xlane.xlu0 %2811  ;;  %v2858_v6 = vmul.f32 %v7769_v26, %v9238_v13  ;;  %v9333_v24 = vadd.f32 %v9298_v20, %v2872_v1 }
 0x79a   :  { %v2809_v54 = vpop.xlane.xlu1 %2808  ;;  %7774 = vrsqrt.f32 %v2836_v9  ;;  %v2826_v34 = vmul.f32 0.03125, %v2812_v5  ;;  %v2857_v61 = vmul.f32 %v7771_v29, %v9241_v30 }
 0x79b   :  { %v2825_v31 = vmul.f32 0.03125, %v2809_v54  ;;  %v2874_v33 = vmul.f32 %v9290_v2, %v2858_v6 }
 0x79c   :  { %v7773_v42 = vpop.eup %7772  ;;  %v2838_v3 = vadd.f32 1e-05, %v2826_v34  ;;  %v2873_v10 = vmul.f32 %v9290_v2, %v2857_v61 }
 0x79d   :  { %v2837_v4 = vadd.f32 1e-05, %v2825_v31  ;;  %v2859_v40 = vmul.f32 %v7773_v42, %v9249_v23  ;;  %v9342_v14 = vadd.f32 %v9298_v20, %v2874_v33 }
 0x79e   :  { %v2815_v60 = vpop.xlane.xlu1 %2814  ;;  %7776 = vrsqrt.f32 %v2838_v3  ;;  %v9336_v13 = vadd.f32 %v9298_v20, %v2873_v10 }
 0x79f   :  { %v2827_v12 = vmul.f32 0.03125, %v2815_v60  ;;  %7778 = vrsqrt.f32 %v2837_v4  ;;  %v2875_v30 = vmul.f32 %v9290_v2, %v2859_v40 }
 0x7a0   :  { %v2898_v19 = vpack.c.bf16 %v9336_v13, %v9333_v24 }
 0x7a1   :  { %v2839_v43 = vadd.f32 1e-05, %v2827_v12  ;;  %v9345_v23 = vadd.f32 %v9298_v20, %v2875_v30 }
 0x7a2   :  { %7164 = vmatprep.mubr.msk.bf16.mxu0 %vm318_vm2, %v2898_v19 }
 0x7a3   :  { %7780 = vrsqrt.f32 %v2839_v43  ;;  %v2899_v51 = vpack.c.bf16 %v9345_v23, %v9342_v14 }
 0x7a5   :  { %7165 = vmatmul.mubr.msk.bf16.gmra.mxu0 %vm318_vm2, %v2899_v51 }
 0x7a7   :  { %v7775_v0 = vpop.eup %7774 }
 0x7a8   :  { %v2860_v36 = vmul.f32 %v7775_v0, %v9257_v53 }
 0x7aa   :  { %v2876_v57 = vmul.f32 %v9290_v2, %v2860_v36 }
 0x7ab   :  { %v7777_v16 = vpop.eup %7776 }
 0x7ac   :  { %v7779_v15 = vpop.eup %7778  ;;  %v2862_v44 = vmul.f32 %v7777_v16, %v9262_v21  ;;  %v9359_v47 = vadd.f32 %v9298_v20, %v2876_v57 }
 0x7ad   :  { %v2861_v8 = vmul.f32 %v7779_v15, %v9265_v7 }
 0x7ae   :  { %v2878_v37 = vmul.f32 %v9290_v2, %v2862_v44 }
 0x7af   :  { %v2877_v28 = vmul.f32 %v9290_v2, %v2861_v8 }
 0x7b0   :  { %v7781_v11 = vpop.eup %7780  ;;  %v9368_v7 = vadd.f32 %v9298_v20, %v2878_v37 }
 0x7b1   :  { %v2863_v58 = vmul.f32 %v7781_v11, %v9273_v50  ;;  %v9362_v53 = vadd.f32 %v9298_v20, %v2877_v28 }
 0x7b3   :  { %v2879_v56 = vmul.f32 %v9290_v2, %v2863_v58  ;;  %v2900_v21 = vpack.c.bf16 %v9362_v53, %v9359_v47  ;;  %v7553_v2 = vld [vmem:[%s10777_s7 + $0x10] sm:$0xff]  }
 0x7b4   :  { %7174 = vmatprep.subr.bf16.mxu1 %v7553_v2 }
 0x7b5   :  { %v9371_v48 = vadd.f32 %v9298_v20, %v2879_v56  ;;  %7168 = vmatprep.mubr.msk.bf16.mxu0 %vm318_vm2, %v2900_v21  ;;  %7175 = vmatpush3.bf16.msra.mxu1 %v7553_v2  ;;  %v7555_v20 = vld [vmem:[%s10777_s7] sm:$0xff]  }
 0x7b6   :  { %7176 = vmatprep.subr.bf16.mxu1 %v7554_v45 }
 0x7b7   :  { %v2901_v50 = vpack.c.bf16 %v9371_v48, %v9368_v7 }
 0x7b9   :  { %7169 = vmatmul.mubr.msk.bf16.gmra.mxu0 %vm318_vm2, %v2901_v50  ;;  %7177 = vmatpush3.bf16.msra.mxu1 %v7554_v45  ;;  %v10807_v45 = vsub.s32 7, %v10860_v22 }
 0x7ba   :  { %7178 = vmatprep.subr.bf16.mxu1 %v7555_v20 }
 0x7bd   :  { %7179 = vmatpush3.bf16.msra.mxu1 %v7555_v20  ;;  %v3038_v20 = vrot.slane %v9153_v27, %v10807_v45 }
 0x838   :  { %v7162_v18 = vpop.f32.mrf.mxu0 }
 0x839   :  { %v2979_v26 = vadd.f32 %v7162_v18, %v2905_v17 }
 0x83a   :  { %v2970_v55 = vpop.f32.mrf.mxu0 }
 0x83b   :  { %v2971_v62 = vadd.f32 %v2970_v55, %v2905_v17  ;;  %v3019_v6 = vmax.f32 %v2979_v26, 0.0 }
 0x83c   :  { %v7163_v32 = vpop.f32.mrf.mxu0 }
 0x83d   :  { %v2982_v35 = vadd.f32 %v7163_v32, %v2905_v17  ;;  %v3017_v54 = vmax.f32 %v2971_v62, 0.0 }
 0x83e   :  { %v2973_v9 = vpop.f32.mrf.mxu0 }
 0x83f   :  { %v2974_v29 = vadd.f32 %v2973_v9, %v2905_v17  ;;  %v3020_v5 = vmax.f32 %v2982_v35, 0.0 }
 0x841   :  { %v3018_v1 = vmax.f32 %v2974_v29, 0.0  ;;  %v3030_v31 = vpack.c.bf16 %v3020_v5, %v3019_v6 }
 0x843   :  { %v3029_v34 = vpack.c.bf16 %v3018_v1, %v3017_v54 }
 0x845   :  { %7180 = vmatprep.mubr.msk.bf16.mxu1 %vm3063_vm8, %v3029_v34 }
 0x846   :  { %7181 = vmatmul.mubr.msk.bf16.vlgmr.msra.gmra.mxu1 %vm3063_vm8, %v3030_v31 }
 0x865   :  { %v7166_v61 = vpop.f32.mrf.mxu0 }
 0x866   :  { %v2995_v60 = vadd.f32 %v7166_v61, %v2905_v17 }
 0x867   :  { %v2986_v42 = vpop.f32.mrf.mxu0 }
 0x868   :  { %v2987_v4 = vadd.f32 %v2986_v42, %v2905_v17  ;;  %v3023_v19 = vmax.f32 %v2995_v60, 0.0 }
 0x869   :  { %v7167_v3 = vpop.f32.mrf.mxu0 }
 0x86a   :  { %v2998_v10 = vadd.f32 %v7167_v3, %v2905_v17  ;;  %v3021_v30 = vmax.f32 %v2987_v4, 0.0 }
 0x86b   :  { %v2989_v40 = vpop.f32.mrf.mxu0 }
 0x86c   :  { %v2990_v33 = vadd.f32 %v2989_v40, %v2905_v17  ;;  %v3024_v12 = vmax.f32 %v2998_v10, 0.0 }
 0x86e   :  { %v3022_v43 = vmax.f32 %v2990_v33, 0.0  ;;  %v3032_v0 = vpack.c.bf16 %v3024_v12, %v3023_v19 }
 0x870   :  { %v3031_v51 = vpack.c.bf16 %v3022_v43, %v3021_v30 }
 0x872   :  { %7184 = vmatprep.mubr.msk.bf16.mxu1 %vm3063_vm8, %v3031_v51 }
 0x873   :  { %7185 = vmatmul.mubr.msk.bf16.gmra.mxu1 %vm3063_vm8, %v3032_v0 }
 0x879   :  { %v7170_v36 = vpop.f32.mrf.mxu0 }
 0x87a   :  { %v3011_v57 = vadd.f32 %v7170_v36, %v2905_v17 }
 0x87b   :  { %v3002_v16 = vpop.f32.mrf.mxu0 }
 0x87c   :  { %v3003_v44 = vadd.f32 %v3002_v16, %v2905_v17  ;;  %v3027_v21 = vmax.f32 %v3011_v57, 0.0 }
 0x87d   :  { %v7171_v15 = vpop.f32.mrf.mxu0 }
 0x87e   :  { %v3014_v8 = vadd.f32 %v7171_v15, %v2905_v17  ;;  %v3025_v37 = vmax.f32 %v3003_v44, 0.0 }
 0x87f   :  { %v3005_v11 = vpop.f32.mrf.mxu0 }
 0x880   :  { %v3006_v28 = vadd.f32 %v3005_v11, %v2905_v17  ;;  %v3028_v58 = vmax.f32 %v3014_v8, 0.0 }
 0x882   :  { %v3026_v56 = vmax.f32 %v3006_v28, 0.0  ;;  %v3034_v2 = vpack.c.bf16 %v3028_v58, %v3027_v21 }
 0x884   :  { %v3033_v50 = vpack.c.bf16 %v3026_v56, %v3025_v37 }
 0x886   :  { %7188 = vmatprep.mubr.msk.bf16.mxu1 %vm3063_vm8, %v3033_v50 }
 0x887   :  { %7189 = vmatmul.mubr.msk.bf16.gmra.mxu1 %vm3063_vm8, %v3034_v2 }
 0x906   :  { %v7182_v18 = vpop.f32.mrf.mxu1 }
 0x907   :  { %v3125_v32 = vadd.f32 %v7182_v18, %v3038_v20 }
 0x908   :  { %v3116_v55 = vpop.f32.mrf.mxu1 }
 0x909   :  { %v3117_v17 = vadd.f32 %v3116_v55, %v3038_v20  ;;  %v3165_v9 = vadd.f32 %v3125_v32, %v9317_v46 }
 0x90a   :  { %v7183_v62 = vpop.f32.mrf.mxu1 }
 0x90b   :  { %v3163_v35 = vadd.f32 %v3117_v17, %v9305_v63  ;;  %v3128_v29 = vadd.f32 %v7183_v62, %v3038_v20  ;;  %v3181_v34 = vsel %vm318_vm2, %v3165_v9, 0.0 }
 0x90c   :  { %v3119_v26 = vpop.f32.mrf.mxu1 }
 0x90d   :  { %v3120_v5 = vadd.f32 %v3119_v26, %v3038_v20  ;;  %v3175_v54 = vsel %vm318_vm2, %v3163_v35, 0.0  ;;  %v9405_v6 = vadd.f32 %v3128_v29, %v9320_v59 }
 0x90e   :  { %3176 = vadd.xlane.f32.xlu0 %v3175_v54 }
 0x90f   :  { %v3164_v1 = vadd.f32 %v3120_v5, %v9308_v39  ;;  %v3184_v63 = vsel %vm318_vm2, %v9405_v6, 0.0 }
 0x911   :  { %v3178_v27 = vsel %vm318_vm2, %v3164_v1, 0.0 }
 0x912   :  { %3179 = vadd.xlane.f32.xlu1 %v3178_v27  ;;  %3182 = vadd.xlane.f32.xlu0 %v3181_v34  ;;  %v7557_v34 = vld [vmem:[%s10774_s4 + $0x10] sm:$0xff]  }
 0x916   :  { %3185 = vadd.xlane.f32.xlu1 %v3184_v63 }
 0x933   :  { %v7186_v46 = vpop.f32.mrf.mxu1 }
 0x934   :  { %v3141_v61 = vadd.f32 %v7186_v46, %v3038_v20 }
 0x935   :  { %v3132_v31 = vpop.f32.mrf.mxu1 }
 0x936   :  { %v3133_v42 = vadd.f32 %v3132_v31, %v3038_v20  ;;  %v9415_v4 = vadd.f32 %v3141_v61, %v9342_v14 }
 0x937   :  { %v7187_v3 = vpop.f32.mrf.mxu1 }
 0x938   :  { %v9412_v39 = vadd.f32 %v3133_v42, %v9333_v24  ;;  %v3144_v10 = vadd.f32 %v7187_v3, %v3038_v20  ;;  %v3193_v30 = vsel %vm318_vm2, %v9415_v4, 0.0 }
 0x939   :  { %v3135_v59 = vpop.f32.mrf.mxu1 }
 0x93a   :  { %v3136_v60 = vadd.f32 %v3135_v59, %v3038_v20  ;;  %v3187_v40 = vsel %vm318_vm2, %v9412_v39, 0.0  ;;  %v9423_v12 = vadd.f32 %v3144_v10, %v9345_v23 }
 0x93b   :  { %3188 = vadd.xlane.f32.xlu0 %v3187_v40 }
 0x93c   :  { %v9420_v33 = vadd.f32 %v3136_v60, %v9336_v13  ;;  %v3196_v14 = vsel %vm318_vm2, %v9423_v12, 0.0 }
 0x93e   :  { %v3190_v24 = vsel %vm318_vm2, %v9420_v33, 0.0 }
 0x93f   :  { %3191 = vadd.xlane.f32.xlu1 %v3190_v24  ;;  %3194 = vadd.xlane.f32.xlu0 %v3193_v30 }
 0x943   :  { %3197 = vadd.xlane.f32.xlu1 %v3196_v14 }
 0x947   :  { %v7190_v43 = vpop.f32.mrf.mxu1 }
 0x948   :  { %v3157_v51 = vadd.f32 %v7190_v43, %v3038_v20 }
 0x949   :  { %v3148_v19 = vpop.f32.mrf.mxu1 }
 0x94a   :  { %v3149_v13 = vadd.f32 %v3148_v19, %v3038_v20  ;;  %v9435_v16 = vadd.f32 %v3157_v51, %v9368_v7 }
 0x94b   :  { %v7191_v0 = vpop.f32.mrf.mxu1 }
 0x94c   :  { %v9432_v23 = vadd.f32 %v3149_v13, %v9359_v47  ;;  %v3160_v15 = vadd.f32 %v7191_v0, %v3038_v20  ;;  %v3205_v28 = vsel %vm318_vm2, %v9435_v16, 0.0 }
 0x94d   :  { %v3151_v36 = vpop.f32.mrf.mxu1 }
 0x94e   :  { %v3152_v44 = vadd.f32 %v3151_v36, %v3038_v20  ;;  %v3199_v8 = vsel %vm318_vm2, %v9432_v23, 0.0  ;;  %v9443_v11 = vadd.f32 %v3160_v15, %v9371_v48 }
 0x94f   :  { %3200 = vadd.xlane.f32.xlu0 %v3199_v8 }
 0x950   :  { %v9440_v57 = vadd.f32 %v3152_v44, %v9362_v53  ;;  %v3208_v7 = vsel %vm318_vm2, %v9443_v11, 0.0 }
 0x952   :  { %v3202_v47 = vsel %vm318_vm2, %v9440_v57, 0.0 }
 0x953   :  { %3203 = vadd.xlane.f32.xlu1 %v3202_v47  ;;  %3206 = vadd.xlane.f32.xlu0 %v3205_v28 }
 0x957   :  { %3209 = vadd.xlane.f32.xlu1 %v3208_v7 }
 0x997   :  { %v3177_v58 = vpop.xlane.xlu0 %3176 }
 0x998   :  { %v3211_v37 = vmul.f32 0.03125, %v3177_v58 }
 0x99a   :  { %v9451_v56 = vsub.f32 %v3163_v35, %v3211_v37 }
 0x99b   :  { %v3183_v53 = vpop.xlane.xlu0 %3182  ;;  %v3180_v21 = vpop.xlane.xlu1 %3179 }
 0x99c   :  { %v3213_v48 = vmul.f32 0.03125, %v3183_v53  ;;  %v3212_v50 = vmul.f32 0.03125, %v3180_v21  ;;  %v3235_v2 = vmul.f32 %v9451_v56, %v9451_v56 }
 0x99e   :  { %v9455_v20 = vsub.f32 %v3165_v9, %v3213_v48  ;;  %v9457_v18 = vsub.f32 %v3164_v1, %v3212_v50  ;;  %v3247_v55 = vsel %vm318_vm2, %v3235_v2, 0.0  ;;  %v7556_v1 = vld [vmem:[%s10774_s4 + $0x18] sm:$0xff]  }
 0x99f   :  { %3248 = vadd.xlane.f32.xlu0 %v3247_v55  ;;  %v3186_v32 = vpop.xlane.xlu1 %3185  ;;  %7192 = vmatprep.subr.bf16.mxu0 %v7556_v1 }
 0x9a0   :  { %v3214_v17 = vmul.f32 0.03125, %v3186_v32  ;;  %v3237_v62 = vmul.f32 %v9455_v20, %v9455_v20  ;;  %v3236_v35 = vmul.f32 %v9457_v18, %v9457_v18  ;;  %7193 = vmatpush3.bf16.msra.mxu0 %v7556_v1 }
 0x9a1   :  { %7194 = vmatprep.subr.bf16.mxu0 %v7557_v34 }
 0x9a2   :  { %v9465_v26 = vsub.f32 %v9405_v6, %v3214_v17  ;;  %v3253_v29 = vsel %vm318_vm2, %v3237_v62, 0.0  ;;  %v3250_v9 = vsel %vm318_vm2, %v3236_v35, 0.0 }
 0x9a3   :  { %3254 = vadd.xlane.f32.xlu0 %v3253_v29  ;;  %3251 = vadd.xlane.f32.xlu1 %v3250_v9 }
 0x9a4   :  { %v3238_v5 = vmul.f32 %v9465_v26, %v9465_v26  ;;  %7195 = vmatpush3.bf16.msra.mxu0 %v7557_v34 }
 0x9a6   :  { %v3256_v54 = vsel %vm318_vm2, %v3238_v5, 0.0 }
 0x9a7   :  { %3257 = vadd.xlane.f32.xlu1 %v3256_v54 }
 0x9c4   :  { %v3189_v27 = vpop.xlane.xlu0 %3188 }
 0x9c5   :  { %v3215_v6 = vmul.f32 0.03125, %v3189_v27  ;;  %v9527_v27 = vsub.s32 2, %v10860_v22 }
 0x9c7   :  { %v9479_v63 = vsub.f32 %v9412_v39, %v3215_v6  ;;  %10875 = vst [vmem:[#allocation23_spill] sm:$0xff] %v9527_v27  ;;  %v9531_v34 = vrot.slane %v9286_v52, %v9527_v27 }
 0x9c8   :  { %v3195_v46 = vpop.xlane.xlu0 %3194  ;;  %v3192_v31 = vpop.xlane.xlu1 %3191 }
 0x9c9   :  { %v3217_v61 = vmul.f32 0.03125, %v3195_v46  ;;  %v3216_v42 = vmul.f32 0.03125, %v3192_v31  ;;  %v3239_v3 = vmul.f32 %v9479_v63, %v9479_v63 }
 0x9cb   :  { %v9484_v59 = vsub.f32 %v9415_v4, %v3217_v61  ;;  %v9487_v10 = vsub.f32 %v9420_v33, %v3216_v42  ;;  %v3259_v60 = vsel %vm318_vm2, %v3239_v3, 0.0  ;;  %v10876_v3 = vld [vmem:[#allocation7_spill] sm:$0xff] }
 0x9cc   :  { %3260 = vadd.xlane.f32.xlu0 %v3259_v60  ;;  %v3198_v39 = vpop.xlane.xlu1 %3197  ;;  %v9537_v60 = vrot.slane %v9286_v52, %v10876_v3 }
 0x9cd   :  { %v3218_v40 = vmul.f32 0.03125, %v3198_v39  ;;  %v3241_v24 = vmul.f32 %v9484_v59, %v9484_v59  ;;  %v3240_v30 = vmul.f32 %v9487_v10, %v9487_v10 }
 0x9cf   :  { %v9495_v14 = vsub.f32 %v9423_v12, %v3218_v40  ;;  %v3265_v4 = vsel %vm318_vm2, %v3241_v24, 0.0  ;;  %v3262_v43 = vsel %vm318_vm2, %v3240_v30, 0.0 }
 0x9d0   :  { %3266 = vadd.xlane.f32.xlu0 %v3265_v4  ;;  %3263 = vadd.xlane.f32.xlu1 %v3262_v43 }
 0x9d1   :  { %v3242_v33 = vmul.f32 %v9495_v14, %v9495_v14 }
 0x9d3   :  { %v3268_v19 = vsel %vm318_vm2, %v3242_v33, 0.0 }
 0x9d4   :  { %3269 = vadd.xlane.f32.xlu1 %v3268_v19 }
 0x9d8   :  { %v3201_v51 = vpop.xlane.xlu0 %3200 }
 0x9d9   :  { %v3219_v13 = vmul.f32 0.03125, %v3201_v51 }
 0x9db   :  { %v9503_v0 = vsub.f32 %v9432_v23, %v3219_v13 }
 0x9dc   :  { %v3207_v36 = vpop.xlane.xlu0 %3206  ;;  %v3204_v12 = vpop.xlane.xlu1 %3203 }
 0x9dd   :  { %v3221_v15 = vmul.f32 0.03125, %v3207_v36  ;;  %v3220_v44 = vmul.f32 0.03125, %v3204_v12  ;;  %v3243_v8 = vmul.f32 %v9503_v0, %v9503_v0 }
 0x9df   :  { %v9508_v47 = vsub.f32 %v9435_v16, %v3221_v15  ;;  %v9511_v28 = vsub.f32 %v9440_v57, %v3220_v44  ;;  %v3271_v7 = vsel %vm318_vm2, %v3243_v8, 0.0 }
 0x9e0   :  { %3272 = vadd.xlane.f32.xlu0 %v3271_v7  ;;  %v3210_v58 = vpop.xlane.xlu1 %3209 }
 0x9e1   :  { %v3222_v37 = vmul.f32 0.03125, %v3210_v58  ;;  %v3245_v23 = vmul.f32 %v9508_v47, %v9508_v47  ;;  %v3244_v53 = vmul.f32 %v9511_v28, %v9511_v28 }
 0x9e3   :  { %v9519_v21 = vsub.f32 %v9443_v11, %v3222_v37  ;;  %v3277_v16 = vsel %vm318_vm2, %v3245_v23, 0.0  ;;  %v3274_v48 = vsel %vm318_vm2, %v3244_v53, 0.0 }
 0x9e4   :  { %3278 = vadd.xlane.f32.xlu0 %v3277_v16  ;;  %3275 = vadd.xlane.f32.xlu1 %v3274_v48 }
 0x9e5   :  { %v3246_v57 = vmul.f32 %v9519_v21, %v9519_v21 }
 0x9e7   :  { %v3280_v50 = vsel %vm318_vm2, %v3246_v57, 0.0 }
 0x9e8   :  { %3281 = vadd.xlane.f32.xlu1 %v3280_v50 }
 0xa28   :  { %v3249_v2 = vpop.xlane.xlu0 %3248 }
 0xa29   :  { %v3283_v55 = vmul.f32 0.03125, %v3249_v2 }
 0xa2b   :  { %v3295_v32 = vadd.f32 1e-05, %v3283_v55 }
 0xa2c   :  { %v3255_v17 = vpop.xlane.xlu0 %3254  ;;  %v3252_v62 = vpop.xlane.xlu1 %3251 }
 0xa2d   :  { %7782 = vrsqrt.f32 %v3295_v32  ;;  %v3285_v11 = vmul.f32 0.03125, %v3255_v17  ;;  %v3284_v35 = vmul.f32 0.03125, %v3252_v62 }
 0xa2f   :  { %v3297_v29 = vadd.f32 1e-05, %v3285_v11  ;;  %v3296_v9 = vadd.f32 1e-05, %v3284_v35 }
 0xa30   :  { %v3258_v5 = vpop.xlane.xlu1 %3257 }
 0xa31   :  { %7784 = vrsqrt.f32 %v3297_v29  ;;  %v3286_v54 = vmul.f32 0.03125, %v3258_v5 }
 0xa32   :  { %7786 = vrsqrt.f32 %v3296_v9 }
 0xa33   :  { %v3298_v1 = vadd.f32 1e-05, %v3286_v54 }
 0xa35   :  { %7788 = vrsqrt.f32 %v3298_v1 }
 0xa3a   :  { %v7783_v6 = vpop.eup %7782 }
 0xa3b   :  { %v3319_v46 = vmul.f32 %v7783_v6, %v9451_v56 }
 0xa3d   :  { %v3335_v40 = vmul.f32 %v9531_v34, %v3319_v46 }
 0xa3e   :  { %v7785_v31 = vpop.eup %7784 }
 0xa3f   :  { %v7787_v61 = vpop.eup %7786  ;;  %v3321_v42 = vmul.f32 %v7785_v31, %v9455_v20  ;;  %v9545_v56 = vadd.f32 %v9537_v60, %v3335_v40 }
 0xa40   :  { %v3320_v39 = vmul.f32 %v7787_v61, %v9457_v18 }
 0xa41   :  { %v3337_v4 = vmul.f32 %v9531_v34, %v3321_v42  ;;  %10877 = vst [vmem:[#allocation26_spill] sm:$0xff] %v9545_v56 }
 0xa42   :  { %v7789_v24 = vpop.eup %7788  ;;  %v3336_v30 = vmul.f32 %v9531_v34, %v3320_v39 }
 0xa43   :  { %v3322_v43 = vmul.f32 %v7789_v24, %v9465_v26  ;;  %v9554_v19 = vadd.f32 %v9537_v60, %v3337_v4 }
 0xa44   :  { %v9548_v20 = vadd.f32 %v9537_v60, %v3336_v30 }
 0xa45   :  { %v3338_v33 = vmul.f32 %v9531_v34, %v3322_v43  ;;  %10879 = vst [vmem:[#allocation24_spill] sm:$0xff] %v9554_v19 }
 0xa46   :  { %10878 = vst [vmem:[#allocation22_spill] sm:$0xff] %v9548_v20  ;;  %v3387_v18 = vpack.c.bf16 %v9548_v20, %v9545_v56 }
 0xa47   :  { %v9557_v51 = vadd.f32 %v9537_v60, %v3338_v33 }
 0xa48   :  { %7196 = vmatprep.mubr.msk.bf16.mxu0 %vm318_vm2, %v3387_v18 }
 0xa49   :  { %10880 = vst [vmem:[#allocation27_spill] sm:$0xff] %v9557_v51  ;;  %v3388_v26 = vpack.c.bf16 %v9557_v51, %v9554_v19 }
 0xa4b   :  { %7197 = vmatmul.mubr.msk.bf16.vlgmr.msra.gmra.mxu0 %vm318_vm2, %v3388_v26 }
 0xa55   :  { %v3261_v13 = vpop.xlane.xlu0 %3260 }
 0xa56   :  { %v3287_v36 = vmul.f32 0.03125, %v3261_v13 }
 0xa58   :  { %v3299_v12 = vadd.f32 1e-05, %v3287_v36 }
 0xa59   :  { %v3267_v15 = vpop.xlane.xlu0 %3266  ;;  %v3264_v44 = vpop.xlane.xlu1 %3263 }
 0xa5a   :  { %7790 = vrsqrt.f32 %v3299_v12  ;;  %v3289_v8 = vmul.f32 0.03125, %v3267_v15  ;;  %v3288_v7 = vmul.f32 0.03125, %v3264_v44 }
 0xa5c   :  { %v3301_v58 = vadd.f32 1e-05, %v3289_v8  ;;  %v3300_v37 = vadd.f32 1e-05, %v3288_v7 }
 0xa5d   :  { %v3270_v23 = vpop.xlane.xlu1 %3269 }
 0xa5e   :  { %7792 = vrsqrt.f32 %v3301_v58  ;;  %v3290_v53 = vmul.f32 0.03125, %v3270_v23 }
 0xa5f   :  { %7794 = vrsqrt.f32 %v3300_v37 }
 0xa60   :  { %v3302_v16 = vadd.f32 1e-05, %v3290_v53 }
 0xa62   :  { %7796 = vrsqrt.f32 %v3302_v16  ;;  %v10889_v16 = vsub.s32 4, %v10860_v22 }
 0xa67   :  { %v7791_v48 = vpop.eup %7790 }
 0xa68   :  { %v3323_v50 = vmul.f32 %v7791_v48, %v9479_v63 }
 0xa69   :  { %v3273_v57 = vpop.xlane.xlu0 %3272 }
 0xa6a   :  { %v3291_v2 = vmul.f32 0.03125, %v3273_v57  ;;  %v3339_v35 = vmul.f32 %v9531_v34, %v3323_v50 }
 0xa6b   :  { %v7793_v55 = vpop.eup %7792 }
 0xa6c   :  { %v3303_v32 = vadd.f32 1e-05, %v3291_v2  ;;  %v7795_v17 = vpop.eup %7794  ;;  %v3325_v29 = vmul.f32 %v7793_v55, %v9484_v59  ;;  %v9571_v40 = vadd.f32 %v9537_v60, %v3339_v35 }
 0xa6d   :  { %v3279_v62 = vpop.xlane.xlu0 %3278  ;;  %v3276_v11 = vpop.xlane.xlu1 %3275  ;;  %v3324_v54 = vmul.f32 %v7795_v17, %v9487_v10 }
 0xa6e   :  { %7798 = vrsqrt.f32 %v3303_v32  ;;  %v3293_v9 = vmul.f32 0.03125, %v3279_v62  ;;  %v3292_v5 = vmul.f32 0.03125, %v3276_v11  ;;  %v3341_v42 = vmul.f32 %v9531_v34, %v3325_v29  ;;  %10881 = vst [vmem:[#allocation25_spill] sm:$0xff] %v9571_v40 }
 0xa6f   :  { %v7797_v1 = vpop.eup %7796  ;;  %v3340_v63 = vmul.f32 %v9531_v34, %v3324_v54 }
 0xa70   :  { %v3305_v6 = vadd.f32 1e-05, %v3293_v9  ;;  %v3304_v46 = vadd.f32 1e-05, %v3292_v5  ;;  %v3326_v61 = vmul.f32 %v7797_v1, %v9495_v14  ;;  %v9580_v4 = vadd.f32 %v9537_v60, %v3341_v42 }
 0xa71   :  { %v3282_v31 = vpop.xlane.xlu1 %3281  ;;  %v9574_v59 = vadd.f32 %v9537_v60, %v3340_v63 }
 0xa72   :  { %7800 = vrsqrt.f32 %v3305_v6  ;;  %v3294_v39 = vmul.f32 0.03125, %v3282_v31  ;;  %v3342_v10 = vmul.f32 %v9531_v34, %v3326_v61  ;;  %10883 = vst [vmem:[#allocation8_spill] sm:$0xff] %v9580_v4 }
 0xa73   :  { %10882 = vst [vmem:[#allocation9_spill] sm:$0xff] %v9574_v59  ;;  %7802 = vrsqrt.f32 %v3304_v46  ;;  %v3389_v30 = vpack.c.bf16 %v9574_v59, %v9571_v40 }
 0xa74   :  { %v3306_v24 = vadd.f32 1e-05, %v3294_v39  ;;  %v9583_v14 = vadd.f32 %v9537_v60, %v3342_v10 }
 0xa75   :  { %7200 = vmatprep.mubr.msk.bf16.mxu0 %vm318_vm2, %v3389_v30 }
 0xa76   :  { %10884 = vst [vmem:[#allocation10_spill] sm:$0xff] %v9583_v14  ;;  %7804 = vrsqrt.f32 %v3306_v24  ;;  %v3390_v43 = vpack.c.bf16 %v9583_v14, %v9580_v4 }
 0xa78   :  { %7201 = vmatmul.mubr.msk.bf16.gmra.mxu0 %vm318_vm2, %v3390_v43 }
 0xa7b   :  { %v7799_v33 = vpop.eup %7798 }
 0xa7c   :  { %v3327_v18 = vmul.f32 %v7799_v33, %v9503_v0 }
 0xa7e   :  { %v3343_v15 = vmul.f32 %v9531_v34, %v3327_v18 }
 0xa7f   :  { %v7801_v26 = vpop.eup %7800 }
 0xa80   :  { %v7803_v13 = vpop.eup %7802  ;;  %v3329_v36 = vmul.f32 %v7801_v26, %v9508_v47  ;;  %v9597_v37 = vadd.f32 %v9537_v60, %v3343_v15 }
 0xa81   :  { %v3328_v12 = vmul.f32 %v7803_v13, %v9511_v28 }
 0xa82   :  { %v3345_v58 = vmul.f32 %v9531_v34, %v3329_v36  ;;  %10885 = vst [vmem:[#allocation11_spill] sm:$0xff] %v9597_v37 }
 0xa83   :  { %v7805_v44 = vpop.eup %7804  ;;  %v3344_v8 = vmul.f32 %v9531_v34, %v3328_v12 }
 0xa84   :  { %v3330_v7 = vmul.f32 %v7805_v44, %v9519_v21  ;;  %v9606_v28 = vadd.f32 %v9537_v60, %v3345_v58 }
 0xa85   :  { %v9600_v0 = vadd.f32 %v9537_v60, %v3344_v8 }
 0xa86   :  { %v3346_v23 = vmul.f32 %v9531_v34, %v3330_v7  ;;  %10887 = vst [vmem:[#allocation15_spill] sm:$0xff] %v9606_v28  ;;  %v3396_v34 = vrot.slane %v9286_v52, %v10889_v16 }
 0xa87   :  { %10886 = vst [vmem:[#allocation13_spill] sm:$0xff] %v9600_v0  ;;  %v3391_v47 = vpack.c.bf16 %v9600_v0, %v9597_v37 }
 0xa88   :  { %v9609_v53 = vadd.f32 %v9537_v60, %v3346_v23 }
 0xa89   :  { %7204 = vmatprep.mubr.msk.bf16.mxu0 %vm318_vm2, %v3391_v47 }
 0xa8a   :  { %10888 = vst [vmem:[#allocation14_spill] sm:$0xff] %v9609_v53  ;;  %v3392_v21 = vpack.c.bf16 %v9609_v53, %v9606_v28 }
 0xa8c   :  { %7205 = vmatmul.mubr.msk.bf16.gmra.mxu0 %vm318_vm2, %v3392_v21 }
 0xb0b   :  { %v7198_v48 = vpop.f32.mrf.mxu0 }
 0xb0c   :  { %v3470_v57 = vadd.f32 %v7198_v48, %v3396_v34 }
 0xb0d   :  { %v3461_v50 = vpop.f32.mrf.mxu0 }
 0xb0e   :  { %v9618_v2 = vpack.c.bf16 %v3470_v57, %v3470_v57  ;;  %v3462_v32 = vadd.f32 %v3461_v50, %v3396_v34 }
 0xb0f   :  { %v7199_v55 = vpop.f32.mrf.mxu0 }
 0xb10   :  { %3520 = vrot.lane.b32.xlu0 %v9618_v2, %s8057_s1  ;;  %v3473_v52 = vadd.f32 %v7199_v55, %v3396_v34 }
 0xb11   :  { %v3464_v60 = vpop.f32.mrf.mxu0 }
 0xb12   :  { %v3465_v17 = vadd.f32 %v3464_v60, %v3396_v34 }
 0xb14   :  { %v9622_v62 = vpack.c.bf16 %v3465_v17, %v3462_v32 }
 0xb16   :  { %7212 = vmatprep.mubr.msk.bf16.mxu1 %vm432_vm3, %v9622_v62 }
 0xb38   :  { %v7202_v11 = vpop.f32.mrf.mxu0 }
 0xb39   :  { %v3486_v30 = vadd.f32 %v7202_v11, %v3396_v34 }
 0xb3a   :  { %v3477_v35 = vpop.f32.mrf.mxu0 }
 0xb3b   :  { %v3478_v29 = vadd.f32 %v3477_v35, %v3396_v34 }
 0xb3c   :  { %v7203_v9 = vpop.f32.mrf.mxu0 }
 0xb3d   :  { %v9626_v5 = vpack.c.bf16 %v3478_v29, %v3473_v52  ;;  %v3489_v42 = vadd.f32 %v7203_v9, %v3396_v34 }
 0xb3e   :  { %v3480_v54 = vpop.f32.mrf.mxu0 }
 0xb3f   :  { %v3481_v1 = vadd.f32 %v3480_v54, %v3396_v34  ;;  %3584 = vrot.lane.b32.xlu0 %v9626_v5, %s8057_s1  ;;  %7220 = vmatprep.mubr.msk.bf16.mxu0 %vm432_vm3, %v9626_v5  ;;  %v9644_v18 = vpack.c.bf16 %v3489_v42, %v3486_v30 }
 0xb41   :  { %v9632_v6 = vpack.c.bf16 %v3481_v1, %v3481_v1 }
 0xb43   :  { %3586 = vrot.lane.b32.xlu1 %v9632_v6, %s8057_s1 }
 0xb47   :  { %3518 = vrot.lane.b32.xlu1 %v9622_v62, %s8057_s1 }
 0xb4c   :  { %v7206_v46 = vpop.f32.mrf.mxu0 }
 0xb4d   :  { %v3502_v26 = vadd.f32 %v7206_v46, %v3396_v34 }
 0xb4e   :  { %v3493_v63 = vpop.f32.mrf.mxu0 }
 0xb4f   :  { %v3494_v31 = vadd.f32 %v3493_v63, %v3396_v34 }
 0xb50   :  { %v7207_v61 = vpop.f32.mrf.mxu0 }
 0xb51   :  { %v9638_v39 = vpack.c.bf16 %v3494_v31, %v3494_v31  ;;  %v3505_v10 = vadd.f32 %v7207_v61, %v3396_v34 }
 0xb52   :  { %v3496_v24 = vpop.f32.mrf.mxu0 }
 0xb53   :  { %v9640_v43 = vpack.c.bf16 %v3505_v10, %v3505_v10  ;;  %v3497_v33 = vadd.f32 %v3496_v24, %v3396_v34  ;;  %3652 = vrot.lane.b32.xlu1 %v9638_v39, %s8057_s1 }
 0xb55   :  { %3718 = vrot.lane.b32.xlu0 %v9640_v43, %s8057_s1  ;;  %v9648_v13 = vpack.c.bf16 %v3502_v26, %v3497_v33 }
 0xb57   :  { %3650 = vrot.lane.b32.xlu1 %v9644_v18, %s8057_s1 }
 0xb59   :  { %3716 = vrot.lane.b32.xlu0 %v9648_v13, %s8057_s1 }
 0xb5b   :  { %3786 = vrot.lane.b32.xlu1 %v9618_v2, %s8058_s17 }
 0xb5d   :  { %3854 = vrot.lane.b32.xlu0 %v9632_v6, %s8058_s17 }
 0xb5f   :  { %3784 = vrot.lane.b32.xlu1 %v9622_v62, %s8058_s17 }
 0xb61   :  { %3852 = vrot.lane.b32.xlu0 %v9626_v5, %s8058_s17 }
 0xb63   :  { %3780 = vrot.lane.b32.xlu1 %v9622_v62, %s8059_s18 }
 0xb65   :  { %3922 = vrot.lane.b32.xlu0 %v9638_v39, %s8058_s17 }
 0xb67   :  { %3782 = vrot.lane.b32.xlu1 %v9618_v2, %s8059_s18 }
 0xb69   :  { %3848 = vrot.lane.b32.xlu0 %v9626_v5, %s8059_s18 }
 0xb6b   :  { %3990 = vrot.lane.b32.xlu1 %v9640_v43, %s8058_s17 }
 0xb6d   :  { %3850 = vrot.lane.b32.xlu0 %v9632_v6, %s8059_s18 }
 0xb6f   :  { %3920 = vrot.lane.b32.xlu1 %v9644_v18, %s8058_s17 }
 0xb71   :  { %3988 = vrot.lane.b32.xlu0 %v9648_v13, %s8058_s17 }
 0xb73   :  { %3916 = vrot.lane.b32.xlu1 %v9644_v18, %s8059_s18 }
 0xb75   :  { %4058 = vrot.lane.b32.xlu0 %v9618_v2, %s8060_s19 }
 0xb77   :  { %3918 = vrot.lane.b32.xlu1 %v9638_v39, %s8059_s18 }
 0xb79   :  { %3984 = vrot.lane.b32.xlu0 %v9648_v13, %s8059_s18 }
 0xb7b   :  { %4126 = vrot.lane.b32.xlu1 %v9632_v6, %s8060_s19 }
 0xb7d   :  { %3986 = vrot.lane.b32.xlu0 %v9640_v43, %s8059_s18 }
 0xb7f   :  { %4056 = vrot.lane.b32.xlu1 %v9622_v62, %s8060_s19 }
 0xb81   :  { %4124 = vrot.lane.b32.xlu0 %v9626_v5, %s8060_s19 }
 0xb82   :  { %v3521_v36 = vpop.permute.xlu0 %3520 }
 0xb83   :  { %4052 = vrot.lane.b32.xlu1 %v9622_v62, %s8061_s20  ;;  %7488 = vmatprep.subr.msk.bf16.mxu1 %vm432_vm3, %v3521_v36  ;;  %v3532_v12 = vsel %vm432_vm3, %v3521_v36, 0 }
 0xb84   :  { %7209 = vmatpush3.bf16.xpose.msra.mxu1 %v3532_v12 }
 0xb85   :  { %4194 = vrot.lane.b32.xlu0 %v9638_v39, %s8060_s19 }
 0xb87   :  { %4054 = vrot.lane.b32.xlu1 %v9618_v2, %s8061_s20 }
 0xb89   :  { %4120 = vrot.lane.b32.xlu0 %v9626_v5, %s8061_s20 }
 0xb8b   :  { %4262 = vrot.lane.b32.xlu1 %v9640_v43, %s8060_s19 }
 0xb8d   :  { %4122 = vrot.lane.b32.xlu0 %v9632_v6, %s8061_s20 }
 0xb8f   :  { %4192 = vrot.lane.b32.xlu1 %v9644_v18, %s8060_s19 }
 0xb91   :  { %4260 = vrot.lane.b32.xlu0 %v9648_v13, %s8060_s19 }
 0xb93   :  { %4188 = vrot.lane.b32.xlu1 %v9644_v18, %s8061_s20 }
 0xb95   :  { %4330 = vrot.lane.b32.xlu0 %v9618_v2, %s8062_s21 }
 0xb97   :  { %4190 = vrot.lane.b32.xlu1 %v9638_v39, %s8061_s20 }
 0xb99   :  { %4256 = vrot.lane.b32.xlu0 %v9648_v13, %s8061_s20 }
 0xb9b   :  { %4398 = vrot.lane.b32.xlu1 %v9632_v6, %s8062_s21 }
 0xb9d   :  { %4258 = vrot.lane.b32.xlu0 %v9640_v43, %s8061_s20 }
 0xb9f   :  { %4328 = vrot.lane.b32.xlu1 %v9622_v62, %s8062_s21 }
 0xba1   :  { %4324 = vrot.lane.b32.xlu0 %v9622_v62, %s8063_s22 }
 0xba3   :  { %4396 = vrot.lane.b32.xlu1 %v9626_v5, %s8062_s21 }
 0xba5   :  { %4326 = vrot.lane.b32.xlu0 %v9618_v2, %s8063_s22 }
 0xba7   :  { %4392 = vrot.lane.b32.xlu1 %v9626_v5, %s8063_s22 }
 0xba9   :  { %4394 = vrot.lane.b32.xlu0 %v9632_v6, %s8063_s22 }
 0xbab   :  { %4466 = vrot.lane.b32.xlu1 %v9638_v39, %s8062_s21 }
 0xbad   :  { %4534 = vrot.lane.b32.xlu0 %v9640_v43, %s8062_s21 }
 0xbaf   :  { %4464 = vrot.lane.b32.xlu1 %v9644_v18, %s8062_s21 }
 0xbb1   :  { %4460 = vrot.lane.b32.xlu0 %v9644_v18, %s8063_s22  ;;  %v3585_v8 = vpop.permute.xlu0 %3584 }
 0xbb2   :  { %v3595_v23 = vsel %vm432_vm3, %v3585_v8, 0 }
 0xbb3   :  { %4532 = vrot.lane.b32.xlu1 %v9648_v13, %s8062_s21 }
 0xbb5   :  { %4462 = vrot.lane.b32.xlu0 %v9638_v39, %s8063_s22  ;;  %v3587_v15 = vpop.permute.xlu1 %3586 }
 0xbb6   :  { %7490 = vmatprep.subr.msk.bf16.mxu0 %vm432_vm3, %v3587_v15  ;;  %v3598_v44 = vsel %vm432_vm3, %v3587_v15, 0 }
 0xbb7   :  { %4528 = vrot.lane.b32.xlu1 %v9648_v13, %s8063_s22  ;;  %7217 = vmatpush3.bf16.xpose.msra.mxu0 %v3598_v44 }
 0xbb8   :  { %7491 = vmatprep.subr.msk.bf16.mxu0 %vm432_vm3, %v3585_v8 }
 0xbb9   :  { %4530 = vrot.lane.b32.xlu0 %v9640_v43, %s8063_s22  ;;  %v3519_v7 = vpop.permute.xlu1 %3518 }
 0xbba   :  { %7489 = vmatprep.subr.msk.bf16.mxu1 %vm432_vm3, %v3519_v7  ;;  %v3529_v58 = vsel %vm432_vm3, %v3519_v7, 0 }
 0xbbb   :  { %5196 = vrot.lane.b32.xlu1 %v9622_v62, %s8064_s23  ;;  %7211 = vmatpush3.bf16.xpose.msra.mxu1 %v3529_v58 }
 0xbbd   :  { %5198 = vrot.lane.b32.xlu0 %v9618_v2, %s8064_s23 }
 0xbbf   :  { %5305 = vrot.lane.b32.xlu1 %v9632_v6, %s8064_s23  ;;  %7219 = vmatpush3.bf16.xpose.msra.mxu0 %v3595_v23 }
 0xbc1   :  { %5412 = vrot.lane.b32.xlu0 %v9638_v39, %s8064_s23 }
 0xbc2   :  { %7213 = vmatmul.mubr.msk.bf16.vlgmr.msra.gmra.mxu1 %vm432_vm3, %v9618_v2 }
 0xbc3   :  { %5303 = vrot.lane.b32.xlu1 %v9626_v5, %s8064_s23  ;;  %7228 = vmatprep.mubr.msk.bf16.mxu1 %vm432_vm3, %v9644_v18 }
 0xbc5   :  { %5410 = vrot.lane.b32.xlu0 %v9644_v18, %s8064_s23  ;;  %v3653_v47 = vpop.permute.xlu1 %3652 }
 0xbc6   :  { %7492 = vmatprep.subr.msk.bf16.mxu1 %vm432_vm3, %v3653_v47  ;;  %v3664_v21 = vsel %vm432_vm3, %v3653_v47, 0  ;;  %7221 = vmatmul.mubr.msk.bf16.vlgmr.msra.gmra.mxu0 %vm432_vm3, %v9632_v6 }
 0xbc7   :  { %v3719_v16 = vpop.permute.xlu0 %3718  ;;  %7225 = vmatpush3.bf16.xpose.msra.mxu1 %v3664_v21  ;;  %7236 = vmatprep.mubr.msk.bf16.mxu0 %vm432_vm3, %v9648_v13 }
 0xbc8   :  { %7494 = vmatprep.subr.msk.bf16.mxu0 %vm432_vm3, %v3719_v16  ;;  %v3730_v34 = vsel %vm432_vm3, %v3719_v16, 0 }
 0xbc9   :  { %7233 = vmatpush3.bf16.xpose.msra.mxu0 %v3730_v34  ;;  %v3651_v48 = vpop.permute.xlu1 %3650 }
 0xbca   :  { %7493 = vmatprep.subr.msk.bf16.mxu1 %vm432_vm3, %v3651_v48  ;;  %v3661_v2 = vsel %vm432_vm3, %v3651_v48, 0 }
 0xbcb   :  { %v3717_v57 = vpop.permute.xlu0 %3716 }
 0xbcc   :  { %7495 = vmatprep.subr.msk.bf16.mxu0 %vm432_vm3, %v3717_v57  ;;  %v3727_v60 = vsel %vm432_vm3, %v3717_v57, 0 }
 0xbcd   :  { %v3787_v50 = vpop.permute.xlu1 %3786 }
 0xbce   :  { %v3798_v11 = vsel %vm432_vm3, %v3787_v50, 0 }
 0xbcf   :  { %v3855_v55 = vpop.permute.xlu0 %3854  ;;  %7227 = vmatpush3.bf16.xpose.msra.mxu1 %v3661_v2 }
 0xbd0   :  { %7496 = vmatprep.subr.msk.bf16.mxu1 %vm432_vm3, %v3787_v50  ;;  %v3866_v52 = vsel %vm432_vm3, %v3855_v55, 0 }
 0xbd1   :  { %7235 = vmatpush3.bf16.xpose.msra.mxu0 %v3727_v60  ;;  %v3785_v32 = vpop.permute.xlu1 %3784 }
 0xbd2   :  { %7498 = vmatprep.subr.msk.bf16.mxu0 %vm432_vm3, %v3855_v55  ;;  %v3795_v54 = vsel %vm432_vm3, %v3785_v32, 0 }
 0xbd3   :  { %v3853_v17 = vpop.permute.xlu0 %3852 }
 0xbd4   :  { %v3863_v6 = vsel %vm432_vm3, %v3853_v17, 0 }
 0xbd5   :  { %v3781_v62 = vpop.permute.xlu1 %3780 }
 0xbd6   :  { %7229 = vmatmul.mubr.msk.bf16.vlgmr.msra.gmra.mxu1 %vm432_vm3, %v9638_v39 }
 0xbd7   :  { %v3923_v35 = vpop.permute.xlu0 %3922  ;;  %7241 = vmatpush3.bf16.xpose.msra.mxu1 %v3798_v11  ;;  %7244 = vmatprep.mubr.msk.bf16.mxu1 %vm432_vm3, %v3781_v62 }
 0xbd8   :  { %7237 = vmatmul.mubr.msk.bf16.vlgmr.msra.gmra.mxu0 %vm432_vm3, %v9640_v43  ;;  %7497 = vmatprep.subr.msk.bf16.mxu1 %vm432_vm3, %v3785_v32  ;;  %v3934_v61 = vsel %vm432_vm3, %v3923_v35, 0 }
 0xbd9   :  { %7249 = vmatpush3.bf16.xpose.msra.mxu0 %v3866_v52  ;;  %v3783_v29 = vpop.permute.xlu1 %3782 }
 0xbda   :  { %7499 = vmatprep.subr.msk.bf16.mxu0 %vm432_vm3, %v3853_v17 }
 0xbdb   :  { %v3849_v9 = vpop.permute.xlu0 %3848 }
 0xbdc   :  { %7252 = vmatprep.mubr.msk.bf16.mxu0 %vm432_vm3, %v3849_v9 }
 0xbdd   :  { %v3991_v5 = vpop.permute.xlu1 %3990 }
 0xbde   :  { %v4002_v39 = vsel %vm432_vm3, %v3991_v5, 0 }
 0xbdf   :  { %v3851_v1 = vpop.permute.xlu0 %3850  ;;  %7243 = vmatpush3.bf16.xpose.msra.mxu1 %v3795_v54 }
 0xbe0   :  { %7500 = vmatprep.subr.msk.bf16.mxu1 %vm432_vm3, %v3923_v35 }
 0xbe1   :  { %7251 = vmatpush3.bf16.xpose.msra.mxu0 %v3863_v6  ;;  %v3921_v46 = vpop.permute.xlu1 %3920 }
 0xbe2   :  { %7502 = vmatprep.subr.msk.bf16.mxu0 %vm432_vm3, %v3991_v5  ;;  %v3931_v33 = vsel %vm432_vm3, %v3921_v46, 0 }
 0xbe3   :  { %v3989_v63 = vpop.permute.xlu0 %3988 }
 0xbe4   :  { %v3999_v26 = vsel %vm432_vm3, %v3989_v63, 0 }
 0xbe5   :  { %v3917_v31 = vpop.permute.xlu1 %3916 }
 0xbe6   :  { %7245 = vmatmul.mubr.msk.bf16.vlgmr.msra.gmra.mxu1 %vm432_vm3, %v3783_v29 }
 0xbe7   :  { %v4059_v42 = vpop.permute.xlu0 %4058  ;;  %7257 = vmatpush3.bf16.xpose.msra.mxu1 %v3934_v61  ;;  %7260 = vmatprep.mubr.msk.bf16.mxu1 %vm432_vm3, %v3917_v31 }
 0xbe8   :  { %7253 = vmatmul.mubr.msk.bf16.vlgmr.msra.gmra.mxu0 %vm432_vm3, %v3851_v1  ;;  %7501 = vmatprep.subr.msk.bf16.mxu1 %vm432_vm3, %v3921_v46  ;;  %v4070_v44 = vsel %vm432_vm3, %v4059_v42, 0 }
 0xbe9   :  { %7265 = vmatpush3.bf16.xpose.msra.mxu0 %v4002_v39  ;;  %v3919_v10 = vpop.permute.xlu1 %3918 }
 0xbea   :  { %7503 = vmatprep.subr.msk.bf16.mxu0 %vm432_vm3, %v3989_v63 }
 0xbeb   :  { %v3985_v24 = vpop.permute.xlu0 %3984 }
 0xbec   :  { %7268 = vmatprep.mubr.msk.bf16.mxu0 %vm432_vm3, %v3985_v24 }
 0xbed   :  { %v4127_v30 = vpop.permute.xlu1 %4126 }
 0xbee   :  { %v4138_v7 = vsel %vm432_vm3, %v4127_v30, 0 }
 0xbef   :  { %v3987_v18 = vpop.permute.xlu0 %3986  ;;  %7259 = vmatpush3.bf16.xpose.msra.mxu1 %v3931_v33 }
 0xbf0   :  { %7504 = vmatprep.subr.msk.bf16.mxu1 %vm432_vm3, %v4059_v42 }
 0xbf1   :  { %7267 = vmatpush3.bf16.xpose.msra.mxu0 %v3999_v26  ;;  %v4057_v36 = vpop.permute.xlu1 %4056 }
 0xbf2   :  { %7506 = vmatprep.subr.msk.bf16.mxu0 %vm432_vm3, %v4127_v30  ;;  %v4067_v21 = vsel %vm432_vm3, %v4057_v36, 0 }
 0xbf3   :  { %v4125_v12 = vpop.permute.xlu0 %4124 }
 0xbf4   :  { %v4135_v34 = vsel %vm432_vm3, %v4125_v12, 0 }
 0xbf5   :  { %v4053_v15 = vpop.permute.xlu1 %4052 }
 0xbf6   :  { %7261 = vmatmul.mubr.msk.bf16.vlgmr.msra.gmra.mxu1 %vm432_vm3, %v3919_v10 }
 0xbf7   :  { %v4195_v8 = vpop.permute.xlu0 %4194  ;;  %7273 = vmatpush3.bf16.xpose.msra.mxu1 %v4070_v44  ;;  %7276 = vmatprep.mubr.msk.bf16.mxu1 %vm432_vm3, %v4053_v15 }
 0xbf8   :  { %7269 = vmatmul.mubr.msk.bf16.vlgmr.msra.gmra.mxu0 %vm432_vm3, %v3987_v18  ;;  %7505 = vmatprep.subr.msk.bf16.mxu1 %vm432_vm3, %v4057_v36  ;;  %v4206_v2 = vsel %vm432_vm3, %v4195_v8, 0 }
 0xbf9   :  { %7281 = vmatpush3.bf16.xpose.msra.mxu0 %v4138_v7  ;;  %v4055_v58 = vpop.permute.xlu1 %4054 }
 0xbfa   :  { %7507 = vmatprep.subr.msk.bf16.mxu0 %vm432_vm3, %v4125_v12 }
 0xbfb   :  { %v4121_v23 = vpop.permute.xlu0 %4120 }
 0xbfc   :  { %7284 = vmatprep.mubr.msk.bf16.mxu0 %vm432_vm3, %v4121_v23 }
 0xbfd   :  { %v4263_v47 = vpop.permute.xlu1 %4262 }
 0xbfe   :  { %v4274_v60 = vsel %vm432_vm3, %v4263_v47, 0 }
 0xbff   :  { %v4123_v16 = vpop.permute.xlu0 %4122  ;;  %7275 = vmatpush3.bf16.xpose.msra.mxu1 %v4067_v21 }
 0xc00   :  { %7508 = vmatprep.subr.msk.bf16.mxu1 %vm432_vm3, %v4195_v8 }
 0xc01   :  { %7283 = vmatpush3.bf16.xpose.msra.mxu0 %v4135_v34  ;;  %v4193_v48 = vpop.permute.xlu1 %4192 }
 0xc02   :  { %7510 = vmatprep.subr.msk.bf16.mxu0 %vm432_vm3, %v4263_v47  ;;  %v4203_v11 = vsel %vm432_vm3, %v4193_v48, 0 }
 0xc03   :  { %v4261_v57 = vpop.permute.xlu0 %4260 }
 0xc04   :  { %v4271_v52 = vsel %vm432_vm3, %v4261_v57, 0 }
 0xc05   :  { %v4189_v50 = vpop.permute.xlu1 %4188 }
 0xc06   :  { %7277 = vmatmul.mubr.msk.bf16.vlgmr.msra.gmra.mxu1 %vm432_vm3, %v4055_v58 }
 0xc07   :  { %v4331_v55 = vpop.permute.xlu0 %4330  ;;  %7289 = vmatpush3.bf16.xpose.msra.mxu1 %v4206_v2  ;;  %7292 = vmatprep.mubr.msk.bf16.mxu1 %vm432_vm3, %v4189_v50 }
 0xc08   :  { %7285 = vmatmul.mubr.msk.bf16.vlgmr.msra.gmra.mxu0 %vm432_vm3, %v4123_v16  ;;  %7509 = vmatprep.subr.msk.bf16.mxu1 %vm432_vm3, %v4193_v48  ;;  %v4342_v54 = vsel %vm432_vm3, %v4331_v55, 0  ;;  %v10891_v48 = vld [vmem:[#allocation21_spill] sm:$0xff] }
 0xc09   :  { %7297 = vmatpush3.bf16.xpose.msra.mxu0 %v4274_v60  ;;  %v4191_v32 = vpop.permute.xlu1 %4190 }
 0xc0a   :  { %7511 = vmatprep.subr.msk.bf16.mxu0 %vm432_vm3, %v4261_v57 }
 0xc0b   :  { %v4257_v17 = vpop.permute.xlu0 %4256 }
 0xc0c   :  { %7300 = vmatprep.mubr.msk.bf16.mxu0 %vm432_vm3, %v4257_v17 }
 0xc0d   :  { %v4399_v62 = vpop.permute.xlu1 %4398 }
 0xc0e   :  { %v4410_v6 = vsel %vm432_vm3, %v4399_v62, 0 }
 0xc0f   :  { %v4259_v35 = vpop.permute.xlu0 %4258  ;;  %7291 = vmatpush3.bf16.xpose.msra.mxu1 %v4203_v11 }
 0xc10   :  { %7512 = vmatprep.subr.msk.bf16.mxu1 %vm432_vm3, %v4331_v55 }
 0xc11   :  { %7299 = vmatpush3.bf16.xpose.msra.mxu0 %v4271_v52  ;;  %v4329_v29 = vpop.permute.xlu1 %4328 }
 0xc12   :  { %7514 = vmatprep.subr.msk.bf16.mxu0 %vm432_vm3, %v4399_v62  ;;  %v4339_v61 = vsel %vm432_vm3, %v4329_v29, 0 }
 0xc13   :  { %v4325_v9 = vpop.permute.xlu0 %4324 }
 0xc15   :  { %v4397_v5 = vpop.permute.xlu1 %4396 }
 0xc16   :  { %7293 = vmatmul.mubr.msk.bf16.vlgmr.msra.gmra.mxu1 %vm432_vm3, %v4191_v32  ;;  %v4407_v39 = vsel %vm432_vm3, %v4397_v5, 0 }
 0xc17   :  { %v4327_v1 = vpop.permute.xlu0 %4326  ;;  %7305 = vmatpush3.bf16.xpose.msra.mxu1 %v4342_v54  ;;  %7308 = vmatprep.mubr.msk.bf16.mxu1 %vm432_vm3, %v4325_v9 }
 0xc18   :  { %7301 = vmatmul.mubr.msk.bf16.vlgmr.msra.gmra.mxu0 %vm432_vm3, %v4259_v35  ;;  %7513 = vmatprep.subr.msk.bf16.mxu1 %vm432_vm3, %v4329_v29 }
 0xc19   :  { %7313 = vmatpush3.bf16.xpose.msra.mxu0 %v4410_v6  ;;  %v4393_v46 = vpop.permute.xlu1 %4392 }
 0xc1a   :  { %7515 = vmatprep.subr.msk.bf16.mxu0 %vm432_vm3, %v4397_v5  ;;  %7316 = vmatprep.mubr.msk.bf16.mxu0 %vm432_vm3, %v4393_v46 }
 0xc1b   :  { %v4395_v63 = vpop.permute.xlu0 %4394 }
 0xc1d   :  { %v4467_v31 = vpop.permute.xlu1 %4466 }
 0xc1e   :  { %v4478_v33 = vsel %vm432_vm3, %v4467_v31, 0 }
 0xc1f   :  { %v4535_v42 = vpop.permute.xlu0 %4534  ;;  %7307 = vmatpush3.bf16.xpose.msra.mxu1 %v4339_v61 }
 0xc20   :  { %7516 = vmatprep.subr.msk.bf16.mxu1 %vm432_vm3, %v4467_v31  ;;  %v4546_v26 = vsel %vm432_vm3, %v4535_v42, 0 }
 0xc21   :  { %7315 = vmatpush3.bf16.xpose.msra.mxu0 %v4407_v39  ;;  %v4465_v10 = vpop.permute.xlu1 %4464 }
 0xc22   :  { %7518 = vmatprep.subr.msk.bf16.mxu0 %vm432_vm3, %v4535_v42  ;;  %v4475_v44 = vsel %vm432_vm3, %v4465_v10, 0 }
 0xc23   :  { %v4461_v24 = vpop.permute.xlu0 %4460 }
 0xc25   :  { %v4533_v30 = vpop.permute.xlu1 %4532 }
 0xc26   :  { %7309 = vmatmul.mubr.msk.bf16.vlgmr.msra.gmra.mxu1 %vm432_vm3, %v4327_v1  ;;  %v4543_v7 = vsel %vm432_vm3, %v4533_v30, 0 }
 0xc27   :  { %v4463_v18 = vpop.permute.xlu0 %4462  ;;  %7321 = vmatpush3.bf16.xpose.msra.mxu1 %v4478_v33  ;;  %7324 = vmatprep.mubr.msk.bf16.mxu1 %vm432_vm3, %v4461_v24 }
 0xc28   :  { %7317 = vmatmul.mubr.msk.bf16.vlgmr.msra.gmra.mxu0 %vm432_vm3, %v4395_v63  ;;  %7517 = vmatprep.subr.msk.bf16.mxu1 %vm432_vm3, %v4465_v10 }
 0xc29   :  { %7329 = vmatpush3.bf16.xpose.msra.mxu0 %v4546_v26  ;;  %v4529_v36 = vpop.permute.xlu1 %4528 }
 0xc2a   :  { %7519 = vmatprep.subr.msk.bf16.mxu0 %vm432_vm3, %v4533_v30  ;;  %7332 = vmatprep.mubr.msk.bf16.mxu0 %vm432_vm3, %v4529_v36 }
 0xc2b   :  { %v4531_v12 = vpop.permute.xlu0 %4530 }
 0xc2d   :  { %v5197_v15 = vpop.permute.xlu1 %5196 }
 0xc2f   :  { %v5199_v8 = vpop.permute.xlu0 %5198  ;;  %7323 = vmatpush3.bf16.xpose.msra.mxu1 %v4475_v44 }
 0xc30   :  { %7520 = vmatprep.subr.msk.bf16.mxu1 %vm2131_vm4, %v5199_v8  ;;  %v5220_v23 = vsel %vm2131_vm4, %v5199_v8, 0 }
 0xc31   :  { %7331 = vmatpush3.bf16.xpose.msra.mxu0 %v4543_v7  ;;  %v5306_v58 = vpop.permute.xlu1 %5305 }
 0xc32   :  { %7521 = vmatprep.subr.msk.bf16.mxu0 %vm2131_vm4, %v5306_v58  ;;  %v5327_v47 = vsel %vm2131_vm4, %v5306_v58, 0 }
 0xc33   :  { %v9866_v16 = vpop.permute.xlu0 %5412 }
 0xc34   :  { %10890 = vst [vmem:[#allocation12_spill] sm:$0xff] %v9866_v16 }
 0xc35   :  { %v5304_v21 = vpop.permute.xlu1 %5303 }
 0xc36   :  { %7325 = vmatmul.mubr.msk.bf16.vlgmr.msra.gmra.mxu1 %vm432_vm3, %v4463_v18 }
 0xc37   :  { %7337 = vmatpush3.bf16.msra.mxu1 %v5220_v23 }
 0xc38   :  { %7333 = vmatmul.mubr.msk.bf16.vlgmr.msra.gmra.mxu0 %vm432_vm3, %v4531_v12  ;;  %7338 = vmatprep.subr.bf16.mxu1 %v5197_v15 }
 0xc39   :  { %7353 = vmatpush3.bf16.msra.mxu0 %v5327_v47 }
 0xc3a   :  { %7354 = vmatprep.subr.bf16.mxu0 %v5304_v21 }
 0xc3b   :  { %7339 = vmatpush3.bf16.msra.mxu1 %v5197_v15 }
 0xc3c   :  { %7522 = vmatprep.subr.msk.bf16.mxu1 %vm2131_vm4, %v9866_v16 }
 0xc3d   :  { %7355 = vmatpush3.bf16.msra.mxu0 %v5304_v21 }
 0xc82   :  { %v7214_v34 = vpop.f32.mrf.mxu1 }
 0xc83   :  { %v9871_v57 = vadd.f32 %v7214_v34, %v10891_v48 }
 0xc84   :  { %v3568_v50 = vpop.f32.mrf.mxu1 }
 0xc85   :  { %v9874_v2 = vadd.f32 %v3568_v50, %v10891_v48  ;;  %v4650_v55 = vsel %vm1555_vm6, %v9871_v57, -inf }
 0xc86   :  { %v7222_v60 = vpop.f32.mrf.mxu0  ;;  %4651 = vmax.xlane.f32.xlu0 %v4650_v55  ;;  %v7215_v32 = vpop.f32.mrf.mxu1 }
 0xc87   :  { %v4644_v17 = vsel %vm1555_vm6, %v9874_v2, -inf  ;;  %v9884_v29 = vadd.f32 %v7222_v60, %v10891_v48 }
 0xc88   :  { %v3634_v62 = vpop.f32.mrf.mxu0  ;;  %4645 = vmax.xlane.f32.xlu1 %v4644_v17  ;;  %v3571_v11 = vpop.f32.mrf.mxu1 }
 0xc89   :  { %v9881_v35 = vadd.f32 %v3571_v11, %v10891_v48  ;;  %v9892_v1 = vadd.f32 %v3634_v62, %v10891_v48  ;;  %v4686_v46 = vsel %vm1555_vm6, %v9884_v29, -inf }
 0xc8a   :  { %v7223_v52 = vpop.f32.mrf.mxu0 }
 0xc8b   :  { %v4647_v9 = vsel %vm1555_vm6, %v9881_v35, -inf  ;;  %v4680_v63 = vsel %vm1555_vm6, %v9892_v1, -inf }
 0xc8c   :  { %v3637_v5 = vpop.f32.mrf.mxu0  ;;  %4648 = vmax.xlane.f32.xlu0 %v4647_v9 }
 0xc8d   :  { %v9889_v54 = vadd.f32 %v3637_v5, %v10891_v48 }
 0xc8f   :  { %v4683_v6 = vsel %vm1555_vm6, %v9889_v54, -inf }
 0xc90   :  { %4684 = vmax.xlane.f32.xlu1 %v4683_v6  ;;  %4687 = vmax.xlane.f32.xlu0 %v4686_v46 }
 0xc94   :  { %4681 = vmax.xlane.f32.xlu0 %v4680_v63 }
 0xc96   :  { %v7230_v31 = vpop.f32.mrf.mxu1 }
 0xc97   :  { %v9901_v61 = vadd.f32 %v7230_v31, %v10891_v48 }
 0xc98   :  { %v3700_v42 = vpop.f32.mrf.mxu1  ;;  %v7238_v39 = vpop.f32.mrf.mxu0 }
 0xc99   :  { %v9904_v10 = vadd.f32 %v3700_v42, %v10891_v48  ;;  %v4722_v24 = vsel %vm1555_vm6, %v9901_v61, -inf  ;;  %v9909_v36 = vadd.f32 %v7238_v39, %v10891_v48 }
 0xc9a   :  { %v3766_v30 = vpop.f32.mrf.mxu0  ;;  %4723 = vmax.xlane.f32.xlu0 %v4722_v24  ;;  %v7231_v33 = vpop.f32.mrf.mxu1 }
 0xc9b   :  { %v4716_v15 = vsel %vm1555_vm6, %v9904_v10, -inf  ;;  %v9922_v58 = vadd.f32 %v3766_v30, %v10891_v48  ;;  %v4758_v23 = vsel %vm1555_vm6, %v9909_v36, -inf }
 0xc9c   :  { %v3703_v18 = vpop.f32.mrf.mxu1  ;;  %v7239_v26 = vpop.f32.mrf.mxu0 }
 0xc9d   :  { %v9912_v12 = vadd.f32 %v3703_v18, %v10891_v48  ;;  %v4752_v21 = vsel %vm1555_vm6, %v9922_v58, -inf }
 0xc9e   :  { %v3769_v44 = vpop.f32.mrf.mxu0  ;;  %4717 = vmax.xlane.f32.xlu0 %v4716_v15 }
 0xc9f   :  { %v9917_v8 = vadd.f32 %v3769_v44, %v10891_v48  ;;  %v4719_v7 = vsel %vm1555_vm6, %v9912_v12, -inf }
 0xca0   :  { %4720 = vmax.xlane.f32.xlu1 %v4719_v7 }
 0xca1   :  { %v4755_v47 = vsel %vm1555_vm6, %v9917_v8, -inf }
 0xca2   :  { %4759 = vmax.xlane.f32.xlu0 %v4758_v23 }
 0xca4   :  { %4756 = vmax.xlane.f32.xlu1 %v4755_v47 }
 0xca6   :  { %4753 = vmax.xlane.f32.xlu0 %v4752_v21  ;;  %v7246_v34 = vpop.f32.mrf.mxu1 }
 0xca7   :  { %v9931_v50 = vadd.f32 %v7246_v34, %v10891_v48 }
 0xca8   :  { %v3834_v55 = vpop.f32.mrf.mxu1  ;;  %v7254_v60 = vpop.f32.mrf.mxu0 }
 0xca9   :  { %v9934_v32 = vadd.f32 %v3834_v55, %v10891_v48  ;;  %v4659_v17 = vsel %vm1555_vm6, %v9931_v50, -inf  ;;  %v9939_v5 = vadd.f32 %v7254_v60, %v10891_v48 }
 0xcaa   :  { %v3902_v62 = vpop.f32.mrf.mxu0  ;;  %4660 = vmax.xlane.f32.xlu1 %v4659_v17  ;;  %v7247_v11 = vpop.f32.mrf.mxu1 }
 0xcab   :  { %v4653_v46 = vsel %vm1555_vm6, %v9934_v32, -inf  ;;  %v9952_v39 = vadd.f32 %v3902_v62, %v10891_v48  ;;  %v4695_v24 = vsel %vm1555_vm6, %v9939_v5, -inf }
 0xcac   :  { %v3837_v52 = vpop.f32.mrf.mxu1  ;;  %v7255_v9 = vpop.f32.mrf.mxu0 }
 0xcad   :  { %v9942_v6 = vadd.f32 %v3837_v52, %v10891_v48  ;;  %v4689_v33 = vsel %vm1555_vm6, %v9952_v39, -inf }
 0xcae   :  { %v3905_v63 = vpop.f32.mrf.mxu0  ;;  %4654 = vmax.xlane.f32.xlu1 %v4653_v46 }
 0xcaf   :  { %v9947_v31 = vadd.f32 %v3905_v63, %v10891_v48  ;;  %v4656_v42 = vsel %vm1555_vm6, %v9942_v6, -inf }
 0xcb0   :  { %4657 = vmax.xlane.f32.xlu0 %v4656_v42 }
 0xcb1   :  { %v4692_v30 = vsel %vm1555_vm6, %v9947_v31, -inf }
 0xcb2   :  { %4696 = vmax.xlane.f32.xlu1 %v4695_v24 }
 0xcb4   :  { %4693 = vmax.xlane.f32.xlu0 %v4692_v30 }
 0xcb6   :  { %4690 = vmax.xlane.f32.xlu1 %v4689_v33  ;;  %v7262_v18 = vpop.f32.mrf.mxu1 }
 0xcb7   :  { %v9961_v26 = vadd.f32 %v7262_v18, %v10891_v48 }
 0xcb8   :  { %v3970_v15 = vpop.f32.mrf.mxu1  ;;  %v7270_v44 = vpop.f32.mrf.mxu0 }
 0xcb9   :  { %v9964_v7 = vadd.f32 %v3970_v15, %v10891_v48  ;;  %v4731_v23 = vsel %vm1555_vm6, %v9961_v26, -inf  ;;  %v9969_v60 = vadd.f32 %v7270_v44, %v10891_v48 }
 0xcba   :  { %v4038_v47 = vpop.f32.mrf.mxu0  ;;  %4732 = vmax.xlane.f32.xlu1 %v4731_v23  ;;  %v7263_v21 = vpop.f32.mrf.mxu1 }
 0xcbb   :  { %v4725_v62 = vsel %vm1555_vm6, %v9964_v7, -inf  ;;  %v9982_v46 = vadd.f32 %v4038_v47, %v10891_v48  ;;  %v4767_v63 = vsel %vm1555_vm6, %v9969_v60, -inf }
 0xcbc   :  { %v3973_v34 = vpop.f32.mrf.mxu1  ;;  %v7271_v55 = vpop.f32.mrf.mxu0 }
 0xcbd   :  { %v9972_v17 = vadd.f32 %v3973_v34, %v10891_v48  ;;  %v4761_v24 = vsel %vm1555_vm6, %v9982_v46, -inf }
 0xcbe   :  { %v4041_v11 = vpop.f32.mrf.mxu0  ;;  %4726 = vmax.xlane.f32.xlu1 %v4725_v62 }
 0xcbf   :  { %v9977_v52 = vadd.f32 %v4041_v11, %v10891_v48  ;;  %v4728_v9 = vsel %vm1555_vm6, %v9972_v17, -inf }
 0xcc0   :  { %4729 = vmax.xlane.f32.xlu0 %v4728_v9 }
 0xcc1   :  { %v4764_v42 = vsel %vm1555_vm6, %v9977_v52, -inf }
 0xcc2   :  { %4768 = vmax.xlane.f32.xlu1 %v4767_v63 }
 0xcc4   :  { %4765 = vmax.xlane.f32.xlu0 %v4764_v42 }
 0xcc6   :  { %4762 = vmax.xlane.f32.xlu1 %v4761_v24  ;;  %v7278_v30 = vpop.f32.mrf.mxu1 }
 0xcc7   :  { %v9991_v33 = vadd.f32 %v7278_v30, %v10891_v48 }
 0xcc8   :  { %v4106_v18 = vpop.f32.mrf.mxu1  ;;  %v7286_v15 = vpop.f32.mrf.mxu0 }
 0xcc9   :  { %v9994_v44 = vadd.f32 %v4106_v18, %v10891_v48  ;;  %v4668_v23 = vsel %vm1555_vm6, %v9991_v33, -inf  ;;  %v9999_v62 = vadd.f32 %v7286_v15, %v10891_v48 }
 0xcca   :  { %v4174_v47 = vpop.f32.mrf.mxu0  ;;  %4669 = vmax.xlane.f32.xlu0 %v4668_v23  ;;  %v7279_v21 = vpop.f32.mrf.mxu1 }
 0xccb   :  { %v4662_v9 = vsel %vm1555_vm6, %v9994_v44, -inf  ;;  %v10012_v30 = vadd.f32 %v4174_v47, %v10891_v48  ;;  %v4704_v18 = vsel %vm1555_vm6, %v9999_v62, -inf }
 0xccc   :  { %v4109_v34 = vpop.f32.mrf.mxu1  ;;  %v7287_v55 = vpop.f32.mrf.mxu0 }
 0xccd   :  { %v10002_v11 = vadd.f32 %v4109_v34, %v10891_v48  ;;  %v4698_v23 = vsel %vm1555_vm6, %v10012_v30, -inf }
 0xcce   :  { %v4177_v63 = vpop.f32.mrf.mxu0  ;;  %4663 = vmax.xlane.f32.xlu0 %v4662_v9 }
 0xccf   :  { %v10007_v42 = vadd.f32 %v4177_v63, %v10891_v48  ;;  %v4665_v24 = vsel %vm1555_vm6, %v10002_v11, -inf }
 0xcd0   :  { %4666 = vmax.xlane.f32.xlu1 %v4665_v24 }
 0xcd1   :  { %v4701_v15 = vsel %vm1555_vm6, %v10007_v42, -inf }
 0xcd2   :  { %4705 = vmax.xlane.f32.xlu0 %v4704_v18 }
 0xcd4   :  { %4702 = vmax.xlane.f32.xlu1 %v4701_v15 }
 0xcd6   :  { %4699 = vmax.xlane.f32.xlu0 %v4698_v23  ;;  %v7294_v21 = vpop.f32.mrf.mxu1 }
 0xcd7   :  { %v10021_v34 = vadd.f32 %v7294_v21, %v10891_v48 }
 0xcd8   :  { %v4242_v55 = vpop.f32.mrf.mxu1  ;;  %v7302_v9 = vpop.f32.mrf.mxu0 }
 0xcd9   :  { %v10024_v47 = vadd.f32 %v4242_v55, %v10891_v48  ;;  %v4740_v63 = vsel %vm1555_vm6, %v10021_v34, -inf  ;;  %v10029_v38 = vadd.f32 %v7302_v9, %v10891_v48 }
 0xcda   :  { %v4310_v24 = vpop.f32.mrf.mxu0  ;;  %4741 = vmax.xlane.f32.xlu0 %v4740_v63  ;;  %v7295_v18 = vpop.f32.mrf.mxu1 }
 0xcdb   :  { %v4734_v21 = vsel %vm1555_vm6, %v10024_v47, -inf  ;;  %v4776_v9 = vsel %vm1555_vm6, %v10029_v38, -inf }
 0xcdc   :  { %v4245_v15 = vpop.f32.mrf.mxu1  ;;  %v7303_v45 = vpop.f32.mrf.mxu0 }
 0xcdd   :  { %v10032_v23 = vadd.f32 %v4245_v15, %v10891_v48  ;;  %v10042_v45 = vadd.f32 %v4310_v24, %v10891_v48 }
 0xcde   :  { %v4313_v49 = vpop.f32.mrf.mxu0  ;;  %4735 = vmax.xlane.f32.xlu0 %v4734_v21 }
 0xcdf   :  { %v10037_v55 = vadd.f32 %v4313_v49, %v10891_v48  ;;  %v4737_v63 = vsel %vm1555_vm6, %v10032_v23, -inf  ;;  %v4770_v15 = vsel %vm1555_vm6, %v10042_v45, -inf }
 0xce0   :  { %4738 = vmax.xlane.f32.xlu1 %v4737_v63 }
 0xce1   :  { %v4773_v18 = vsel %vm1555_vm6, %v10037_v55, -inf }
 0xce2   :  { %4777 = vmax.xlane.f32.xlu0 %v4776_v9 }
 0xce4   :  { %4774 = vmax.xlane.f32.xlu1 %v4773_v18 }
 0xce6   :  { %4771 = vmax.xlane.f32.xlu0 %v4770_v15  ;;  %v7310_v49 = vpop.f32.mrf.mxu1 }
 0xce7   :  { %v10051_v21 = vadd.f32 %v7310_v49, %v10891_v48 }
 0xce8   :  { %v4378_v63 = vpop.f32.mrf.mxu1  ;;  %v7318_v3 = vpop.f32.mrf.mxu0 }
 0xce9   :  { %v10054_v24 = vadd.f32 %v4378_v63, %v10891_v48  ;;  %v4677_v9 = vsel %vm1555_vm6, %v10051_v21, -inf  ;;  %v10059_v53 = vadd.f32 %v7318_v3, %v10891_v48 }
 0xcea   :  { %4678 = vmax.xlane.f32.xlu1 %v4677_v9  ;;  %v7311_v27 = vpop.f32.mrf.mxu1  ;;  %v4446_v25 = vpop.f32.mrf.mxu0 }
 0xceb   :  { %v4671_v49 = vsel %vm1555_vm6, %v10054_v24, -inf  ;;  %v4713_v3 = vsel %vm1555_vm6, %v10059_v53, -inf }
 0xcec   :  { %v4381_v18 = vpop.f32.mrf.mxu1  ;;  %v7319_v41 = vpop.f32.mrf.mxu0 }
 0xced   :  { %v10062_v15 = vadd.f32 %v4381_v18, %v10891_v48  ;;  %v10072_v41 = vadd.f32 %v4446_v25, %v10891_v48 }
 0xcee   :  { %4672 = vmax.xlane.f32.xlu1 %v4671_v49  ;;  %v4449_v63 = vpop.f32.mrf.mxu0 }
 0xcef   :  { %v10067_v0 = vadd.f32 %v4449_v63, %v10891_v48  ;;  %v4674_v27 = vsel %vm1555_vm6, %v10062_v15, -inf  ;;  %v4707_v18 = vsel %vm1555_vm6, %v10072_v41, -inf }
 0xcf0   :  { %4675 = vmax.xlane.f32.xlu0 %v4674_v27 }
 0xcf1   :  { %v4710_v9 = vsel %vm1555_vm6, %v10067_v0, -inf }
 0xcf2   :  { %4714 = vmax.xlane.f32.xlu1 %v4713_v3 }
 0xcf4   :  { %4711 = vmax.xlane.f32.xlu0 %v4710_v9 }
 0xcf6   :  { %4708 = vmax.xlane.f32.xlu1 %v4707_v18  ;;  %v7326_v49 = vpop.f32.mrf.mxu1 }
 0xcf7   :  { %v10081_v63 = vadd.f32 %v7326_v49, %v10891_v48 }
 0xcf8   :  { %v4514_v27 = vpop.f32.mrf.mxu1  ;;  %v7334_v28 = vpop.f32.mrf.mxu0 }
 0xcf9   :  { %v10084_v25 = vadd.f32 %v4514_v27, %v10891_v48  ;;  %v4749_v3 = vsel %vm1555_vm6, %v10081_v63, -inf  ;;  %v10089_v40 = vadd.f32 %v7334_v28, %v10891_v48 }
 0xcfa   :  { %4750 = vmax.xlane.f32.xlu1 %v4749_v3  ;;  %v7327_v37 = vpop.f32.mrf.mxu1  ;;  %v4582_v14 = vpop.f32.mrf.mxu0 }
 0xcfb   :  { %v4743_v49 = vsel %vm1555_vm6, %v10084_v25, -inf  ;;  %v4785_v28 = vsel %vm1555_vm6, %v10089_v40, -inf }
 0xcfc   :  { %v4517_v9 = vpop.f32.mrf.mxu1  ;;  %v7335_v59 = vpop.f32.mrf.mxu0 }
 0xcfd   :  { %v10092_v18 = vadd.f32 %v4517_v9, %v10891_v48  ;;  %v10102_v59 = vadd.f32 %v4582_v14, %v10891_v48 }
 0xcfe   :  { %4744 = vmax.xlane.f32.xlu1 %v4743_v49  ;;  %v4585_v27 = vpop.f32.mrf.mxu0  ;;  %v10110_v49 = vpop.permute.xlu0 %5410 }
 0xcff   :  { %v10097_v4 = vadd.f32 %v4585_v27, %v10891_v48  ;;  %v4746_v37 = vsel %vm1555_vm6, %v10092_v18, -inf  ;;  %v4779_v9 = vsel %vm1555_vm6, %v10102_v59, -inf  ;;  %10892 = vst [vmem:[#allocation18_spill] sm:$0xff] %v10110_v49 }
 0xd00   :  { %4747 = vmax.xlane.f32.xlu0 %v4746_v37 }
 0xd01   :  { %v4782_v3 = vsel %vm1555_vm6, %v10097_v4, -inf }
 0xd02   :  { %4786 = vmax.xlane.f32.xlu1 %v4785_v28 }
 0xd04   :  { %4783 = vmax.xlane.f32.xlu0 %v4782_v3 }
 0xd06   :  { %4780 = vmax.xlane.f32.xlu1 %v4779_v9 }
 0xd0f   :  { %v4652_v27 = vpop.xlane.xlu0 %4651 }
 0xd10   :  { %v4790_v37 = vsub.f32 %v9871_v57, %v4652_v27 }
 0xd11   :  { %v4646_v51 = vpop.xlane.xlu1 %4645 }
 0xd12   :  { %v4840_v14 = vmul.f32 1.442695, %v4790_v37  ;;  %v4788_v48 = vsub.f32 %v9874_v2, %v4646_v51 }
 0xd14   :  { %7806 = vpow2.f32 %v4840_v14  ;;  %v4836_v20 = vmul.f32 1.442695, %v4788_v48 }
 0xd15   :  { %v4649_v28 = vpop.xlane.xlu0 %4648 }
 0xd16   :  { %7808 = vpow2.f32 %v4836_v20  ;;  %v4789_v19 = vsub.f32 %v9881_v35, %v4649_v28 }
 0xd18   :  { %v4838_v3 = vmul.f32 1.442695, %v4789_v19 }
 0xd19   :  { %v4688_v56 = vpop.xlane.xlu0 %4687  ;;  %v4685_v22 = vpop.xlane.xlu1 %4684 }
 0xd1a   :  { %7810 = vpow2.f32 %v4838_v3  ;;  %v4802_v9 = vsub.f32 %v9884_v29, %v4688_v56  ;;  %v4801_v49 = vsub.f32 %v9889_v54, %v4685_v22 }
 0xd1c   :  { %v4864_v16 = vmul.f32 1.442695, %v4802_v9  ;;  %v4862_v57 = vmul.f32 1.442695, %v4801_v49 }
 0xd1d   :  { %v4682_v27 = vpop.xlane.xlu0 %4681 }
 0xd1e   :  { %7812 = vpow2.f32 %v4864_v16  ;;  %v4800_v51 = vsub.f32 %v9892_v1, %v4682_v27 }
 0xd1f   :  { %7814 = vpow2.f32 %v4862_v57 }
 0xd20   :  { %v4860_v2 = vmul.f32 1.442695, %v4800_v51 }
 0xd21   :  { %v10118_v37 = vpop.eup %7806 }
 0xd22   :  { %7816 = vpow2.f32 %v4860_v2  ;;  %v4938_v19 = vsel %vm1555_vm6, %v10118_v37, 0.0 }
 0xd23   :  { %v4724_v20 = vpop.xlane.xlu0 %4723  ;;  %v10122_v35 = vpop.eup %7808  ;;  %4939 = vadd.xlane.f32.xlu0 %v4938_v19 }
 0xd24   :  { %v4814_v56 = vsub.f32 %v9901_v61, %v4724_v20  ;;  %v4932_v16 = vsel %vm1555_vm6, %v10122_v35, 0.0 }
 0xd26   :  { %v4888_v22 = vmul.f32 1.442695, %v4814_v56 }
 0xd27   :  { %v4718_v29 = vpop.xlane.xlu0 %4717  ;;  %v10127_v54 = vpop.eup %7810  ;;  %4933 = vadd.xlane.f32.xlu0 %v4932_v16 }
 0xd28   :  { %7818 = vpow2.f32 %v4888_v22  ;;  %v4812_v1 = vsub.f32 %v9904_v10, %v4718_v29  ;;  %v4935_v14 = vsel %vm1555_vm6, %v10127_v54, 0.0 }
 0xd29   :  { %v4721_v49 = vpop.xlane.xlu1 %4720  ;;  %4936 = vadd.xlane.f32.xlu1 %v4935_v14 }
 0xd2a   :  { %v4884_v48 = vmul.f32 1.442695, %v4812_v1  ;;  %v4813_v28 = vsub.f32 %v9912_v12, %v4721_v49 }
 0xd2b   :  { %v4760_v61 = vpop.xlane.xlu0 %4759  ;;  %v10133_v3 = vpop.eup %7812 }
 0xd2c   :  { %7820 = vpow2.f32 %v4884_v48  ;;  %v4886_v9 = vmul.f32 1.442695, %v4813_v28  ;;  %v4826_v57 = vsub.f32 %v9909_v36, %v4760_v61  ;;  %v10136_v27 = vpop.eup %7814  ;;  %v4974_v10 = vsel %vm1555_vm6, %v10133_v3, 0.0 }
 0xd2d   :  { %v4757_v51 = vpop.xlane.xlu1 %4756  ;;  %4975 = vadd.xlane.f32.xlu0 %v4974_v10  ;;  %v4971_v12 = vsel %vm1555_vm6, %v10136_v27, 0.0 }
 0xd2e   :  { %7822 = vpow2.f32 %v4886_v9  ;;  %v4912_v2 = vmul.f32 1.442695, %v4826_v57  ;;  %v4825_v20 = vsub.f32 %v9917_v8, %v4757_v51  ;;  %4972 = vadd.xlane.f32.xlu1 %v4971_v12 }
 0xd2f   :  { %v4754_v19 = vpop.xlane.xlu0 %4753  ;;  %v10143_v56 = vpop.eup %7816 }
 0xd30   :  { %7824 = vpow2.f32 %v4912_v2  ;;  %v4910_v36 = vmul.f32 1.442695, %v4825_v20  ;;  %v4824_v22 = vsub.f32 %v9922_v58, %v4754_v19  ;;  %v4968_v29 = vsel %vm1555_vm6, %v10143_v56, 0.0 }
 0xd31   :  { %4969 = vadd.xlane.f32.xlu0 %v4968_v29 }
 0xd32   :  { %7826 = vpow2.f32 %v4910_v36  ;;  %v4908_v16 = vmul.f32 1.442695, %v4824_v22 }
 0xd33   :  { %v4661_v1 = vpop.xlane.xlu1 %4660 }
 0xd34   :  { %7828 = vpow2.f32 %v4908_v16  ;;  %v4793_v8 = vsub.f32 %v9931_v50, %v4661_v1 }
 0xd35   :  { %v10149_v49 = vpop.eup %7818 }
 0xd36   :  { %v4846_v14 = vmul.f32 1.442695, %v4793_v8  ;;  %v5010_v48 = vsel %vm1555_vm6, %v10149_v49, 0.0 }
 0xd37   :  { %5011 = vadd.xlane.f32.xlu1 %v5010_v48  ;;  %v4655_v28 = vpop.xlane.xlu1 %4654 }
 0xd38   :  { %7830 = vpow2.f32 %v4846_v14  ;;  %v4791_v58 = vsub.f32 %v9934_v32, %v4655_v28 }
 0xd39   :  { %v10154_v61 = vpop.eup %7820  ;;  %v4658_v9 = vpop.xlane.xlu0 %4657 }
 0xd3a   :  { %v4842_v57 = vmul.f32 1.442695, %v4791_v58  ;;  %v4792_v51 = vsub.f32 %v9942_v6, %v4658_v9  ;;  %v5004_v50 = vsel %vm1555_vm6, %v10154_v61, 0.0 }
 0xd3b   :  { %v10159_v10 = vpop.eup %7822  ;;  %5005 = vadd.xlane.f32.xlu1 %v5004_v50  ;;  %v4697_v2 = vpop.xlane.xlu1 %4696 }
 0xd3c   :  { %7832 = vpow2.f32 %v4842_v57  ;;  %v4844_v20 = vmul.f32 1.442695, %v4792_v51  ;;  %v4805_v12 = vsub.f32 %v9939_v5, %v4697_v2  ;;  %v5007_v36 = vsel %vm1555_vm6, %v10159_v10, 0.0 }
 0xd3d   :  { %v10162_v19 = vpop.eup %7824  ;;  %v4694_v32 = vpop.xlane.xlu0 %4693 }
 0xd3e   :  { %7834 = vpow2.f32 %v4844_v20  ;;  %v4870_v22 = vmul.f32 1.442695, %v4805_v12  ;;  %v4804_v6 = vsub.f32 %v9947_v31, %v4694_v32  ;;  %v5046_v29 = vsel %vm1555_vm6, %v10162_v19, 0.0 }
 0xd3f   :  { %v10169_v16 = vpop.eup %7826  ;;  %5047 = vadd.xlane.f32.xlu0 %v5046_v29  ;;  %5008 = vadd.xlane.f32.xlu1 %v5007_v36  ;;  %v4691_v1 = vpop.xlane.xlu1 %4690 }
 0xd40   :  { %7836 = vpow2.f32 %v4870_v22  ;;  %v4868_v5 = vmul.f32 1.442695, %v4804_v6  ;;  %v4803_v8 = vsub.f32 %v9952_v39, %v4691_v1  ;;  %v5043_v31 = vsel %vm1555_vm6, %v10169_v16, 0.0 }
 0xd41   :  { %v10172_v14 = vpop.eup %7828 }
 0xd42   :  { %7838 = vpow2.f32 %v4868_v5  ;;  %v4866_v48 = vmul.f32 1.442695, %v4803_v8  ;;  %v5040_v28 = vsel %vm1555_vm6, %v10172_v14, 0.0 }
 0xd43   :  { %5041 = vadd.xlane.f32.xlu1 %v5040_v28  ;;  %5044 = vadd.xlane.f32.xlu0 %v5043_v31  ;;  %v4733_v58 = vpop.xlane.xlu1 %4732 }
 0xd44   :  { %7840 = vpow2.f32 %v4866_v48  ;;  %v4817_v9 = vsub.f32 %v9961_v26, %v4733_v58 }
 0xd45   :  { %v10179_v57 = vpop.eup %7830 }
 0xd46   :  { %v4894_v51 = vmul.f32 1.442695, %v4817_v9  ;;  %v4947_v39 = vsel %vm1555_vm6, %v10179_v57, 0.0 }
 0xd47   :  { %4948 = vadd.xlane.f32.xlu1 %v4947_v39  ;;  %v4727_v50 = vpop.xlane.xlu1 %4726 }
 0xd48   :  { %7842 = vpow2.f32 %v4894_v51  ;;  %v4815_v2 = vsub.f32 %v9964_v7, %v4727_v50 }
 0xd49   :  { %v10184_v20 = vpop.eup %7832  ;;  %v4730_v12 = vpop.xlane.xlu0 %4729 }
 0xd4a   :  { %v4890_v32 = vmul.f32 1.442695, %v4815_v2  ;;  %v4816_v36 = vsub.f32 %v9972_v17, %v4730_v12  ;;  %v4941_v26 = vsel %vm1555_vm6, %v10184_v20, 0.0 }
 0xd4b   :  { %v10189_v22 = vpop.eup %7834  ;;  %4942 = vadd.xlane.f32.xlu1 %v4941_v26  ;;  %v4769_v6 = vpop.xlane.xlu1 %4768 }
 0xd4c   :  { %7844 = vpow2.f32 %v4890_v32  ;;  %v4892_v29 = vmul.f32 1.442695, %v4816_v36  ;;  %v4829_v1 = vsub.f32 %v9969_v60, %v4769_v6  ;;  %v4944_v7 = vsel %vm1555_vm6, %v10189_v22, 0.0 }
 0xd4d   :  { %v10194_v5 = vpop.eup %7836  ;;  %4945 = vadd.xlane.f32.xlu0 %v4944_v7  ;;  %v4766_v28 = vpop.xlane.xlu0 %4765 }
 0xd4e   :  { %7846 = vpow2.f32 %v4892_v29  ;;  %v4918_v8 = vmul.f32 1.442695, %v4829_v1  ;;  %v4983_v17 = vsel %vm1555_vm6, %v10194_v5, 0.0  ;;  %v4828_v51 = vsub.f32 %v9977_v52, %v4766_v28 }
 0xd4f   :  { %v10198_v48 = vpop.eup %7838  ;;  %4984 = vadd.xlane.f32.xlu1 %v4983_v17  ;;  %v4763_v31 = vpop.xlane.xlu1 %4762 }
 0xd50   :  { %v4827_v58 = vsub.f32 %v9982_v46, %v4763_v31  ;;  %v4980_v60 = vsel %vm1555_vm6, %v10198_v48, 0.0  ;;  %7848 = vpow2.f32 %v4918_v8  ;;  %v4916_v46 = vmul.f32 1.442695, %v4828_v51 }
 0xd51   :  { %v10203_v9 = vpop.eup %7840  ;;  %4981 = vadd.xlane.f32.xlu0 %v4980_v60 }
 0xd52   :  { %v4914_v39 = vmul.f32 1.442695, %v4827_v58  ;;  %v4977_v50 = vsel %vm1555_vm6, %v10203_v9, 0.0 }
 0xd53   :  { %v4670_v2 = vpop.xlane.xlu0 %4669  ;;  %4978 = vadd.xlane.f32.xlu1 %v4977_v50 }
 0xd54   :  { %v4796_v32 = vsub.f32 %v9991_v33, %v4670_v2  ;;  %7850 = vpow2.f32 %v4914_v39 }
 0xd55   :  { %v10208_v12 = vpop.eup %7842  ;;  %7852 = vpow2.f32 %v4916_v46 }
 0xd56   :  { %v5019_v36 = vsel %vm1555_vm6, %v10208_v12, 0.0  ;;  %v4852_v52 = vmul.f32 1.442695, %v4796_v32 }
 0xd57   :  { %v4664_v26 = vpop.xlane.xlu0 %4663  ;;  %5020 = vadd.xlane.f32.xlu0 %v5019_v36 }
 0xd58   :  { %v4794_v29 = vsub.f32 %v9994_v44, %v4664_v26  ;;  %7854 = vpow2.f32 %v4852_v52 }
 0xd59   :  { %v10213_v6 = vpop.eup %7844  ;;  %v4667_v1 = vpop.xlane.xlu1 %4666 }
 0xd5a   :  { %v4795_v7 = vsub.f32 %v10002_v11, %v4667_v1  ;;  %v5013_v8 = vsel %vm1555_vm6, %v10213_v6, 0.0  ;;  %v4848_v31 = vmul.f32 1.442695, %v4794_v29 }
 0xd5b   :  { %v10219_v33 = vpop.eup %7846  ;;  %v4706_v17 = vpop.xlane.xlu0 %4705  ;;  %5014 = vadd.xlane.f32.xlu0 %v5013_v8 }
 0xd5c   :  { %v4850_v28 = vmul.f32 1.442695, %v4795_v7  ;;  %v4808_v60 = vsub.f32 %v9999_v62, %v4706_v17  ;;  %v5016_v51 = vsel %vm1555_vm6, %v10219_v33, 0.0 }
 0xd5d   :  { %v4703_v58 = vpop.xlane.xlu1 %4702  ;;  %v10225_v11 = vpop.eup %7848 }
 0xd5e   :  { %7856 = vpow2.f32 %v4850_v28  ;;  %v4807_v44 = vsub.f32 %v10007_v42, %v4703_v58  ;;  %v4876_v2 = vmul.f32 1.442695, %v4808_v60  ;;  %v5055_v46 = vsel %vm1555_vm6, %v10225_v11, 0.0 }
 0xd5f   :  { %v4700_v39 = vpop.xlane.xlu0 %4699  ;;  %5017 = vadd.xlane.f32.xlu0 %v5016_v51  ;;  %7858 = vpow2.f32 %v4848_v31 }
 0xd60   :  { %v4874_v50 = vmul.f32 1.442695, %v4807_v44  ;;  %v4806_v32 = vsub.f32 %v10012_v30, %v4700_v39 }
 0xd61   :  { %v10230_v36 = vpop.eup %7850 }
 0xd62   :  { %7860 = vpow2.f32 %v4874_v50  ;;  %v4872_v42 = vmul.f32 1.442695, %v4806_v32  ;;  %v5049_v52 = vsel %vm1555_vm6, %v10230_v36, 0.0  ;;  %v10235_v29 = vpop.eup %7852 }
 0xd63   :  { %v4742_v62 = vpop.xlane.xlu0 %4741  ;;  %5056 = vadd.xlane.f32.xlu0 %v5055_v46  ;;  %7862 = vpow2.f32 %v4876_v2  ;;  %v5052_v28 = vsel %vm1555_vm6, %v10235_v29, 0.0 }
 0xd64   :  { %v4820_v26 = vsub.f32 %v10021_v34, %v4742_v62  ;;  %7864 = vpow2.f32 %v4872_v42 }
 0xd65   :  { %v10238_v8 = vpop.eup %7854 }
 0xd66   :  { %v4900_v17 = vmul.f32 1.442695, %v4820_v26  ;;  %v4956_v51 = vsel %vm1555_vm6, %v10238_v8, 0.0 }
 0xd67   :  { %v4736_v1 = vpop.xlane.xlu0 %4735  ;;  %5050 = vadd.xlane.f32.xlu0 %v5049_v52 }
 0xd68   :  { %v4818_v30 = vsub.f32 %v10024_v47, %v4736_v1  ;;  %7866 = vpow2.f32 %v4900_v17 }
 0xd69   :  { %v4739_v7 = vpop.xlane.xlu1 %4738 }
 0xd6a   :  { %v4896_v60 = vmul.f32 1.442695, %v4818_v30  ;;  %v4819_v47 = vsub.f32 %v10032_v23, %v4739_v7 }
 0xd6b   :  { %v10242_v31 = vpop.eup %7856  ;;  %v4778_v34 = vpop.xlane.xlu0 %4777  ;;  %5053 = vadd.xlane.f32.xlu0 %v5052_v28 }
 0xd6c   :  { %v4953_v58 = vsel %vm1555_vm6, %v10242_v31, 0.0  ;;  %v10246_v44 = vpop.eup %7858  ;;  %7868 = vpow2.f32 %v4896_v60  ;;  %v4898_v62 = vmul.f32 1.442695, %v4819_v47  ;;  %v4832_v42 = vsub.f32 %v10029_v38, %v4778_v34 }
 0xd6d   :  { %4954 = vadd.xlane.f32.xlu1 %v4953_v58  ;;  %v4775_v50 = vpop.xlane.xlu1 %4774  ;;  %v4950_v23 = vsel %vm1555_vm6, %v10246_v44, 0.0 }
 0xd6e   :  { %v4924_v7 = vmul.f32 1.442695, %v4832_v42 }
 0xd6f   :  { %v10251_v39 = vpop.eup %7860  ;;  %v4772_v2 = vpop.xlane.xlu0 %4771  ;;  %4957 = vadd.xlane.f32.xlu0 %v4956_v51 }
 0xd70   :  { %v4830_v32 = vsub.f32 %v10042_v45, %v4772_v2  ;;  %v4989_v46 = vsel %vm1555_vm6, %v10251_v39, 0.0  ;;  %v10259_v52 = vpop.eup %7862  ;;  %v4831_v45 = vsub.f32 %v10037_v55, %v4775_v50 }
 0xd71   :  { %4990 = vadd.xlane.f32.xlu1 %v4989_v46  ;;  %v4992_v28 = vsel %vm1555_vm6, %v10259_v52, 0.0  ;;  %v10265_v38 = vpop.eup %7864 }
 0xd72   :  { %v4920_v26 = vmul.f32 1.442695, %v4830_v32  ;;  %v4922_v60 = vmul.f32 1.442695, %v4831_v45  ;;  %v4986_v55 = vsel %vm1555_vm6, %v10265_v38, 0.0 }
 0xd73   :  { %4951 = vadd.xlane.f32.xlu0 %v4950_v23  ;;  %v4679_v1 = vpop.xlane.xlu1 %4678 }
 0xd74   :  { %7870 = vpow2.f32 %v4920_v26  ;;  %v4799_v30 = vsub.f32 %v10051_v21, %v4679_v1 }
 0xd75   :  { %7872 = vpow2.f32 %v4898_v62  ;;  %v10271_v50 = vpop.eup %7866 }
 0xd76   :  { %v4858_v17 = vmul.f32 1.442695, %v4799_v30 }
 0xd77   :  { %4993 = vadd.xlane.f32.xlu0 %v4992_v28  ;;  %v4673_v34 = vpop.xlane.xlu1 %4672 }
 0xd78   :  { %7874 = vpow2.f32 %v4858_v17  ;;  %v4797_v58 = vsub.f32 %v10054_v24, %v4673_v34 }
 0xd79   :  { %v4676_v47 = vpop.xlane.xlu0 %4675  ;;  %7876 = vpow2.f32 %v4924_v7  ;;  %v10274_v62 = vpop.eup %7868 }
 0xd7a   :  { %v4854_v51 = vmul.f32 1.442695, %v4797_v58  ;;  %v4798_v21 = vsub.f32 %v10062_v15, %v4676_v47  ;;  %v5028_v15 = vsel %vm1555_vm6, %v10271_v50, 0.0 }
 0xd7b   :  { %4987 = vadd.xlane.f32.xlu0 %v4986_v55  ;;  %v4715_v2 = vpop.xlane.xlu1 %4714 }
 0xd7c   :  { %7878 = vpow2.f32 %v4854_v51  ;;  %v4811_v32 = vsub.f32 %v10059_v53, %v4715_v2  ;;  %v4856_v24 = vmul.f32 1.442695, %v4798_v21  ;;  %v5022_v53 = vsel %vm1555_vm6, %v10274_v62, 0.0 }
 0xd7d   :  { %7880 = vpow2.f32 %v4922_v60  ;;  %v4712_v46 = vpop.xlane.xlu0 %4711 }
 0xd7e   :  { %v4882_v42 = vmul.f32 1.442695, %v4811_v32  ;;  %v4810_v26 = vsub.f32 %v10067_v0, %v4712_v46 }
 0xd7f   :  { %5029 = vadd.xlane.f32.xlu0 %v5028_v15  ;;  %v4709_v23 = vpop.xlane.xlu1 %4708 }
 0xd80   :  { %7882 = vpow2.f32 %v4882_v42  ;;  %v4809_v1 = vsub.f32 %v10072_v41, %v4709_v23  ;;  %v4880_v45 = vmul.f32 1.442695, %v4810_v26 }
 0xd81   :  { %v10280_v30 = vpop.eup %7870  ;;  %7884 = vpow2.f32 %v4856_v24 }
 0xd82   :  { %v4878_v7 = vmul.f32 1.442695, %v4809_v1  ;;  %v5058_v17 = vsel %vm1555_vm6, %v10280_v30, 0.0  ;;  %v10286_v0 = vpop.eup %7872 }
 0xd83   :  { %5023 = vadd.xlane.f32.xlu0 %v5022_v53  ;;  %5059 = vadd.xlane.f32.xlu1 %v5058_v17  ;;  %v4751_v28 = vpop.xlane.xlu1 %4750  ;;  %v5025_v60 = vsel %vm1555_vm6, %v10286_v0, 0.0 }
 0xd84   :  { %7886 = vpow2.f32 %v4878_v7  ;;  %v4823_v34 = vsub.f32 %v10081_v63, %v4751_v28 }
 0xd85   :  { %v10289_v41 = vpop.eup %7874  ;;  %7888 = vpow2.f32 %v4880_v45 }
 0xd86   :  { %v4906_v58 = vmul.f32 1.442695, %v4823_v34  ;;  %v4965_v47 = vsel %vm1555_vm6, %v10289_v41, 0.0  ;;  %v10295_v51 = vpop.eup %7876 }
 0xd87   :  { %5026 = vadd.xlane.f32.xlu0 %v5025_v60  ;;  %4966 = vadd.xlane.f32.xlu1 %v4965_v47  ;;  %v4745_v21 = vpop.xlane.xlu1 %4744  ;;  %v5064_v42 = vsel %vm1555_vm6, %v10295_v51, 0.0 }
 0xd88   :  { %7890 = vpow2.f32 %v4906_v58  ;;  %v4821_v55 = vsub.f32 %v10084_v25, %v4745_v21 }
 0xd89   :  { %v10298_v2 = vpop.eup %7878  ;;  %v4748_v63 = vpop.xlane.xlu0 %4747 }
 0xd8a   :  { %v10300_v32 = vpop.eup %7880  ;;  %v4902_v46 = vmul.f32 1.442695, %v4821_v55  ;;  %v4822_v24 = vsub.f32 %v10092_v18, %v4748_v63  ;;  %v4959_v26 = vsel %vm1555_vm6, %v10298_v2, 0.0 }
 0xd8b   :  { %5065 = vadd.xlane.f32.xlu0 %v5064_v42  ;;  %4960 = vadd.xlane.f32.xlu1 %v4959_v26  ;;  %v4787_v15 = vpop.xlane.xlu1 %4786  ;;  %v5061_v45 = vsel %vm1555_vm6, %v10300_v32, 0.0 }
 0xd8c   :  { %7892 = vpow2.f32 %v4902_v46  ;;  %v4904_v23 = vmul.f32 1.442695, %v4822_v24  ;;  %v4835_v25 = vsub.f32 %v10089_v40, %v4787_v15 }
 0xd8d   :  { %v10308_v1 = vpop.eup %7882  ;;  %v4784_v53 = vpop.xlane.xlu0 %4783 }
 0xd8e   :  { %7894 = vpow2.f32 %v4904_v23  ;;  %v4930_v18 = vmul.f32 1.442695, %v4835_v25  ;;  %v4834_v7 = vsub.f32 %v10097_v4, %v4784_v53  ;;  %v5001_v17 = vsel %vm1555_vm6, %v10308_v1, 0.0  ;;  %v10315_v28 = vpop.eup %7884 }
 0xd8f   :  { %5062 = vadd.xlane.f32.xlu0 %v5061_v45  ;;  %5002 = vadd.xlane.f32.xlu1 %v5001_v17  ;;  %v4781_v34 = vpop.xlane.xlu1 %4780  ;;  %v4962_v21 = vsel %vm1555_vm6, %v10315_v28, 0.0 }
 0xd90   :  { %7896 = vpow2.f32 %v4930_v18  ;;  %v4928_v40 = vmul.f32 1.442695, %v4834_v7  ;;  %v4833_v58 = vsub.f32 %v10102_v59, %v4781_v34 }
 0xd91   :  { %v10318_v60 = vpop.eup %7886 }
 0xd92   :  { %7898 = vpow2.f32 %v4928_v40  ;;  %v4926_v47 = vmul.f32 1.442695, %v4833_v58  ;;  %v4995_v4 = vsel %vm1555_vm6, %v10318_v60, 0.0  ;;  %v10324_v55 = vpop.eup %7888 }
 0xd93   :  { %4963 = vadd.xlane.f32.xlu0 %v4962_v21  ;;  %4996 = vadd.xlane.f32.xlu1 %v4995_v4  ;;  %v4998_v59 = vsel %vm1555_vm6, %v10324_v55, 0.0 }
 0xd94   :  { %7900 = vpow2.f32 %v4926_v47 }
 0xd95   :  { %v10326_v63 = vpop.eup %7890 }
 0xd96   :  { %v5037_v46 = vsel %vm1555_vm6, %v10326_v63, 0.0 }
 0xd97   :  { %4999 = vadd.xlane.f32.xlu1 %v4998_v59  ;;  %5038 = vadd.xlane.f32.xlu0 %v5037_v46 }
 0xd99   :  { %v10332_v24 = vpop.eup %7892 }
 0xd9a   :  { %v5031_v42 = vsel %vm1555_vm6, %v10332_v24, 0.0 }
 0xd9b   :  { %v10336_v26 = vpop.eup %7894  ;;  %5032 = vadd.xlane.f32.xlu0 %v5031_v42 }
 0xd9c   :  { %v5034_v23 = vsel %vm1555_vm6, %v10336_v26, 0.0 }
 0xd9d   :  { %v10338_v15 = vpop.eup %7896 }
 0xd9e   :  { %10893 = vst [vmem:[#allocation16_spill] sm:$0xff] %v10338_v15  ;;  %v5073_v25 = vsel %vm1555_vm6, %v10338_v15, 0.0 }
 0xd9f   :  { %v10344_v53 = vpop.eup %7898  ;;  %5035 = vadd.xlane.f32.xlu0 %v5034_v23  ;;  %5074 = vadd.xlane.f32.xlu1 %v5073_v25 }
 0xda0   :  { %v5070_v18 = vsel %vm1555_vm6, %v10344_v53, 0.0 }
 0xda1   :  { %v10346_v45 = vpop.eup %7900 }
 0xda2   :  { %v5067_v7 = vsel %vm1555_vm6, %v10346_v45, 0.0 }
 0xda3   :  { %5071 = vadd.xlane.f32.xlu1 %v5070_v18  ;;  %5068 = vadd.xlane.f32.xlu0 %v5067_v7 }
 0xdac   :  { %v4940_v17 = vpop.xlane.xlu0 %4939 }
 0xdb0   :  { %v4934_v34 = vpop.xlane.xlu0 %4933 }
 0xdb1   :  { %7902 = vrcp.f32 %v4934_v34 }
 0xdb2   :  { %v4937_v40 = vpop.xlane.xlu1 %4936 }
 0xdb3   :  { %7904 = vrcp.f32 %v4937_v40 }
 0xdb4   :  { %5519 = vrot.lane.b32.xlu1 %v9640_v43, %s8064_s23 }
 0xdb6   :  { %v4976_v58 = vpop.xlane.xlu0 %4975 }
 0xdb7   :  { %v4973_v47 = vpop.xlane.xlu1 %4972 }
 0xdb8   :  { %7906 = vrcp.f32 %v4973_v47 }
 0xdb9   :  { %5517 = vrot.lane.b32.xlu0 %v9648_v13, %s8064_s23 }
 0xdba   :  { %v4970_v21 = vpop.xlane.xlu0 %4969 }
 0xdbb   :  { %7908 = vrcp.f32 %v4970_v21 }
 0xdbe   :  { %v7903_v4 = vpop.eup %7902 }
 0xdbf   :  { %v5124_v42 = vmul.f32 %v7903_v4, %v10122_v35 }
 0xdc0   :  { %v5012_v59 = vpop.xlane.xlu1 %5011  ;;  %v7905_v46 = vpop.eup %7904 }
 0xdc1   :  { %v5125_v23 = vmul.f32 %v7905_v46, %v10127_v54 }
 0xdc3   :  { %v5172_v18 = vpack.c.bf16 %v5125_v23, %v5124_v42 }
 0xdc4   :  { %v5006_v25 = vpop.xlane.xlu1 %5005 }
 0xdc5   :  { %7340 = vmatprep.mubr.msk.bf16.mxu1 %vm1555_vm6, %v5172_v18  ;;  %v7907_v43 = vpop.eup %7906  ;;  %7910 = vrcp.f32 %v5006_v25 }
 0xdc6   :  { %v5137_v47 = vmul.f32 %v7907_v43, %v10136_v27 }
 0xdc8   :  { %v10359_v7 = vpop.xlane.xlu0 %5047  ;;  %v5009_v34 = vpop.xlane.xlu1 %5008 }
 0xdc9   :  { %v7909_v13 = vpop.eup %7908  ;;  %7912 = vrcp.f32 %v5009_v34 }
 0xdca   :  { %v5136_v40 = vmul.f32 %v7909_v13, %v10143_v56 }
 0xdcc   :  { %v5045_v21 = vpop.xlane.xlu0 %5044  ;;  %v5042_v15 = vpop.xlane.xlu1 %5041  ;;  %v5178_v35 = vpack.c.bf16 %v5137_v47, %v5136_v40 }
 0xdcd   :  { %7914 = vrcp.f32 %v5045_v21 }
 0xdce   :  { %7916 = vrcp.f32 %v5042_v15  ;;  %7356 = vmatprep.mubr.msk.bf16.mxu0 %vm1555_vm6, %v5178_v35 }
 0xdcf   :  { %7918 = vrcp.f32 %v4940_v17 }
 0xdd0   :  { %v4949_v54 = vpop.xlane.xlu1 %4948 }
 0xdd1   :  { %7920 = vrcp.f32 %v4949_v54 }
 0xdd2   :  { %v7911_v46 = vpop.eup %7910 }
 0xdd3   :  { %v10365_v56 = vmul.f32 %v7911_v46, %v10154_v61 }
 0xdd4   :  { %v4943_v4 = vpop.xlane.xlu1 %4942 }
 0xdd5   :  { %7922 = vrcp.f32 %v4943_v4 }
 0xdd6   :  { %v4946_v42 = vpop.xlane.xlu0 %4945  ;;  %v7913_v23 = vpop.eup %7912 }
 0xdd7   :  { %7924 = vrcp.f32 %v4946_v42  ;;  %v10368_v27 = vmul.f32 %v7913_v23, %v10159_v10 }
 0xdd8   :  { %v4985_v25 = vpop.xlane.xlu1 %4984  ;;  %7926 = vrcp.f32 %v4976_v58 }
 0xdd9   :  { %v5184_v17 = vpack.c.bf16 %v10368_v27, %v10365_v56 }
 0xdda   :  { %v7915_v18 = vpop.eup %7914  ;;  %v4982_v15 = vpop.xlane.xlu0 %4981 }
 0xddb   :  { %v7917_v43 = vpop.eup %7916  ;;  %7928 = vrcp.f32 %v4982_v15  ;;  %v10373_v34 = vmul.f32 %v7915_v18, %v10169_v16 }
 0xddc   :  { %7930 = vrcp.f32 %v4985_v25  ;;  %v4979_v13 = vpop.xlane.xlu1 %4978  ;;  %v10376_v40 = vmul.f32 %v7917_v43, %v10172_v14  ;;  %v7919_v10 = vpop.eup %7918  ;;  %v10894_v25 = vld [vmem:[#allocation12_spill] sm:$0xff] }
 0xddd   :  { %7932 = vrcp.f32 %v4979_v13  ;;  %v5126_v35 = vmul.f32 %v7919_v10, %v10118_v37  ;;  %v5434_v18 = vsel %vm2131_vm4, %v10894_v25, 0 }
 0xdde   :  { %v5190_v61 = vpack.c.bf16 %v10373_v34, %v10376_v40  ;;  %v7921_v47 = vpop.eup %7920  ;;  %7934 = vrcp.f32 %v5012_v59  ;;  %v10895_v59 = vld [vmem:[#allocation18_spill] sm:$0xff] }
 0xddf   :  { %v5129_v42 = vmul.f32 %v7921_v47, %v10179_v57 }
 0xde0   :  { %v10380_v58 = vpop.xlane.xlu0 %5020 }
 0xde2   :  { %v7923_v21 = vpop.eup %7922 }
 0xde3   :  { %v5127_v16 = vmul.f32 %v7923_v21, %v10184_v20 }
 0xde4   :  { %v7925_v54 = vpop.eup %7924  ;;  %v5015_v4 = vpop.xlane.xlu0 %5014 }
 0xde5   :  { %v5173_v46 = vpack.c.bf16 %v5127_v16, %v5126_v35  ;;  %7936 = vrcp.f32 %v5015_v4  ;;  %v5128_v14 = vmul.f32 %v7925_v54, %v10189_v22  ;;  %v7927_v23 = vpop.eup %7926 }
 0xde6   :  { %v5138_v57 = vmul.f32 %v7927_v23, %v10133_v3 }
 0xde7   :  { %7341 = vmatmul.mubr.msk.bf16.vlgmr.msra.gmra.mxu1 %vm1555_vm6, %v5173_v46  ;;  %v5174_v15 = vpack.c.bf16 %v5129_v42, %v5128_v14 }
 0xde8   :  { %v7929_v43 = vpop.eup %7928  ;;  %7369 = vmatpush3.bf16.msra.mxu1 %v5434_v18  ;;  %v10389_v37 = vpop.xlane.xlu0 %5017 }
 0xde9   :  { %v7931_v20 = vpop.eup %7930  ;;  %7370 = vmatprep.subr.bf16.mxu1 %v10895_v59  ;;  %7344 = vmatprep.mubr.msk.bf16.mxu1 %vm1555_vm6, %v5174_v15  ;;  %v5140_v22 = vmul.f32 %v7929_v43, %v10198_v48 }
 0xdea   :  { %v7933_v13 = vpop.eup %7932  ;;  %v5141_v21 = vmul.f32 %v7931_v20, %v10194_v5 }
 0xdeb   :  { %v5139_v10 = vmul.f32 %v7933_v13, %v10203_v9  ;;  %v7935_v54 = vpop.eup %7934 }
 0xdec   :  { %7371 = vmatpush3.bf16.msra.mxu1 %v10895_v59  ;;  %v10397_v47 = vpop.xlane.xlu0 %5056  ;;  %v5180_v16 = vpack.c.bf16 %v5141_v21, %v5140_v22  ;;  %v10403_v48 = vmul.f32 %v7935_v54, %v10149_v49 }
 0xded   :  { %v5179_v35 = vpack.c.bf16 %v5139_v10, %v5138_v57 }
 0xdef   :  { %7357 = vmatmul.mubr.msk.bf16.vlgmr.msra.gmra.mxu0 %vm1555_vm6, %v5179_v35 }
 0xdf0   :  { %v5051_v4 = vpop.xlane.xlu0 %5050  ;;  %7360 = vmatprep.mubr.msk.bf16.mxu0 %vm1555_vm6, %v5180_v16 }
 0xdf2   :  { %v7937_v46 = vpop.eup %7936 }
 0xdf3   :  { %v10406_v3 = vmul.f32 %v7937_v46, %v10213_v6 }
 0xdf4   :  { %v5054_v9 = vpop.xlane.xlu0 %5053 }
 0xdf5   :  { %v5185_v14 = vpack.c.bf16 %v10406_v3, %v10403_v48 }
 0xdf6   :  { %v4955_v5 = vpop.xlane.xlu1 %4954 }
 0xdf7   :  { %7938 = vrcp.f32 %v4955_v5 }
 0xdf8   :  { %v4958_v42 = vpop.xlane.xlu0 %4957 }
 0xdfa   :  { %v4991_v25 = vpop.xlane.xlu1 %4990 }
 0xdfc   :  { %v4952_v23 = vpop.xlane.xlu0 %4951 }
 0xdfd   :  { %7940 = vrcp.f32 %v4952_v23 }
 0xdfe   :  { %7942 = vrcp.f32 %v4991_v25 }
 0xe00   :  { %v4994_v18 = vpop.xlane.xlu0 %4993 }
 0xe04   :  { %v4988_v15 = vpop.xlane.xlu0 %4987  ;;  %v7939_v43 = vpop.eup %7938 }
 0xe05   :  { %7944 = vrcp.f32 %v4988_v15  ;;  %v5131_v59 = vmul.f32 %v7939_v43, %v10242_v31 }
 0xe06   :  { %7946 = vrcp.f32 %v4958_v42 }
 0xe08   :  { %v5030_v49 = vpop.xlane.xlu0 %5029 }
 0xe0a   :  { %v7941_v20 = vpop.eup %7940 }
 0xe0b   :  { %v5130_v6 = vmul.f32 %v7941_v20, %v10246_v44  ;;  %v7943_v10 = vpop.eup %7942 }
 0xe0c   :  { %v5024_v13 = vpop.xlane.xlu0 %5023  ;;  %v5060_v22 = vpop.xlane.xlu1 %5059  ;;  %v5143_v46 = vmul.f32 %v7943_v10, %v10251_v39 }
 0xe0d   :  { %v5175_v57 = vpack.c.bf16 %v5131_v59, %v5130_v6 }
 0xe0f   :  { %7345 = vmatmul.mubr.msk.bf16.gmra.mxu1 %vm1555_vm6, %v5175_v57 }
 0xe10   :  { %v5027_v21 = vpop.xlane.xlu0 %5026  ;;  %v4967_v35 = vpop.xlane.xlu1 %4966 }
 0xe12   :  { %v7945_v16 = vpop.eup %7944 }
 0xe13   :  { %v5142_v54 = vmul.f32 %v7945_v16, %v10265_v38  ;;  %v7947_v6 = vpop.eup %7946 }
 0xe14   :  { %v5066_v5 = vpop.xlane.xlu0 %5065  ;;  %v4961_v23 = vpop.xlane.xlu1 %4960  ;;  %v5132_v59 = vmul.f32 %v7947_v6, %v10238_v8 }
 0xe15   :  { %v5181_v25 = vpack.c.bf16 %v5143_v46, %v5142_v54  ;;  %7948 = vrcp.f32 %v4961_v23 }
 0xe16   :  { %7950 = vrcp.f32 %v4967_v35 }
 0xe17   :  { %7361 = vmatmul.mubr.msk.bf16.gmra.mxu0 %vm1555_vm6, %v5181_v25  ;;  %7952 = vrcp.f32 %v4994_v18 }
 0xe18   :  { %v5063_v31 = vpop.xlane.xlu0 %5062  ;;  %v5003_v44 = vpop.xlane.xlu1 %5002 }
 0xe1c   :  { %v4964_v15 = vpop.xlane.xlu0 %4963  ;;  %v4997_v43 = vpop.xlane.xlu1 %4996 }
 0xe1d   :  { %7954 = vrcp.f32 %v4964_v15 }
 0xe1e   :  { %7956 = vrcp.f32 %v4997_v43 }
 0xe1f   :  { %7958 = vrcp.f32 %v5003_v44 }
 0xe20   :  { %v5039_v20 = vpop.xlane.xlu0 %5038  ;;  %v5000_v38 = vpop.xlane.xlu1 %4999  ;;  %7960 = vrcp.f32 %v10389_v37 }
 0xe21   :  { %7962 = vrcp.f32 %v5000_v38 }
 0xe22   :  { %v7949_v39 = vpop.eup %7948  ;;  %7964 = vrcp.f32 %v10380_v58 }
 0xe23   :  { %v5133_v57 = vmul.f32 %v7949_v39, %v10298_v2  ;;  %7966 = vrcp.f32 %v10359_v7  ;;  %v7951_v10 = vpop.eup %7950 }
 0xe24   :  { %v5033_v42 = vpop.xlane.xlu0 %5032  ;;  %7968 = vrcp.f32 %v5051_v4  ;;  %v7953_v16 = vpop.eup %7952  ;;  %v5135_v2 = vmul.f32 %v7951_v10, %v10289_v41 }
 0xe25   :  { %v5176_v18 = vpack.c.bf16 %v5133_v57, %v5132_v59  ;;  %7970 = vrcp.f32 %v5054_v9  ;;  %v5144_v9 = vmul.f32 %v7953_v16, %v10259_v52 }
 0xe26   :  { %7972 = vrcp.f32 %v10397_v47 }
 0xe27   :  { %7348 = vmatprep.mubr.msk.bf16.mxu1 %vm1555_vm6, %v5176_v18  ;;  %7974 = vrcp.f32 %v5027_v21 }
 0xe28   :  { %v5036_v37 = vpop.xlane.xlu0 %5035  ;;  %v5075_v35 = vpop.xlane.xlu1 %5074  ;;  %7976 = vrcp.f32 %v5033_v42 }
 0xe29   :  { %7978 = vrcp.f32 %v5024_v13 }
 0xe2a   :  { %v7955_v58 = vpop.eup %7954  ;;  %7980 = vrcp.f32 %v5030_v49 }
 0xe2b   :  { %v7957_v54 = vpop.eup %7956  ;;  %v5134_v8 = vmul.f32 %v7955_v58, %v10315_v28  ;;  %7982 = vrcp.f32 %v5060_v22 }
 0xe2c   :  { %v5069_v7 = vpop.xlane.xlu0 %5068  ;;  %v5072_v4 = vpop.xlane.xlu1 %5071  ;;  %v5145_v47 = vmul.f32 %v7957_v54, %v10318_v60  ;;  %7984 = vrcp.f32 %v5063_v31 }
 0xe2d   :  { %v7959_v46 = vpop.eup %7958  ;;  %v5177_v23 = vpack.c.bf16 %v5135_v2, %v5134_v8  ;;  %7986 = vrcp.f32 %v5069_v7 }
 0xe2e   :  { %v7961_v25 = vpop.eup %7960  ;;  %v5182_v21 = vpack.c.bf16 %v5145_v47, %v5144_v9  ;;  %7988 = vrcp.f32 %v5066_v5  ;;  %v5147_v28 = vmul.f32 %v7959_v46, %v10308_v1 }
 0xe2f   :  { %v7963_v44 = vpop.eup %7962  ;;  %7349 = vmatmul.mubr.msk.bf16.gmra.mxu1 %vm1555_vm6, %v5177_v23  ;;  %7990 = vrcp.f32 %v5036_v37  ;;  %v5152_v31 = vmul.f32 %v7961_v25, %v10219_v33 }
 0xe30   :  { %7364 = vmatprep.mubr.msk.bf16.mxu0 %vm1555_vm6, %v5182_v21  ;;  %7372 = vmatprep.mubr.msk.bf16.mxu1 %vm1555_vm6, %v5184_v17  ;;  %v5520_v52 = vpop.permute.xlu1 %5519  ;;  %v5146_v41 = vmul.f32 %v7963_v44, %v10324_v55  ;;  %v7965_v60 = vpop.eup %7964  ;;  %7992 = vrcp.f32 %v5039_v20 }
 0xe31   :  { %v5541_v49 = vsel %vm2131_vm4, %v5520_v52, 0  ;;  %7523 = vmatprep.subr.msk.bf16.mxu0 %vm2131_vm4, %v5520_v52  ;;  %v7967_v13 = vpop.eup %7966  ;;  %v5518_v22 = vpop.permute.xlu0 %5517  ;;  %v5153_v1 = vmul.f32 %v7965_v60, %v10208_v12  ;;  %7994 = vrcp.f32 %v5072_v4 }
 0xe32   :  { %7385 = vmatpush3.bf16.msra.mxu0 %v5541_v49  ;;  %v5183_v5 = vpack.c.bf16 %v5147_v28, %v5146_v41  ;;  %v7969_v56 = vpop.eup %7968  ;;  %v5162_v38 = vmul.f32 %v7967_v13, %v10162_v19  ;;  %7996 = vrcp.f32 %v5075_v35 }
 0xe33   :  { %7386 = vmatprep.subr.bf16.mxu0 %v5518_v22  ;;  %v7971_v27 = vpop.eup %7970  ;;  %v5163_v15 = vmul.f32 %v7969_v56, %v10230_v36  ;;  %v5186_v33 = vpack.c.bf16 %v5153_v1, %v5152_v31 }
 0xe34   :  { %7365 = vmatmul.mubr.msk.bf16.gmra.mxu0 %vm1555_vm6, %v5183_v5  ;;  %v7973_v55 = vpop.eup %7972  ;;  %v5164_v12 = vmul.f32 %v7971_v27, %v10235_v29 }
 0xe35   :  { %7388 = vmatprep.mubr.msk.bf16.mxu0 %vm1555_vm6, %v5190_v61  ;;  %v7975_v17 = vpop.eup %7974  ;;  %v5165_v36 = vmul.f32 %v7973_v55, %v10225_v11  ;;  %v5191_v6 = vpack.c.bf16 %v5163_v15, %v5162_v38 }
 0xe36   :  { %7387 = vmatpush3.bf16.msra.mxu0 %v5518_v22  ;;  %v7977_v43 = vpop.eup %7976  ;;  %v5155_v40 = vmul.f32 %v7975_v17, %v10286_v0 }
 0xe37   :  { %7373 = vmatmul.mubr.msk.bf16.vlgmr.msra.gmra.mxu1 %vm1555_vm6, %v5185_v14  ;;  %v7979_v20 = vpop.eup %7978  ;;  %v5157_v39 = vmul.f32 %v7977_v43, %v10332_v24  ;;  %v5192_v3 = vpack.c.bf16 %v5165_v36, %v5164_v12 }
 0xe38   :  { %7376 = vmatprep.mubr.msk.bf16.mxu1 %vm1555_vm6, %v5186_v33  ;;  %v7981_v34 = vpop.eup %7980  ;;  %v5154_v14 = vmul.f32 %v7979_v20, %v10274_v62 }
 0xe39   :  { %v7983_v61 = vpop.eup %7982  ;;  %v5156_v19 = vmul.f32 %v7981_v34, %v10271_v50 }
 0xe3a   :  { %v7985_v48 = vpop.eup %7984  ;;  %v5187_v59 = vpack.c.bf16 %v5155_v40, %v5154_v14  ;;  %v5166_v62 = vmul.f32 %v7983_v61, %v10280_v30  ;;  %v10896_v30 = vld [vmem:[#allocation16_spill] sm:$0xff] }
 0xe3b   :  { %v7987_v29 = vpop.eup %7986  ;;  %v5188_v57 = vpack.c.bf16 %v5157_v39, %v5156_v19  ;;  %v5167_v0 = vmul.f32 %v7985_v48, %v10300_v32 }
 0xe3c   :  { %7389 = vmatmul.mubr.msk.bf16.vlgmr.msra.gmra.mxu0 %vm1555_vm6, %v5191_v6  ;;  %v7989_v42 = vpop.eup %7988  ;;  %v5169_v24 = vmul.f32 %v7987_v29, %v10346_v45 }
 0xe3d   :  { %7392 = vmatprep.mubr.msk.bf16.mxu0 %vm1555_vm6, %v5192_v3  ;;  %v7991_v11 = vpop.eup %7990  ;;  %v5168_v10 = vmul.f32 %v7989_v42, %v10295_v51  ;;  %v5193_v37 = vpack.c.bf16 %v5167_v0, %v5166_v62 }
 0xe3e   :  { %v7993_v18 = vpop.eup %7992  ;;  %v5158_v50 = vmul.f32 %v7991_v11, %v10336_v26  ;;  %v7558_v26 = vld [vmem:[%s10775_s5 + $0x18] sm:$0xff]  }
 0xe3f   :  { %7377 = vmatmul.mubr.msk.bf16.gmra.mxu1 %vm1555_vm6, %v5187_v59  ;;  %v7995_v35 = vpop.eup %7994  ;;  %v5194_v16 = vpack.c.bf16 %v5169_v24, %v5168_v10  ;;  %v5159_v58 = vmul.f32 %v7993_v18, %v10326_v63  ;;  %7400 = vmatprep.subr.bf16.mxu1 %v7558_v26  ;;  %v7559_v63 = vld [vmem:[%s10775_s5 + $0x10] sm:$0xff]  }
 0xe40   :  { %7380 = vmatprep.mubr.msk.bf16.mxu1 %vm1555_vm6, %v5188_v57  ;;  %v7997_v32 = vpop.eup %7996  ;;  %v5170_v54 = vmul.f32 %v7995_v35, %v10344_v53  ;;  %7401 = vmatpush3.bf16.msra.mxu1 %v7558_v26 }
 0xe41   :  { %v5189_v45 = vpack.c.bf16 %v5159_v58, %v5158_v50  ;;  %v5171_v8 = vmul.f32 %v7997_v32, %v10896_v30  ;;  %7402 = vmatprep.subr.bf16.mxu1 %v7559_v63 }
 0xe43   :  { %v5195_v51 = vpack.c.bf16 %v5171_v8, %v5170_v54 }
 0xe44   :  { %7393 = vmatmul.mubr.msk.bf16.gmra.mxu0 %vm1555_vm6, %v5193_v37  ;;  %7403 = vmatpush3.bf16.msra.mxu1 %v7559_v63 }
 0xe45   :  { %7396 = vmatprep.mubr.msk.bf16.mxu0 %vm1555_vm6, %v5194_v16 }
 0xe47   :  { %7381 = vmatmul.mubr.msk.bf16.gmra.mxu1 %vm1555_vm6, %v5189_v45 }
 0xe4c   :  { %7397 = vmatmul.mubr.msk.bf16.gmra.mxu0 %vm1555_vm6, %v5195_v51 }
 0xea7   :  { %v7342_v53 = vpop.f32.mrf.mxu1 }
 0xea9   :  { %v5256_v2 = vpop.f32.mrf.mxu1 }
 0xeab   :  { %v7343_v4 = vpop.f32.mrf.mxu1 }
 0xeac   :  { %v5624_v56 = vsel %vm432_vm3, %v5256_v2, %v7343_v4 }
 0xead   :  { %v5259_v47 = vpop.f32.mrf.mxu1 }
 0xeaf   :  { %v7358_v7 = vpop.f32.mrf.mxu0 }
 0xeb1   :  { %v5363_v9 = vpop.f32.mrf.mxu0 }
 0xeb3   :  { %v7359_v46 = vpop.f32.mrf.mxu0 }
 0xeb4   :  { %v5627_v39 = vsel %vm432_vm3, %v5363_v9, %v7359_v46 }
 0xeb5   :  { %v5366_v25 = vpop.f32.mrf.mxu0 }
 0xecf   :  { %v7346_v23 = vpop.f32.mrf.mxu1 }
 0xed0   :  { %v5636_v1 = vsel %vm2549_vm7, %v5624_v56, %v7346_v23 }
 0xed1   :  { %v5272_v21 = vpop.f32.mrf.mxu1 }
 0xed2   :  { %v5625_v22 = vsel %vm432_vm3, %v5259_v47, %v5272_v21 }
 0xed3   :  { %v7347_v52 = vpop.f32.mrf.mxu1 }
 0xed4   :  { %v5637_v55 = vsel %vm2549_vm7, %v5625_v22, %v7347_v52 }
 0xed5   :  { %v5275_v28 = vpop.f32.mrf.mxu1 }
 0xed6   :  { %v5626_v20 = vsel %vm432_vm3, %v7342_v53, %v5275_v28 }
 0xed7   :  { %v7362_v44 = vpop.f32.mrf.mxu0 }
 0xed8   :  { %v5639_v3 = vsel %vm2549_vm7, %v5627_v39, %v7362_v44 }
 0xed9   :  { %v5379_v41 = vpop.f32.mrf.mxu0 }
 0xeda   :  { %v5628_v40 = vsel %vm432_vm3, %v5366_v25, %v5379_v41 }
 0xedb   :  { %v7363_v60 = vpop.f32.mrf.mxu0 }
 0xedc   :  { %v5640_v19 = vsel %vm2549_vm7, %v5628_v40, %v7363_v60 }
 0xedd   :  { %v5382_v5 = vpop.f32.mrf.mxu0 }
 0xede   :  { %v5629_v15 = vsel %vm432_vm3, %v7358_v7, %v5382_v5 }
 0xeef   :  { %v7350_v49 = vpop.f32.mrf.mxu1 }
 0xef0   :  { %v5649_v33 = vsel %vm1555_vm6, %v5637_v55, %v7350_v49 }
 0xef1   :  { %v5288_v13 = vpop.f32.mrf.mxu1 }
 0xef2   :  { %v5638_v61 = vsel %vm2549_vm7, %v5626_v20, %v5288_v13 }
 0xef3   :  { %v7351_v31 = vpop.f32.mrf.mxu1 }
 0xef4   :  { %v7366_v27 = vpop.f32.mrf.mxu0  ;;  %v5650_v42 = vsel %vm1555_vm6, %v5638_v61, %v7351_v31 }
 0xef5   :  { %v5291_v17 = vpop.f32.mrf.mxu1  ;;  %v5652_v57 = vsel %vm1555_vm6, %v5640_v19, %v7366_v27 }
 0xef6   :  { %v5648_v43 = vsel %vm1555_vm6, %v5636_v1, %v5291_v17  ;;  %v5395_v12 = vpop.f32.mrf.mxu0 }
 0xef7   :  { %v5660_v38 = vpack.c.bf16 %v5649_v33, %v5648_v43  ;;  %v5641_v34 = vsel %vm2549_vm7, %v5629_v15, %v5395_v12  ;;  %v7374_v36 = vpop.f32.mrf.mxu1  ;;  %v10524_v33 = vld [vmem:[%s10772_s2 + $0x8] sm:$0xff] }
 0xef8   :  { %v7367_v6 = vpop.f32.mrf.mxu0  ;;  %v10897_v43 = vld [vmem:[#allocation5_spill] sm:$0xff] }
 0xef9   :  { %v5470_v48 = vpop.f32.mrf.mxu1  ;;  %7404 = vmatprep.mubr.msk.bf16.mxu1 %vm318_vm2, %v5660_v38  ;;  %v5653_v14 = vsel %vm1555_vm6, %v5641_v34, %v7367_v6  ;;  %v10898_v12 = vsub.s32 5, %v10897_v43  ;;  %v10899_v6 = vld [vmem:[#allocation26_spill] sm:$0xff] }
 0xefa   :  { %v5398_v29 = vpop.f32.mrf.mxu0  ;;  %v5662_v18 = vpack.c.bf16 %v5653_v14, %v5652_v57  ;;  %v10902_v57 = vld [vmem:[#allocation27_spill] sm:$0xff] }
 0xefb   :  { %v5651_v59 = vsel %vm1555_vm6, %v5639_v3, %v5398_v29  ;;  %v7375_v11 = vpop.f32.mrf.mxu1  ;;  %v5669_v20 = vrot.slane %v10524_v33, %v10898_v12  ;;  %v10900_v3 = vld [vmem:[#allocation24_spill] sm:$0xff] }
 0xefc   :  { %v5661_v0 = vpack.c.bf16 %v5651_v59, %v5650_v42  ;;  %v7390_v24 = vpop.f32.mrf.mxu0  ;;  %v5630_v2 = vsel %vm432_vm3, %v5470_v48, %v7375_v11  ;;  %v10901_v59 = vld [vmem:[#allocation22_spill] sm:$0xff] }
 0xefd   :  { %v5473_v62 = vpop.f32.mrf.mxu1 }
 0xefe   :  { %v5577_v10 = vpop.f32.mrf.mxu0  ;;  %7405 = vmatmul.mubr.msk.bf16.vlgmr.msra.gmra.mxu1 %vm318_vm2, %v5661_v0 }
 0xeff   :  { %7408 = vmatprep.mubr.msk.bf16.mxu1 %vm318_vm2, %v5662_v18  ;;  %v7378_v50 = vpop.f32.mrf.mxu1 }
 0xf00   :  { %v7391_v37 = vpop.f32.mrf.mxu0  ;;  %v5642_v4 = vsel %vm2549_vm7, %v5630_v2, %v7378_v50  ;;  %v10905_v2 = vld [vmem:[#allocation9_spill] sm:$0xff] }
 0xf01   :  { %v5486_v35 = vpop.f32.mrf.mxu1  ;;  %v5633_v60 = vsel %vm432_vm3, %v5577_v10, %v7391_v37 }
 0xf02   :  { %v5580_v16 = vpop.f32.mrf.mxu0  ;;  %v5631_v26 = vsel %vm432_vm3, %v5473_v62, %v5486_v35  ;;  %v10903_v35 = vld [vmem:[#allocation8_spill] sm:$0xff] }
 0xf03   :  { %v7379_v58 = vpop.f32.mrf.mxu1 }
 0xf04   :  { %v7394_v32 = vpop.f32.mrf.mxu0  ;;  %v5643_v9 = vsel %vm2549_vm7, %v5631_v26, %v7379_v58 }
 0xf05   :  { %v5489_v45 = vpop.f32.mrf.mxu1  ;;  %v5645_v13 = vsel %vm2549_vm7, %v5633_v60, %v7394_v32  ;;  %v10908_v60 = vld [vmem:[#allocation15_spill] sm:$0xff] }
 0xf06   :  { %v5593_v54 = vpop.f32.mrf.mxu0  ;;  %v5632_v21 = vsel %vm432_vm3, %v7374_v36, %v5489_v45  ;;  %v10904_v45 = vld [vmem:[#allocation25_spill] sm:$0xff] }
 0xf07   :  { %v7382_v30 = vpop.f32.mrf.mxu1  ;;  %v5634_v22 = vsel %vm432_vm3, %v5580_v16, %v5593_v54 }
 0xf08   :  { %v7395_v8 = vpop.f32.mrf.mxu0  ;;  %v5655_v46 = vsel %vm1555_vm6, %v5643_v9, %v7382_v30 }
 0xf09   :  { %v5502_v51 = vpop.f32.mrf.mxu1  ;;  %v5646_v55 = vsel %vm2549_vm7, %v5634_v22, %v7395_v8 }
 0xf0a   :  { %v5596_v63 = vpop.f32.mrf.mxu0  ;;  %v5644_v52 = vsel %vm2549_vm7, %v5632_v21, %v5502_v51 }
 0xf0b   :  { %v7383_v53 = vpop.f32.mrf.mxu1  ;;  %v5635_v41 = vsel %vm432_vm3, %v7390_v24, %v5596_v63 }
 0xf0c   :  { %v7398_v7 = vpop.f32.mrf.mxu0  ;;  %v5656_v31 = vsel %vm1555_vm6, %v5644_v52, %v7383_v53 }
 0xf0d   :  { %v5505_v47 = vpop.f32.mrf.mxu1  ;;  %v5658_v17 = vsel %vm1555_vm6, %v5646_v55, %v7398_v7 }
 0xf0e   :  { %v5654_v23 = vsel %vm1555_vm6, %v5642_v4, %v5505_v47  ;;  %v5609_v25 = vpop.f32.mrf.mxu0  ;;  %v10906_v4 = vld [vmem:[#allocation10_spill] sm:$0xff] }
 0xf0f   :  { %v5663_v44 = vpack.c.bf16 %v5655_v46, %v5654_v23  ;;  %v5647_v49 = vsel %vm2549_vm7, %v5635_v41, %v5609_v25 }
 0xf10   :  { %v7399_v28 = vpop.f32.mrf.mxu0 }
 0xf11   :  { %7409 = vmatmul.mubr.msk.bf16.gmra.mxu1 %vm318_vm2, %v5663_v44  ;;  %v5659_v27 = vsel %vm1555_vm6, %v5647_v49, %v7399_v28  ;;  %v10907_v44 = vld [vmem:[#allocation11_spill] sm:$0xff] }
 0xf12   :  { %v5612_v5 = vpop.f32.mrf.mxu0  ;;  %v5665_v15 = vpack.c.bf16 %v5659_v27, %v5658_v17  ;;  %v10910_v27 = vld [vmem:[#allocation14_spill] sm:$0xff] }
 0xf13   :  { %v5657_v56 = vsel %vm1555_vm6, %v5645_v13, %v5612_v5 }
 0xf14   :  { %v5664_v1 = vpack.c.bf16 %v5657_v56, %v5656_v31  ;;  %v10909_v31 = vld [vmem:[#allocation13_spill] sm:$0xff] }
 0xf16   :  { %7412 = vmatprep.mubr.msk.bf16.mxu1 %vm318_vm2, %v5664_v1 }
 0xf19   :  { %7413 = vmatmul.mubr.msk.bf16.gmra.mxu1 %vm318_vm2, %v5665_v15 }
 0xfbe   :  { %v7406_v38 = vpop.f32.mrf.mxu1 }
 0xfbf   :  { %v5743_v36 = vadd.f32 %v7406_v38, %v5669_v20 }
 0xfc0   :  { %v5734_v34 = vpop.f32.mrf.mxu1 }
 0xfc1   :  { %v5735_v40 = vadd.f32 %v5734_v34, %v5669_v20  ;;  %v5783_v14 = vadd.f32 %v5743_v36, %v10900_v3 }
 0xfc2   :  { %v7407_v61 = vpop.f32.mrf.mxu1 }
 0xfc3   :  { %v5781_v39 = vadd.f32 %v5735_v40, %v10899_v6  ;;  %v5746_v29 = vadd.f32 %v7407_v61, %v5669_v20  ;;  %v5799_v18 = vsel %vm318_vm2, %v5783_v14, 0.0 }
 0xfc4   :  { %v5737_v48 = vpop.f32.mrf.mxu1 }
 0xfc5   :  { %v5738_v19 = vadd.f32 %v5737_v48, %v5669_v20  ;;  %v5793_v42 = vsel %vm318_vm2, %v5781_v39, 0.0  ;;  %v10534_v0 = vadd.f32 %v5746_v29, %v10902_v57 }
 0xfc6   :  { %5794 = vadd.xlane.f32.xlu0 %v5793_v42 }
 0xfc7   :  { %v5782_v11 = vadd.f32 %v5738_v19, %v10901_v59  ;;  %v5802_v62 = vsel %vm318_vm2, %v10534_v0, 0.0 }
 0xfc9   :  { %v5796_v24 = vsel %vm318_vm2, %v5782_v11, 0.0 }
 0xfca   :  { %5797 = vadd.xlane.f32.xlu1 %v5796_v24  ;;  %5800 = vadd.xlane.f32.xlu0 %v5799_v18 }
 0xfce   :  { %5803 = vadd.xlane.f32.xlu0 %v5802_v62 }
 0xfd1   :  { %v7410_v10 = vpop.f32.mrf.mxu1 }
 0xfd2   :  { %v5759_v50 = vadd.f32 %v7410_v10, %v5669_v20 }
 0xfd3   :  { %v5750_v37 = vpop.f32.mrf.mxu1 }
 0xfd4   :  { %v10541_v16 = vadd.f32 %v5759_v50, %v10903_v35  ;;  %v5751_v58 = vadd.f32 %v5750_v37, %v5669_v20 }
 0xfd5   :  { %v7411_v32 = vpop.f32.mrf.mxu1 }
 0xfd6   :  { %v10544_v54 = vadd.f32 %v5751_v58, %v10904_v45  ;;  %v5811_v30 = vsel %vm318_vm2, %v10541_v16, 0.0  ;;  %v5762_v8 = vadd.f32 %v7411_v32, %v5669_v20 }
 0xfd7   :  { %v5753_v51 = vpop.f32.mrf.mxu1  ;;  %5812 = vadd.xlane.f32.xlu1 %v5811_v30 }
 0xfd8   :  { %v5754_v26 = vadd.f32 %v5753_v51, %v5669_v20  ;;  %v5805_v63 = vsel %vm318_vm2, %v10544_v54, 0.0  ;;  %v10552_v9 = vadd.f32 %v5762_v8, %v10906_v4 }
 0xfd9   :  { %5806 = vadd.xlane.f32.xlu0 %v5805_v63  ;;  %v7414_v53 = vpop.f32.mrf.mxu1 }
 0xfda   :  { %v5786_v7 = vadd.f32 %v5754_v26, %v10905_v2  ;;  %v5775_v46 = vadd.f32 %v7414_v53, %v5669_v20  ;;  %v5814_v28 = vsel %vm318_vm2, %v10552_v9, 0.0 }
 0xfdb   :  { %v5766_v47 = vpop.f32.mrf.mxu1 }
 0xfdc   :  { %v5767_v23 = vadd.f32 %v5766_v47, %v5669_v20  ;;  %v5808_v25 = vsel %vm318_vm2, %v5786_v7, 0.0  ;;  %v10559_v49 = vadd.f32 %v5775_v46, %v10908_v60 }
 0xfdd   :  { %5809 = vadd.xlane.f32.xlu0 %v5808_v25  ;;  %v7415_v21 = vpop.f32.mrf.mxu1 }
 0xfde   :  { %v5789_v52 = vadd.f32 %v5767_v23, %v10907_v44  ;;  %v5778_v13 = vadd.f32 %v7415_v21, %v5669_v20  ;;  %v5823_v17 = vsel %vm318_vm2, %v10559_v49, 0.0 }
 0xfdf   :  { %v5769_v41 = vpop.f32.mrf.mxu1 }
 0xfe0   :  { %v5770_v22 = vadd.f32 %v5769_v41, %v5669_v20  ;;  %v5817_v5 = vsel %vm318_vm2, %v5789_v52, 0.0  ;;  %v10564_v1 = vadd.f32 %v5778_v13, %v10910_v27 }
 0xfe1   :  { %5815 = vadd.xlane.f32.xlu0 %v5814_v28  ;;  %5818 = vadd.xlane.f32.xlu1 %v5817_v5 }
 0xfe2   :  { %v5790_v56 = vadd.f32 %v5770_v22, %v10909_v31  ;;  %v5826_v15 = vsel %vm318_vm2, %v10564_v1, 0.0 }
 0xfe4   :  { %v5820_v55 = vsel %vm318_vm2, %v5790_v56, 0.0 }
 0xfe5   :  { %5821 = vadd.xlane.f32.xlu0 %v5820_v55  ;;  %5824 = vadd.xlane.f32.xlu1 %v5823_v17 }
 0xfe9   :  { %5827 = vadd.xlane.f32.xlu0 %v5826_v15  ;;  %v7560_v15 = vld [vmem:[%s10776_s6 + $0x18] sm:$0xff]  }
 0xfea   :  { %7416 = vmatprep.subr.bf16.mxu0 %v7560_v15 }
 0xfeb   :  { %7417 = vmatpush3.bf16.msra.mxu0 %v7560_v15 }
0x104f   :  { %v5795_v12 = vpop.xlane.xlu0 %5794 }
0x1050   :  { %v5829_v20 = vmul.f32 0.03125, %v5795_v12  ;;  %v7562_v12 = vld [vmem:[%s10777_s7 + $0x38] sm:$0xff]  }
0x1051   :  { %7432 = vmatprep.subr.bf16.mxu1 %v7562_v12 }
0x1052   :  { %v10571_v38 = vsub.f32 %v5781_v39, %v5829_v20  ;;  %7433 = vmatpush3.bf16.msra.mxu1 %v7562_v12 }
0x1053   :  { %v5801_v34 = vpop.xlane.xlu0 %5800  ;;  %v5798_v36 = vpop.xlane.xlu1 %5797 }
0x1054   :  { %v5831_v40 = vmul.f32 0.03125, %v5801_v34  ;;  %v5830_v61 = vmul.f32 0.03125, %v5798_v36  ;;  %v5853_v6 = vmul.f32 %v10571_v38, %v10571_v38 }
0x1056   :  { %v10575_v48 = vsub.f32 %v5783_v14, %v5831_v40  ;;  %v10577_v3 = vsub.f32 %v5782_v11, %v5830_v61  ;;  %v5865_v29 = vsel %vm318_vm2, %v5853_v6, 0.0 }
0x1057   :  { %v5804_v19 = vpop.xlane.xlu0 %5803  ;;  %5866 = vadd.xlane.f32.xlu1 %v5865_v29 }
0x1058   :  { %v5832_v42 = vmul.f32 0.03125, %v5804_v19  ;;  %v5855_v39 = vmul.f32 %v10575_v48, %v10575_v48  ;;  %v5854_v59 = vmul.f32 %v10577_v3, %v10577_v3 }
0x105a   :  { %v10585_v57 = vsub.f32 %v10534_v0, %v5832_v42  ;;  %v5871_v24 = vsel %vm318_vm2, %v5855_v39, 0.0  ;;  %v5868_v14 = vsel %vm318_vm2, %v5854_v59, 0.0 }
0x105b   :  { %5872 = vadd.xlane.f32.xlu1 %v5871_v24  ;;  %5869 = vadd.xlane.f32.xlu0 %v5868_v14  ;;  %v10649_v14 = vld [vmem:[%s10772_s2 + $0x10] sm:$0xf] }
0x105c   :  { %v5856_v11 = vmul.f32 %v10585_v57, %v10585_v57 }
0x105e   :  { %v5874_v18 = vsel %vm318_vm2, %v5856_v11, 0.0 }
0x105f   :  { %5875 = vadd.xlane.f32.xlu0 %v5874_v18  ;;  %v10911_v18 = vld [vmem:[#allocation6_spill] sm:$0xff] }
0x1060   :  { %v5813_v62 = vpop.xlane.xlu1 %5812 }
0x1061   :  { %v5835_v10 = vmul.f32 0.03125, %v5813_v62  ;;  %v10653_v62 = vrot.slane %v10649_v14, %v10911_v18 }
0x1062   :  { %v5807_v50 = vpop.xlane.xlu0 %5806 }
0x1063   :  { %v5833_v37 = vmul.f32 0.03125, %v5807_v50  ;;  %v10593_v35 = vsub.f32 %v10541_v16, %v5835_v10 }
0x1065   :  { %v10596_v0 = vsub.f32 %v10544_v54, %v5833_v37  ;;  %v5859_v51 = vmul.f32 %v10593_v35, %v10593_v35 }
0x1066   :  { %v5810_v58 = vpop.xlane.xlu0 %5809 }
0x1067   :  { %v5834_v32 = vmul.f32 0.03125, %v5810_v58  ;;  %v5857_v45 = vmul.f32 %v10596_v0, %v10596_v0  ;;  %v5883_v47 = vsel %vm318_vm2, %v5859_v51, 0.0 }
0x1069   :  { %v10600_v30 = vsub.f32 %v5786_v7, %v5834_v32  ;;  %v5877_v8 = vsel %vm318_vm2, %v5857_v45, 0.0 }
0x106a   :  { %v5816_v26 = vpop.xlane.xlu0 %5815  ;;  %5878 = vadd.xlane.f32.xlu1 %v5877_v8  ;;  %v5819_v63 = vpop.xlane.xlu1 %5818  ;;  %v10912_v8 = vld [vmem:[#allocation20_spill] sm:$0xff] }
0x106b   :  { %v5836_v16 = vmul.f32 0.03125, %v5816_v26  ;;  %v5837_v53 = vmul.f32 0.03125, %v5819_v63  ;;  %v5858_v54 = vmul.f32 %v10600_v30, %v10600_v30  ;;  %v10658_v51 = vrot.slane %v10649_v14, %v10912_v8 }
0x106d   :  { %v10608_v2 = vsub.f32 %v10552_v9, %v5836_v16  ;;  %v10610_v4 = vsub.f32 %v5789_v52, %v5837_v53  ;;  %v5880_v7 = vsel %vm318_vm2, %v5858_v54, 0.0 }
0x106e   :  { %v5822_v46 = vpop.xlane.xlu0 %5821  ;;  %5881 = vadd.xlane.f32.xlu0 %v5880_v7  ;;  %5884 = vadd.xlane.f32.xlu1 %v5883_v47  ;;  %v5825_v23 = vpop.xlane.xlu1 %5824 }
0x106f   :  { %v5838_v25 = vmul.f32 0.03125, %v5822_v46  ;;  %v5839_v21 = vmul.f32 0.03125, %v5825_v23  ;;  %v5860_v44 = vmul.f32 %v10608_v2, %v10608_v2  ;;  %v5861_v41 = vmul.f32 %v10610_v4, %v10610_v4 }
0x1071   :  { %v10618_v9 = vsub.f32 %v5790_v56, %v5838_v25  ;;  %v10621_v52 = vsub.f32 %v10559_v49, %v5839_v21  ;;  %v5886_v28 = vsel %vm318_vm2, %v5860_v44, 0.0  ;;  %v5889_v60 = vsel %vm318_vm2, %v5861_v41, 0.0 }
0x1072   :  { %v5828_v13 = vpop.xlane.xlu0 %5827  ;;  %5887 = vadd.xlane.f32.xlu0 %v5886_v28  ;;  %5890 = vadd.xlane.f32.xlu1 %v5889_v60 }
0x1073   :  { %v5840_v22 = vmul.f32 0.03125, %v5828_v13  ;;  %v5862_v5 = vmul.f32 %v10618_v9, %v10618_v9  ;;  %v5863_v31 = vmul.f32 %v10621_v52, %v10621_v52 }
0x1075   :  { %v10630_v56 = vsub.f32 %v10564_v1, %v5840_v22  ;;  %v5892_v49 = vsel %vm318_vm2, %v5862_v5, 0.0  ;;  %v5895_v27 = vsel %vm318_vm2, %v5863_v31, 0.0  ;;  %v7561_v1 = vld [vmem:[%s10776_s6 + $0x10] sm:$0xff]  }
0x1076   :  { %5893 = vadd.xlane.f32.xlu0 %v5892_v49  ;;  %5896 = vadd.xlane.f32.xlu1 %v5895_v27 }
0x1077   :  { %v5864_v55 = vmul.f32 %v10630_v56, %v10630_v56  ;;  %7418 = vmatprep.subr.bf16.mxu0 %v7561_v1 }
0x1078   :  { %7419 = vmatpush3.bf16.msra.mxu0 %v7561_v1 }
0x1079   :  { %v5898_v17 = vsel %vm318_vm2, %v5864_v55, 0.0 }
0x107a   :  { %5899 = vadd.xlane.f32.xlu0 %v5898_v17 }
0x10e0   :  { %v5867_v20 = vpop.xlane.xlu1 %5866 }
0x10e1   :  { %v5901_v34 = vmul.f32 0.03125, %v5867_v20 }
0x10e3   :  { %v5913_v36 = vadd.f32 1e-05, %v5901_v34 }
0x10e4   :  { %v5870_v40 = vpop.xlane.xlu0 %5869  ;;  %v5873_v61 = vpop.xlane.xlu1 %5872 }
0x10e5   :  { %7998 = vrsqrt.f32 %v5913_v36  ;;  %v5902_v6 = vmul.f32 0.03125, %v5870_v40  ;;  %v5903_v29 = vmul.f32 0.03125, %v5873_v61 }
0x10e7   :  { %v5914_v19 = vadd.f32 1e-05, %v5902_v6  ;;  %v5915_v42 = vadd.f32 1e-05, %v5903_v29 }
0x10e8   :  { %v5876_v39 = vpop.xlane.xlu0 %5875 }
0x10e9   :  { %8000 = vrsqrt.f32 %v5914_v19  ;;  %v5904_v59 = vmul.f32 0.03125, %v5876_v39 }
0x10ea   :  { %8002 = vrsqrt.f32 %v5915_v42 }
0x10eb   :  { %v5916_v24 = vadd.f32 1e-05, %v5904_v59 }
0x10ed   :  { %8004 = vrsqrt.f32 %v5916_v24 }
0x10f2   :  { %v7999_v11 = vpop.eup %7998 }
0x10f3   :  { %v5879_v10 = vpop.xlane.xlu1 %5878  ;;  %v5937_v50 = vmul.f32 %v7999_v11, %v10571_v38 }
0x10f4   :  { %v5905_v37 = vmul.f32 0.03125, %v5879_v10 }
0x10f5   :  { %v5953_v53 = vmul.f32 %v10653_v62, %v5937_v50 }
0x10f6   :  { %v8001_v58 = vpop.eup %8000  ;;  %v5917_v32 = vadd.f32 1e-05, %v5905_v37 }
0x10f7   :  { %v8003_v45 = vpop.eup %8002  ;;  %v5882_v26 = vpop.xlane.xlu0 %5881  ;;  %v5938_v16 = vmul.f32 %v8001_v58, %v10577_v3  ;;  %v10667_v3 = vadd.f32 %v10658_v51, %v5953_v53 }
0x10f8   :  { %v5885_v63 = vpop.xlane.xlu1 %5884  ;;  %v5939_v54 = vmul.f32 %v8003_v45, %v10575_v48  ;;  %8006 = vrsqrt.f32 %v5917_v32  ;;  %v5906_v7 = vmul.f32 0.03125, %v5882_v26 }
0x10f9   :  { %v5907_v47 = vmul.f32 0.03125, %v5885_v63  ;;  %v5954_v38 = vmul.f32 %v10653_v62, %v5938_v16 }
0x10fa   :  { %v8005_v46 = vpop.eup %8004  ;;  %v5918_v23 = vadd.f32 1e-05, %v5906_v7  ;;  %v5955_v21 = vmul.f32 %v10653_v62, %v5939_v54 }
0x10fb   :  { %v5919_v25 = vadd.f32 1e-05, %v5907_v47  ;;  %v5940_v44 = vmul.f32 %v8005_v46, %v10585_v57  ;;  %v5888_v41 = vpop.xlane.xlu0 %5887  ;;  %v5970_v60 = vadd.f32 %v10658_v51, %v5954_v38 }
0x10fc   :  { %v5891_v28 = vpop.xlane.xlu1 %5890  ;;  %8008 = vrsqrt.f32 %v5918_v23  ;;  %v5908_v48 = vmul.f32 0.03125, %v5888_v41  ;;  %v5971_v27 = vadd.f32 %v10658_v51, %v5955_v21  ;;  %v7563_v41 = vld [vmem:[%s10777_s7 + $0x30] sm:$0xff]  }
0x10fd   :  { %v5909_v13 = vmul.f32 0.03125, %v5891_v28  ;;  %v5956_v22 = vmul.f32 %v10653_v62, %v5940_v44  ;;  %8010 = vrsqrt.f32 %v5919_v25  ;;  %v5981_v5 = vpack.c.bf16 %v5970_v60, %v10667_v3  ;;  %7434 = vmatprep.subr.bf16.mxu1 %v7563_v41  ;;  %v7564_v28 = vld [vmem:[%s10777_s7 + $0x28] sm:$0xff]  }
0x10fe   :  { %v5920_v31 = vadd.f32 1e-05, %v5908_v48  ;;  %7435 = vmatpush3.bf16.msra.mxu1 %v7563_v41  ;;  %v10913_v60 = vsub.s32 6, %v10897_v43 }
0x10ff   :  { %v5921_v49 = vadd.f32 1e-05, %v5909_v13  ;;  %v10674_v57 = vadd.f32 %v10658_v51, %v5956_v22  ;;  %7420 = vmatprep.mubr.msk.bf16.mxu0 %vm318_vm2, %v5981_v5  ;;  %v5894_v55 = vpop.xlane.xlu0 %5893  ;;  %7436 = vmatprep.subr.bf16.mxu1 %v7564_v28 }
0x1100   :  { %v5897_v17 = vpop.xlane.xlu1 %5896  ;;  %8012 = vrsqrt.f32 %v5920_v31  ;;  %v5910_v15 = vmul.f32 0.03125, %v5894_v55  ;;  %v5990_v48 = vrot.slane %v10524_v33, %v10913_v60 }
0x1101   :  { %v5911_v1 = vmul.f32 0.03125, %v5897_v17  ;;  %v5982_v12 = vpack.c.bf16 %v10674_v57, %v5971_v27  ;;  %8014 = vrsqrt.f32 %v5921_v49 }
0x1102   :  { %v5922_v20 = vadd.f32 1e-05, %v5910_v15  ;;  %7437 = vmatpush3.bf16.msra.mxu1 %v7564_v28 }
0x1103   :  { %v5923_v34 = vadd.f32 1e-05, %v5911_v1  ;;  %7421 = vmatmul.mubr.msk.bf16.vlgmr.msra.gmra.mxu0 %vm318_vm2, %v5982_v12  ;;  %v5900_v36 = vpop.xlane.xlu0 %5899 }
0x1104   :  { %8016 = vrsqrt.f32 %v5922_v20  ;;  %v5912_v40 = vmul.f32 0.03125, %v5900_v36 }
0x1105   :  { %v8007_v61 = vpop.eup %8006  ;;  %8018 = vrsqrt.f32 %v5923_v34 }
0x1106   :  { %v5924_v6 = vadd.f32 1e-05, %v5912_v40  ;;  %v5941_v29 = vmul.f32 %v8007_v61, %v10596_v0 }
0x1108   :  { %8020 = vrsqrt.f32 %v5924_v6  ;;  %v5957_v59 = vmul.f32 %v10653_v62, %v5941_v29 }
0x1109   :  { %v8009_v19 = vpop.eup %8008 }
0x110a   :  { %v8011_v42 = vpop.eup %8010  ;;  %v5942_v39 = vmul.f32 %v8009_v19, %v10600_v30  ;;  %v5973_v37 = vadd.f32 %v10658_v51, %v5957_v59 }
0x110b   :  { %v5943_v24 = vmul.f32 %v8011_v42, %v10593_v35 }
0x110c   :  { %v5958_v11 = vmul.f32 %v10653_v62, %v5942_v39 }
0x110d   :  { %v8013_v18 = vpop.eup %8012  ;;  %v5959_v0 = vmul.f32 %v10653_v62, %v5943_v24 }
0x110e   :  { %v8015_v10 = vpop.eup %8014  ;;  %v5944_v50 = vmul.f32 %v8013_v18, %v10608_v2  ;;  %v5974_v58 = vadd.f32 %v10658_v51, %v5958_v11 }
0x110f   :  { %v5945_v32 = vmul.f32 %v8015_v10, %v10610_v4  ;;  %v10692_v35 = vadd.f32 %v10658_v51, %v5959_v0 }
0x1110   :  { %v5983_v45 = vpack.c.bf16 %v5974_v58, %v5973_v37  ;;  %v5960_v30 = vmul.f32 %v10653_v62, %v5944_v50 }
0x1111   :  { %v8017_v26 = vpop.eup %8016  ;;  %v5961_v53 = vmul.f32 %v10653_v62, %v5945_v32 }
0x1112   :  { %v8019_v63 = vpop.eup %8018  ;;  %7424 = vmatprep.mubr.msk.bf16.mxu0 %vm318_vm2, %v5983_v45  ;;  %v5976_v2 = vadd.f32 %v10658_v51, %v5960_v30  ;;  %v5946_v16 = vmul.f32 %v8017_v26, %v10618_v9 }
0x1113   :  { %v5947_v54 = vmul.f32 %v8019_v63, %v10621_v52  ;;  %v5977_v46 = vadd.f32 %v10658_v51, %v5961_v53 }
0x1114   :  { %v5984_v4 = vpack.c.bf16 %v5976_v2, %v10692_v35  ;;  %v5962_v7 = vmul.f32 %v10653_v62, %v5946_v16 }
0x1115   :  { %v8021_v47 = vpop.eup %8020  ;;  %v5963_v9 = vmul.f32 %v10653_v62, %v5947_v54 }
0x1116   :  { %v5948_v38 = vmul.f32 %v8021_v47, %v10630_v56  ;;  %7425 = vmatmul.mubr.msk.bf16.gmra.mxu0 %vm318_vm2, %v5984_v4  ;;  %v10704_v23 = vadd.f32 %v10658_v51, %v5962_v7 }
0x1117   :  { %v5979_v21 = vadd.f32 %v10658_v51, %v5963_v9 }
0x1118   :  { %v5985_v25 = vpack.c.bf16 %v10704_v23, %v5977_v46  ;;  %v5964_v52 = vmul.f32 %v10653_v62, %v5948_v38  ;;  %v7565_v62 = vld [vmem:[%s10777_s7 + $0x20] sm:$0xff]   ;;  %v10914_v38 = vsub.s32 7, %v10897_v43 }
0x1119   :  { %7438 = vmatprep.subr.bf16.mxu1 %v7565_v62 }
0x111a   :  { %7428 = vmatprep.mubr.msk.bf16.mxu0 %vm318_vm2, %v5985_v25  ;;  %v5980_v44 = vadd.f32 %v10658_v51, %v5964_v52  ;;  %7439 = vmatpush3.bf16.msra.mxu1 %v7565_v62  ;;  %v6123_v46 = vrot.slane %v10524_v33, %v10914_v38  ;;  %v10915_v38 = vld [vmem:[#allocation23_spill] sm:$0xff] }
0x111c   :  { %v5986_v56 = vpack.c.bf16 %v5980_v44, %v5979_v21 }
0x111e   :  { %7429 = vmatmul.mubr.msk.bf16.gmra.mxu0 %vm318_vm2, %v5986_v56 }
0x11c3   :  { %v7422_v51 = vpop.f32.mrf.mxu0 }
0x11c4   :  { %v6064_v49 = vadd.f32 %v7422_v51, %v5990_v48 }
0x11c5   :  { %v6055_v13 = vpop.f32.mrf.mxu0 }
0x11c6   :  { %v6056_v5 = vadd.f32 %v6055_v13, %v5990_v48  ;;  %v6104_v12 = vmax.f32 %v6064_v49, 0.0 }
0x11c7   :  { %v7423_v22 = vpop.f32.mrf.mxu0 }
0x11c8   :  { %v6067_v31 = vadd.f32 %v7423_v22, %v5990_v48  ;;  %v6102_v15 = vmax.f32 %v6056_v5, 0.0 }
0x11c9   :  { %v6058_v27 = vpop.f32.mrf.mxu0 }
0x11ca   :  { %v6059_v55 = vadd.f32 %v6058_v27, %v5990_v48  ;;  %v6105_v17 = vmax.f32 %v6067_v31, 0.0 }
0x11cc   :  { %v6103_v1 = vmax.f32 %v6059_v55, 0.0  ;;  %v6115_v34 = vpack.c.bf16 %v6105_v17, %v6104_v12 }
0x11ce   :  { %v6114_v20 = vpack.c.bf16 %v6103_v1, %v6102_v15 }
0x11d0   :  { %7440 = vmatprep.mubr.msk.bf16.mxu1 %vm3063_vm8, %v6114_v20 }
0x11d1   :  { %7441 = vmatmul.mubr.msk.bf16.vlgmr.msra.gmra.mxu1 %vm3063_vm8, %v6115_v34 }
0x11d6   :  { %v7426_v36 = vpop.f32.mrf.mxu0 }
0x11d7   :  { %v6080_v19 = vadd.f32 %v7426_v36, %v5990_v48 }
0x11d8   :  { %v6071_v40 = vpop.f32.mrf.mxu0 }
0x11d9   :  { %v6072_v6 = vadd.f32 %v6071_v40, %v5990_v48  ;;  %v6108_v10 = vmax.f32 %v6080_v19, 0.0 }
0x11da   :  { %v7427_v61 = vpop.f32.mrf.mxu0 }
0x11db   :  { %v6083_v29 = vadd.f32 %v7427_v61, %v5990_v48  ;;  %v6106_v11 = vmax.f32 %v6072_v6, 0.0 }
0x11dc   :  { %v6074_v42 = vpop.f32.mrf.mxu0 }
0x11dd   :  { %v6075_v39 = vadd.f32 %v6074_v42, %v5990_v48  ;;  %v6109_v59 = vmax.f32 %v6083_v29, 0.0 }
0x11de   :  { %v7430_v24 = vpop.f32.mrf.mxu0 }
0x11df   :  { %v6107_v18 = vmax.f32 %v6075_v39, 0.0  ;;  %v6117_v58 = vpack.c.bf16 %v6109_v59, %v6108_v10  ;;  %v6096_v30 = vadd.f32 %v7430_v24, %v5990_v48 }
0x11e0   :  { %v6087_v50 = vpop.f32.mrf.mxu0 }
0x11e1   :  { %v6116_v37 = vpack.c.bf16 %v6107_v18, %v6106_v11  ;;  %v6088_v32 = vadd.f32 %v6087_v50, %v5990_v48  ;;  %v6112_v54 = vmax.f32 %v6096_v30, 0.0 }
0x11e2   :  { %v7431_v0 = vpop.f32.mrf.mxu0 }
0x11e3   :  { %v6099_v45 = vadd.f32 %v7431_v0, %v5990_v48  ;;  %7444 = vmatprep.mubr.msk.bf16.mxu1 %vm3063_vm8, %v6116_v37  ;;  %v6110_v16 = vmax.f32 %v6088_v32, 0.0 }
0x11e4   :  { %v6090_v26 = vpop.f32.mrf.mxu0  ;;  %7445 = vmatmul.mubr.msk.bf16.gmra.mxu1 %vm3063_vm8, %v6117_v58 }
0x11e5   :  { %v6091_v63 = vadd.f32 %v6090_v26, %v5990_v48  ;;  %v6113_v2 = vmax.f32 %v6099_v45, 0.0 }
0x11e7   :  { %v6111_v53 = vmax.f32 %v6091_v63, 0.0  ;;  %v6119_v7 = vpack.c.bf16 %v6113_v2, %v6112_v54 }
0x11e9   :  { %v6118_v4 = vpack.c.bf16 %v6111_v53, %v6110_v16 }
0x11eb   :  { %7448 = vmatprep.mubr.msk.bf16.mxu1 %vm3063_vm8, %v6118_v4 }
0x11ec   :  { %7449 = vmatmul.mubr.msk.bf16.gmra.mxu1 %vm3063_vm8, %v6119_v7 }
0x1291   :  { %v7442_v47 = vpop.f32.mrf.mxu1 }
0x1293   :  { %v6200_v9 = vpop.f32.mrf.mxu1 }
0x1294   :  { %v6201_v52 = vadd.f32 %v6200_v9, %v6123_v46 }
0x1295   :  { %v7443_v25 = vpop.f32.mrf.mxu1 }
0x1296   :  { %v6210_v21 = vadd.f32 %v7443_v25, %v6123_v46  ;;  %v6239_v41 = vadd.f32 %v6201_v52, %v10667_v3 }
0x1297   :  { %v6203_v44 = vpop.f32.mrf.mxu1 }
0x1298   :  { %v6240_v56 = vadd.f32 %v6210_v21, %v10674_v57  ;;  %v6243_v62 = vsel %vm318_vm2, %v6239_v41, 0.0  ;;  %v10916_v21 = vld [vmem:[#allocation7_spill] sm:$0xff] }
0x1299   :  { %v6306_v44 = vrot.slane %v10649_v14, %v10916_v21 }
0x129a   :  { %v6246_v28 = vsel %vm318_vm2, %v6240_v56, 0.0 }
0x129b   :  { %6247 = vadd.xlane.f32.xlu1 %v6246_v28 }
0x129f   :  { %6244 = vadd.xlane.f32.xlu1 %v6243_v62 }
0x12a4   :  { %v7446_v51 = vpop.f32.mrf.mxu1 }
0x12a5   :  { %v6221_v60 = vadd.f32 %v7446_v51, %v6123_v46 }
0x12a6   :  { %v6214_v43 = vpop.f32.mrf.mxu1 }
0x12a7   :  { %v6241_v33 = vadd.f32 %v6221_v60, %v10692_v35 }
0x12a8   :  { %v7447_v48 = vpop.f32.mrf.mxu1 }
0x12a9   :  { %v6249_v13 = vsel %vm318_vm2, %v6241_v33, 0.0 }
0x12aa   :  { %6250 = vadd.xlane.f32.xlu0 %v6249_v13  ;;  %v6216_v22 = vpop.f32.mrf.mxu1 }
0x12ac   :  { %v7450_v5 = vpop.f32.mrf.mxu1 }
0x12ae   :  { %v6227_v57 = vpop.f32.mrf.mxu1 }
0x12b0   :  { %v7451_v31 = vpop.f32.mrf.mxu1 }
0x12b2   :  { %v6229_v3 = vpop.f32.mrf.mxu1 }
0x12b3   :  { %v6230_v49 = vadd.f32 %v6229_v3, %v6123_v46  ;;  %v6298_v46 = vrot.slane %v10649_v14, %v10915_v38 }
0x12b5   :  { %v6242_v27 = vadd.f32 %v6230_v49, %v10704_v23 }
0x12b7   :  { %v6252_v55 = vsel %vm318_vm2, %v6242_v27, 0.0 }
0x12b8   :  { %6253 = vadd.xlane.f32.xlu0 %v6252_v55 }
0x1324   :  { %v6248_v17 = vpop.xlane.xlu1 %6247 }
0x1325   :  { %v6256_v15 = vmul.f32 0.03125, %v6248_v17 }
0x1327   :  { %v6260_v1 = vsub.f32 %v6240_v56, %v6256_v15 }
0x1328   :  { %v6245_v12 = vpop.xlane.xlu1 %6244 }
0x1329   :  { %v6255_v35 = vmul.f32 0.03125, %v6245_v12  ;;  %v6264_v20 = vmul.f32 %v6260_v1, %v6260_v1 }
0x132b   :  { %v6259_v34 = vsub.f32 %v6239_v41, %v6255_v35  ;;  %v6270_v36 = vsel %vm318_vm2, %v6264_v20, 0.0 }
0x132c   :  { %6271 = vadd.xlane.f32.xlu1 %v6270_v36 }
0x132d   :  { %v6263_v40 = vmul.f32 %v6259_v34, %v6259_v34 }
0x132f   :  { %v6267_v61 = vsel %vm318_vm2, %v6263_v40, 0.0 }
0x1330   :  { %6268 = vadd.xlane.f32.xlu1 %v6267_v61 }
0x1333   :  { %v6251_v6 = vpop.xlane.xlu0 %6250 }
0x1334   :  { %v6257_v29 = vmul.f32 0.03125, %v6251_v6 }
0x1336   :  { %v6261_v23 = vsub.f32 %v6241_v33, %v6257_v29 }
0x1338   :  { %v6265_v19 = vmul.f32 %v6261_v23, %v6261_v23 }
0x133a   :  { %v6273_v42 = vsel %vm318_vm2, %v6265_v19, 0.0 }
0x133b   :  { %6274 = vadd.xlane.f32.xlu0 %v6273_v42 }
0x1341   :  { %v6254_v39 = vpop.xlane.xlu0 %6253 }
0x1342   :  { %v6258_v59 = vmul.f32 0.03125, %v6254_v39 }
0x1344   :  { %v6262_v24 = vsub.f32 %v6242_v27, %v6258_v59 }
0x1346   :  { %v6266_v11 = vmul.f32 %v6262_v24, %v6262_v24 }
0x1348   :  { %v6276_v18 = vsel %vm318_vm2, %v6266_v11, 0.0 }
0x1349   :  { %6277 = vadd.xlane.f32.xlu0 %v6276_v18 }
0x13b5   :  { %v6272_v10 = vpop.xlane.xlu1 %6271 }
0x13b6   :  { %v6280_v58 = vmul.f32 0.03125, %v6272_v10  ;;  %v8034_v10 = vld [vmem:[%s10772_s2] sm:$0xff]  ;;  %s8066_s2 = smov [#allocation2]  }
0x13b7   :  { %s6410_s3 = sshll.u32 %s8066_s2, 4  ;;  %s6411_s3 = int_to_ptr.vmem [resolvable:$true] %s6410_s3 }
0x13b8   :  { %v6284_v30 = vadd.f32 1e-05, %v6280_v58  ;;  %s8035_s24 = scalar_lea.vmem %s6411_s3, 64  ;;  %p8040_p1 = scmp.lt.s32.totalorder %s6411_s3, %s6411_s3 }
0x13b9   :  { %v6269_v50 = vpop.xlane.xlu1 %6268  ;;  %p8036_p0 = scmp.ne.s32.totalorder %s6411_s3, %s8035_s24  ;;  %p8041_p2 = scmp.lt.s32.totalorder %s8035_s24, %s8035_s24 }
0x13ba   :  { %v6279_v32 = vmul.f32 0.03125, %v6269_v50  ;;  %v6378_v50 = vrot.slane %v8034_v10, %v10912_v8 }
0x13bb   :  { %p8042_p3 = por %p8041_p2, %p8040_p1 }
0x13bc   :  { %v6283_v26 = vadd.f32 1e-05, %v6279_v32 }
0x13bd   :  { %p8043_p4 = pnand %p8042_p3, %p8036_p0 }
0x13c4   :  { %v6275_v37 = vpop.xlane.xlu0 %6274 }
0x13c5   :  { %v6281_v0 = vmul.f32 0.03125, %v6275_v37 }
0x13c7   :  { %v6285_v45 = vadd.f32 1e-05, %v6281_v0 }
0x13c9   :  { %8022 = vrsqrt.f32 %v6285_v45 }
0x13ca   :  { %8024 = vrsqrt.f32 %v6284_v30 }
0x13cb   :  { %8026 = vrsqrt.f32 %v6283_v26 }
0x13d2   :  { %v6278_v63 = vpop.xlane.xlu0 %6277 }
0x13d3   :  { %v6282_v2 = vmul.f32 0.03125, %v6278_v63  ;;  %v6386_v63 = vrot.slane %v8034_v10, %v10915_v38 }
0x13d5   :  { %v6286_v16 = vadd.f32 1e-05, %v6282_v2 }
0x13d6   :  { %v8023_v53 = vpop.eup %8022 }
0x13d7   :  { %8028 = vrsqrt.f32 %v6286_v16  ;;  %v8025_v54 = vpop.eup %8024  ;;  %v6293_v7 = vmul.f32 %v8023_v53, %v6261_v23 }
0x13d8   :  { %v8027_v4 = vpop.eup %8026  ;;  %v6292_v47 = vmul.f32 %v8025_v54, %v6260_v1 }
0x13d9   :  { %v6291_v9 = vmul.f32 %v8027_v4, %v6259_v34  ;;  %v6301_v25 = vmul.f32 %v6298_v46, %v6293_v7 }
0x13da   :  { %v6300_v52 = vmul.f32 %v6298_v46, %v6292_v47 }
0x13db   :  { %v6299_v56 = vmul.f32 %v6298_v46, %v6291_v9  ;;  %v6309_v28 = vadd.f32 %v6306_v44, %v6301_v25 }
0x13dc   :  { %v6308_v51 = vadd.f32 %v6306_v44, %v6300_v52 }
0x13dd   :  { %v6307_v43 = vadd.f32 %v6306_v44, %v6299_v56  ;;  %v6318_v33 = vrot.slane %v6309_v28, 6 }
0x13de   :  { %v6315_v13 = vrot.slane %v6308_v51, 7 }
0x13e0   :  { %v6317_v22 = vsel %vm6316_vm9, %v6315_v13, %v6307_v43 }
0x13e1   :  { %v6320_v57 = vsel %vm6319_vm10, %v6318_v33, %v6317_v22 }
0x13e4   :  { %v8029_v41 = vpop.eup %8028 }
0x13e5   :  { %v6294_v62 = vmul.f32 %v8029_v41, %v6262_v24 }
0x13e7   :  { %v6302_v60 = vmul.f32 %v6298_v46, %v6294_v62 }
0x13e9   :  { %v6310_v48 = vadd.f32 %v6306_v44, %v6302_v60 }
0x13eb   :  { %v6321_v5 = vrot.slane %v6310_v48, 5 }
0x13ed   :  { %v6323_v14 = vsel %vm6322_vm11, %v6321_v5, %v6320_v57 }
0x13ee   :  { %v6326_v31 = vsel %vm6325_vm12, %v6323_v14, 0.0 }
0x13ef   :  { %6327 = vadd.xlane.f32.xlu1 %v6326_v31 }
0x1478   :  { %v6328_v3 = vpop.xlane.xlu1 %6327 }
0x1479   :  { %v6329_v49 = vmul.f32 0.03125, %v6328_v3 }
0x147b   :  { %v6331_v27 = vrot.slane %v6329_v49, 1  ;;  %v6332_v55 = vrot.slane %v6329_v49, 2  ;;  %v6333_v17 = vrot.slane %v6329_v49, 3  ;;  %v6338_v15 = vsub.f32 %v6307_v43, %v6329_v49 }
0x147d   :  { %v6339_v1 = vsub.f32 %v6308_v51, %v6331_v27  ;;  %v6340_v12 = vsub.f32 %v6309_v28, %v6332_v55  ;;  %v6341_v35 = vsub.f32 %v6310_v48, %v6333_v17  ;;  %v6342_v40 = vmul.f32 %v6338_v15, %v6338_v15 }
0x147f   :  { %v6343_v20 = vmul.f32 %v6339_v1, %v6339_v1  ;;  %v6344_v34 = vmul.f32 %v6340_v12, %v6340_v12  ;;  %v6345_v36 = vmul.f32 %v6341_v35, %v6341_v35 }
0x1481   :  { %v6350_v61 = vrot.slane %v6343_v20, 7  ;;  %v6352_v6 = vrot.slane %v6344_v34, 6  ;;  %v6354_v23 = vrot.slane %v6345_v36, 5 }
0x1483   :  { %v6351_v29 = vsel %vm6316_vm9, %v6350_v61, %v6342_v40 }
0x1484   :  { %v6353_v19 = vsel %vm6319_vm10, %v6352_v6, %v6351_v29 }
0x1485   :  { %v6355_v42 = vsel %vm6322_vm11, %v6354_v23, %v6353_v19 }
0x1486   :  { %v6357_v39 = vsel %vm6325_vm12, %v6355_v42, 0.0 }
0x1487   :  { %6358 = vadd.xlane.f32.xlu0 %v6357_v39 }
0x1510   :  { %v6359_v59 = vpop.xlane.xlu0 %6358 }
0x1511   :  { %v6360_v24 = vmul.f32 0.03125, %v6359_v59 }
0x1513   :  { %v6361_v11 = vadd.f32 1e-05, %v6360_v24 }
0x1515   :  { %8030 = vrsqrt.f32 %v6361_v11 }
0x1522   :  { %v8031_v18 = vpop.eup %8030 }
0x1523   :  { %v6364_v37 = vrot.slane %v8031_v18, 1  ;;  %v6365_v58 = vrot.slane %v8031_v18, 2  ;;  %v6366_v0 = vrot.slane %v8031_v18, 3  ;;  %v6371_v32 = vmul.f32 %v8031_v18, %v6338_v15 }
0x1525   :  { %v6372_v45 = vmul.f32 %v6364_v37, %v6339_v1  ;;  %v6373_v30 = vmul.f32 %v6365_v58, %v6340_v12  ;;  %v6374_v26 = vmul.f32 %v6366_v0, %v6341_v35  ;;  %v6379_v2 = vmul.f32 %v6378_v50, %v6371_v32 }
0x1527   :  { %v6380_v16 = vmul.f32 %v6378_v50, %v6372_v45  ;;  %v6381_v53 = vmul.f32 %v6378_v50, %v6373_v30  ;;  %v6382_v54 = vmul.f32 %v6378_v50, %v6374_v26  ;;  %v6387_v46 = vadd.f32 %v6386_v63, %v6379_v2 }
0x1529   :  { %v6388_v4 = vadd.f32 %v6386_v63, %v6380_v16  ;;  %v6389_v7 = vadd.f32 %v6386_v63, %v6381_v53  ;;  %v6390_v47 = vadd.f32 %v6386_v63, %v6382_v54 }
0x152b   :  { %v6395_v9 = vrot.slane %v6388_v4, 7  ;;  %v6397_v25 = vrot.slane %v6389_v7, 6  ;;  %v6399_v52 = vrot.slane %v6390_v47, 5 }
0x152d   :  { %v6396_v8 = vsel %vm6316_vm9, %v6395_v9, %v6387_v46 }
0x152e   :  { %v6398_v21 = vsel %vm6319_vm10, %v6397_v25, %v6396_v8 }
0x152f   :  { %v6400_v44 = vsel %vm6322_vm11, %v6399_v52, %v6398_v21 }
0x1530   :  { %v6402_v38 = vsel %vm318_vm2, %v6400_v44, 0.0 }
0x1531   :  { %6403 = vst [vmem:[#allocation2] sm:$0xf] %v6402_v38 }
0x1532   :  { %8046 = shalt.err (!%p8043_p4)
}
0x1533   :  { %6413 = dma.vmem_to_hbm [thread:$0]  %s6411_s3, 64, %s10778_s8, [#allocation3]  }
0x1534   :  { %8055 = dma.done.wait [#allocation3], 64  }
0x1535   :  { %8056 = vsyncadd [#allocation3], 4294967232 }
0x1536   :  { %6417 = vsyncpa [#allocation3], 1 }

</bundles_post_ra>
